<compile_context>
chip_gen: v5e
topology: v5e:2x2
jax: 0.10.0
libtpu: 0.0.40
codegen_flags: <defaults>
</compile_context>

<pallas_src>
import math
import functools

import jax
import jax.numpy as jnp
from jax.experimental import pallas as pl
from jax.experimental.pallas import tpu as pltpu

# ----------------------------- config ---------------------------------------
VOCAB = 100
HIDDEN = 32
N_LAYERS = 2
N_HEADS = 4
HEAD_DIM = HIDDEN // N_HEADS
FFN = 64
MAX_POS = 16
BATCH = 2
SEQ = 8
LN_EPS = 1e-12


# ----------------------------- shared math -----------------------------------
def _gelu(y):
    # tanh approximation of GELU.
    # TODO(synk): HuggingFace BERT uses erf-GELU; tanh approx differs ~1e-3.
    c = math.sqrt(2.0 / math.pi)
    return 0.5 * y * (1.0 + jnp.tanh(c * (y + 0.044715 * y * y * y)))


def _layernorm(h, g, b):
    mean = jnp.mean(h, axis=-1, keepdims=True)
    c = h - mean
    var = jnp.mean(c * c, axis=-1, keepdims=True)
    return c * jax.lax.rsqrt(var + LN_EPS) * g + b


# ----------------------------- fused Pallas kernel ----------------------------
def _fused_bert_kernel(emb_ref, mask_ref,
                       emb_ln_g_ref, emb_ln_b_ref,
                       wqkv_ref, bqkv_ref, wo_ref, bo_ref,
                       ln1_g_ref, ln1_b_ref,
                       w1_ref, b1_ref, w2_ref, b2_ref,
                       ln2_g_ref, ln2_b_ref,
                       pooler_w_ref, pooler_b_ref,
                       cls_w_ref, cls_b_ref,
                       pooled_ref, logits_ref):
    """Whole BERT encoder + pooler + classifier in a single grid step.

    emb_ref : (B*S, H)  word+pos+type embedding sum (pre-LayerNorm)
    mask_ref: (B, S)    additive attention bias ((1-mask)*-1e4)
    Per-layer weights are stacked on a leading layer axis; the layer/batch/head
    loops are static Python loops (fully unrolled), so all intermediates stay
    resident on-chip.
    """
    B, S = mask_ref.shape
    H = emb_ref.shape[1]
    L = wqkv_ref.shape[0]
    Hn = N_HEADS
    Dh = H // Hn
    scale = 1.0 / math.sqrt(Dh)

    # Embedding LayerNorm (no zero-residual buffer streamed in).
    x = _layernorm(emb_ref[...], emb_ln_g_ref[...], emb_ln_b_ref[...])   # (B*S, H)
    mask = mask_ref[...]                                                 # (B, S)

    for l in range(L):
        # ---- fused QKV projection: one (B*S,H)x(H,3H) MXU matmul ----
        qkv = jnp.dot(x, wqkv_ref[l],
                      preferred_element_type=jnp.float32) + bqkv_ref[l]  # (B*S,3H)
        wo = wo_ref[l]                                                   # (H, H)

        # ---- multi-head self-attention (static unroll over batch & head) ----
        attn_rows = []
        for b in range(B):
            r0 = b * S
            bias_b = mask[b:b + 1, :]                                    # (1, S)
            attn_b = None
            for h in range(Hn):
                q_h = qkv[r0:r0 + S, h * Dh:(h + 1) * Dh]                # (S, Dh)
                k_h = qkv[r0:r0 + S, H + h * Dh:H + (h + 1) * Dh]        # (S, Dh)
                v_h = qkv[r0:r0 + S, 2 * H + h * Dh:2 * H + (h + 1) * Dh]
                # scores: contract Dh of both operands (no explicit k.T)
                s = jax.lax.dot_general(
                    q_h, k_h, (((1,), (1,)), ((), ())),
                    preferred_element_type=jnp.float32) * scale + bias_b  # (S,S)
                s = s - jnp.max(s, axis=-1, keepdims=True)
                p = jnp.exp(s)
                p = p / jnp.sum(p, axis=-1, keepdims=True)
                ctx = jnp.dot(p, v_h, preferred_element_type=jnp.float32)  # (S,Dh)
                # Fold output projection per head: ctx @ Wo[h*Dh:(h+1)*Dh, :]
                part = jnp.dot(ctx, wo[h * Dh:(h + 1) * Dh, :],
                               preferred_element_type=jnp.float32)         # (S,H)
                attn_b = part if attn_b is None else attn_b + part
            attn_rows.append(attn_b)
        attn = jnp.concatenate(attn_rows, axis=0) + bo_ref[l]             # (B*S,H)

        # ---- residual + LayerNorm fused (no HBM round trip) ----
        x = _layernorm(attn + x, ln1_g_ref[l], ln1_b_ref[l])

        # ---- FFN: GELU(x@W1+b1)@W2+b2, residual + LayerNorm ----
        h1 = _gelu(jnp.dot(x, w1_ref[l],
                           preferred_element_type=jnp.float32) + b1_ref[l])
        ffn = jnp.dot(h1, w2_ref[l],
                      preferred_element_type=jnp.float32) + b2_ref[l]
        x = _layernorm(ffn + x, ln2_g_ref[l], ln2_b_ref[l])

    # ---- pooler tanh(Linear(hidden[CLS])) + classifier, fused ----
    for b in range(B):
        cls_b = x[b * S:b * S + 1, :]                                     # (1, H)
        pooled_b = jnp.tanh(jnp.dot(cls_b, pooler_w_ref[...],
                                    preferred_element_type=jnp.float32)
                            + pooler_b_ref[...])                          # (1, H)
        pooled_ref[b:b + 1, :] = pooled_b.astype(pooled_ref.dtype)
        # Dropout(p=0) is identity.
        logit_b = jnp.dot(pooled_b, cls_w_ref[...],
                          preferred_element_type=jnp.float32) + cls_b_ref[...]
        logits_ref[b:b + 1, :] = logit_b.astype(logits_ref.dtype)


# ----------------------------- wrapper ----------------------------------------
def _full_spec(shape):
    zeros = (0,) * len(shape)
    return pl.BlockSpec(shape, lambda i, _z=zeros: _z)


def bert_base_pooled_output(params, input_ids, attention_mask):
    """Mirrors BertBasePooledOutput.forward -> (pooled_output, logits)."""
    B, S = input_ids.shape
    H = HIDDEN

    # Embedding gathers are JAX glue; everything else runs in the fused kernel.
    emb = (jnp.take(params["word_emb"], input_ids, axis=0)
           + params["pos_emb"][None, :S, :]
           + params["type_emb"][0][None, None, :]).astype(jnp.float32)
    emb = emb.reshape(B * S, H)

    # HuggingFace-style additive mask bias.
    mask_bias = (1.0 - attention_mask.astype(jnp.float32)) * -10000.0     # (B, S)

    args = (emb, mask_bias,
            params["emb_ln_g"], params["emb_ln_b"],
            params["wqkv"], params["bqkv"], params["wo"], params["bo"],
            params["ln1_g"], params["ln1_b"],
            params["w1"], params["b1"], params["w2"], params["b2"],
            params["ln2_g"], params["ln2_b"],
            params["pooler_w"], params["pooler_b"],
            params["cls_w"], params["cls_b"])

    pooled, logits = pl.pallas_call(
        _fused_bert_kernel,
        out_shape=(jax.ShapeDtypeStruct((B, H), jnp.float32),
                   jax.ShapeDtypeStruct((B, 1), jnp.float32)),
        grid=(1,),
        in_specs=[_full_spec(a.shape) for a in args],
        out_specs=(_full_spec((B, H)), _full_spec((B, 1))),
        compiler_params=pltpu.CompilerParams(
            dimension_semantics=("arbitrary",)),
    )(*args)
    return pooled, logits


# ----------------------------- parameters -------------------------------------
def init_params(key):
    n_rand = 3 + 4 * N_LAYERS + 2
    keys = iter(jax.random.split(key, n_rand))

    def w(shape, std=0.02):
        return (std * jax.random.normal(next(keys), shape)).astype(jnp.float32)

    def zeros(shape):
        return jnp.zeros(shape, jnp.float32)

    def ones(shape):
        return jnp.ones(shape, jnp.float32)

    L, H, F = N_LAYERS, HIDDEN, FFN
    return {
        "word_emb": w((VOCAB, H)),
        "pos_emb": w((MAX_POS, H)),
        "type_emb": w((2, H)),
        "emb_ln_g": ones((1, H)), "emb_ln_b": zeros((1, H)),
        # fused QKV weights (wq|wk|wv) and stacked per-layer weights
        "wqkv": jnp.stack([w((H, 3 * H)) for _ in range(L)]),
        "bqkv": zeros((L, 1, 3 * H)),
        "wo": jnp.stack([w((H, H)) for _ in range(L)]),
        "bo": zeros((L, 1, H)),
        "ln1_g": ones((L, 1, H)), "ln1_b": zeros((L, 1, H)),
        "w1": jnp.stack([w((H, F)) for _ in range(L)]),
        "b1": zeros((L, 1, F)),
        "w2": jnp.stack([w((F, H)) for _ in range(L)]),
        "b2": zeros((L, 1, H)),
        "ln2_g": ones((L, 1, H)), "ln2_b": zeros((L, 1, H)),
        "pooler_w": w((H, H)), "pooler_b": zeros((1, H)),
        "cls_w": w((H, 1)), "cls_b": zeros((1, 1)),
    }


# ----------------------------- pure-JAX reference ------------------------------
def reference_forward(params, input_ids, attention_mask):
    B, S = input_ids.shape
    H, Hn, Dh = HIDDEN, N_HEADS, HEAD_DIM
    emb = (jnp.take(params["word_emb"], input_ids, axis=0)
           + params["pos_emb"][None, :S, :]
           + params["type_emb"][0][None, None, :])
    x = _layernorm(emb.reshape(B * S, H), params["emb_ln_g"], params["emb_ln_b"])
    bias = (1.0 - attention_mask.astype(jnp.float32)) * -10000.0          # (B, S)
    for l in range(N_LAYERS):
        qkv = x @ params["wqkv"][l] + params["bqkv"][l]
        q, k, v = jnp.split(qkv, 3, axis=-1)

        def heads(t):
            return t.reshape(B, S, Hn, Dh).transpose(0, 2, 1, 3)

        qh, kh, vh = heads(q), heads(k), heads(v)
        s = jnp.einsum("bhqd,bhkd->bhqk", qh, kh) / math.sqrt(Dh)
        s = s + bias[:, None, None, :]
        p = jax.nn.softmax(s, axis=-1)
        ctx = jnp.einsum("bhqk,bhkd->bhqd", p, vh)
        ctx = ctx.transpose(0, 2, 1, 3).reshape(B * S, H)
        attn = ctx @ params["wo"][l] + params["bo"][l]
        x = _layernorm(attn + x, params["ln1_g"][l], params["ln1_b"][l])
        h1 = _gelu(x @ params["w1"][l] + params["b1"][l])
        ffn = h1 @ params["w2"][l] + params["b2"][l]
        x = _layernorm(ffn + x, params["ln2_g"][l], params["ln2_b"][l])
    cls = x.reshape(B, S, H)[:, 0, :]
    pooled = jnp.tanh(cls @ params["pooler_w"] + params["pooler_b"])
    logits = pooled @ params["cls_w"] + params["cls_b"]
    return pooled, logits


# ----------------------------- main --------------------------------------------
if __name__ == "__main__":
    key = jax.random.PRNGKey(0)
    pkey, ikey = jax.random.split(key)

    params = init_params(pkey)
    input_ids = jax.random.randint(ikey, (BATCH, SEQ), 0, VOCAB, dtype=jnp.int32)
    attention_mask = jnp.ones((BATCH, SEQ), jnp.float32).at[1, 6:].set(0.0)

    fwd = jax.jit(functools.partial(bert_base_pooled_output, params))
    pooled, logits = fwd(input_ids, attention_mask)
    jax.block_until_ready((pooled, logits))

    assert pooled.shape == (BATCH, HIDDEN) and logits.shape == (BATCH, 1)

    # Pure-JAX reference check (full f32 matmul precision in the reference).
    with jax.default_matmul_precision("float32"):
        pooled_ref, logits_ref = reference_forward(params, input_ids, attention_mask)
    assert jnp.allclose(pooled, pooled_ref, atol=2e-3, rtol=2e-3), \
        float(jnp.max(jnp.abs(pooled - pooled_ref)))
    assert jnp.allclose(logits, logits_ref, atol=2e-3, rtol=2e-3), \
        float(jnp.max(jnp.abs(logits - logits_ref)))

    print("KERNEL_OK")
</pallas_src>

<mosaic_0001>
module attributes {stable_mosaic.version = 11 : i64} {
  func.func @_fused_bert_kernel(%arg0: i32, %arg1: memref<16x32xf32, #tpu.memory_space<vmem>>, %arg2: memref<2x8xf32, #tpu.memory_space<vmem>>, %arg3: memref<1x32xf32, #tpu.memory_space<vmem>>, %arg4: memref<1x32xf32, #tpu.memory_space<vmem>>, %arg5: memref<2x32x96xf32, #tpu.memory_space<vmem>>, %arg6: memref<2x1x96xf32, #tpu.memory_space<vmem>>, %arg7: memref<2x32x32xf32, #tpu.memory_space<vmem>>, %arg8: memref<2x1x32xf32, #tpu.memory_space<vmem>>, %arg9: memref<2x1x32xf32, #tpu.memory_space<vmem>>, %arg10: memref<2x1x32xf32, #tpu.memory_space<vmem>>, %arg11: memref<2x32x64xf32, #tpu.memory_space<vmem>>, %arg12: memref<2x1x64xf32, #tpu.memory_space<vmem>>, %arg13: memref<2x64x32xf32, #tpu.memory_space<vmem>>, %arg14: memref<2x1x32xf32, #tpu.memory_space<vmem>>, %arg15: memref<2x1x32xf32, #tpu.memory_space<vmem>>, %arg16: memref<2x1x32xf32, #tpu.memory_space<vmem>>, %arg17: memref<32x32xf32, #tpu.memory_space<vmem>>, %arg18: memref<1x32xf32, #tpu.memory_space<vmem>>, %arg19: memref<32x1xf32, #tpu.memory_space<vmem>>, %arg20: memref<1x1xf32, #tpu.memory_space<vmem>>, %arg21: memref<2x32xf32, #tpu.memory_space<vmem>>, %arg22: memref<2x1xf32, #tpu.memory_space<vmem>>) attributes {dimension_semantics = [#tpu.dimension_semantics<arbitrary>], iteration_bounds = array<i64: 1>, scalar_prefetch = 0 : i64, scratch_operands = 0 : i64, tpu.core_type = #tpu.core_type<tc>, window_params = [{pipeline_mode = #tpu.pipeline_mode<synchronous>, transform_indices = @transform_0, window_bounds = array<i64: 16, 32>}, {pipeline_mode = #tpu.pipeline_mode<synchronous>, transform_indices = @transform_1, window_bounds = array<i64: 2, 8>}, {pipeline_mode = #tpu.pipeline_mode<synchronous>, transform_indices = @transform_2, window_bounds = array<i64: 1, 32>}, {pipeline_mode = #tpu.pipeline_mode<synchronous>, transform_indices = @transform_3, window_bounds = array<i64: 1, 32>}, {pipeline_mode = #tpu.pipeline_mode<synchronous>, transform_indices = @transform_4, window_bounds = array<i64: 2, 32, 96>}, {pipeline_mode = #tpu.pipeline_mode<synchronous>, transform_indices = @transform_5, window_bounds = array<i64: 2, 1, 96>}, {pipeline_mode = #tpu.pipeline_mode<synchronous>, transform_indices = @transform_6, window_bounds = array<i64: 2, 32, 32>}, {pipeline_mode = #tpu.pipeline_mode<synchronous>, transform_indices = @transform_7, window_bounds = array<i64: 2, 1, 32>}, {pipeline_mode = #tpu.pipeline_mode<synchronous>, transform_indices = @transform_8, window_bounds = array<i64: 2, 1, 32>}, {pipeline_mode = #tpu.pipeline_mode<synchronous>, transform_indices = @transform_9, window_bounds = array<i64: 2, 1, 32>}, {pipeline_mode = #tpu.pipeline_mode<synchronous>, transform_indices = @transform_10, window_bounds = array<i64: 2, 32, 64>}, {pipeline_mode = #tpu.pipeline_mode<synchronous>, transform_indices = @transform_11, window_bounds = array<i64: 2, 1, 64>}, {pipeline_mode = #tpu.pipeline_mode<synchronous>, transform_indices = @transform_12, window_bounds = array<i64: 2, 64, 32>}, {pipeline_mode = #tpu.pipeline_mode<synchronous>, transform_indices = @transform_13, window_bounds = array<i64: 2, 1, 32>}, {pipeline_mode = #tpu.pipeline_mode<synchronous>, transform_indices = @transform_14, window_bounds = array<i64: 2, 1, 32>}, {pipeline_mode = #tpu.pipeline_mode<synchronous>, transform_indices = @transform_15, window_bounds = array<i64: 2, 1, 32>}, {pipeline_mode = #tpu.pipeline_mode<synchronous>, transform_indices = @transform_16, window_bounds = array<i64: 32, 32>}, {pipeline_mode = #tpu.pipeline_mode<synchronous>, transform_indices = @transform_17, window_bounds = array<i64: 1, 32>}, {pipeline_mode = #tpu.pipeline_mode<synchronous>, transform_indices = @transform_18, window_bounds = array<i64: 32, 1>}, {pipeline_mode = #tpu.pipeline_mode<synchronous>, transform_indices = @transform_19, window_bounds = array<i64: 1, 1>}, {pipeline_mode = #tpu.pipeline_mode<synchronous>, transform_indices = @transform_20, window_bounds = array<i64: 2, 32>}, {pipeline_mode = #tpu.pipeline_mode<synchronous>, transform_indices = @transform_21, window_bounds = array<i64: 2, 1>}]} {
    %c0 = arith.constant 0 : index
    %c0_0 = arith.constant 0 : index
    %0 = vector.load %arg1[%c0, %c0_0] : memref<16x32xf32, #tpu.memory_space<vmem>>, vector<16x32xf32>
    %c0_1 = arith.constant 0 : index
    %c0_2 = arith.constant 0 : index
    %1 = vector.load %arg3[%c0_1, %c0_2] : memref<1x32xf32, #tpu.memory_space<vmem>>, vector<1x32xf32>
    %c0_3 = arith.constant 0 : index
    %c0_4 = arith.constant 0 : index
    %2 = vector.load %arg4[%c0_3, %c0_4] : memref<1x32xf32, #tpu.memory_space<vmem>>, vector<1x32xf32>
    %cst = arith.constant dense<0.000000e+00> : vector<16xf32>
    %3 = vector.multi_reduction <add>, %0, %cst [1] : vector<16x32xf32> to vector<16xf32>
    %4 = vector.shape_cast %3 : vector<16xf32> to vector<16x1xf32>
    %cst_5 = arith.constant 3.200000e+01 : f32
    %5 = vector.broadcast %cst_5 : f32 to vector<16x1xf32>
    %6 = arith.divf %4, %5 : vector<16x1xf32>
    %7 = vector.broadcast %6 : vector<16x1xf32> to vector<16x32xf32>
    %8 = arith.subf %0, %7 : vector<16x32xf32>
    %9 = arith.mulf %8, %8 : vector<16x32xf32>
    %cst_6 = arith.constant dense<0.000000e+00> : vector<16xf32>
    %10 = vector.multi_reduction <add>, %9, %cst_6 [1] : vector<16x32xf32> to vector<16xf32>
    %11 = vector.shape_cast %10 : vector<16xf32> to vector<16x1xf32>
    %cst_7 = arith.constant 3.200000e+01 : f32
    %12 = vector.broadcast %cst_7 : f32 to vector<16x1xf32>
    %13 = arith.divf %11, %12 : vector<16x1xf32>
    %cst_8 = arith.constant 9.99999996E-13 : f32
    %14 = vector.broadcast %cst_8 : f32 to vector<16x1xf32>
    %15 = arith.addf %13, %14 : vector<16x1xf32>
    %16 = math.rsqrt %15 : vector<16x1xf32>
    %17 = vector.broadcast %16 : vector<16x1xf32> to vector<16x32xf32>
    %18 = arith.mulf %8, %17 : vector<16x32xf32>
    %19 = vector.broadcast %1 : vector<1x32xf32> to vector<16x32xf32>
    %20 = arith.mulf %18, %19 : vector<16x32xf32>
    %21 = vector.broadcast %2 : vector<1x32xf32> to vector<16x32xf32>
    %22 = arith.addf %20, %21 : vector<16x32xf32>
    %c0_9 = arith.constant 0 : index
    %c0_10 = arith.constant 0 : index
    %23 = vector.load %arg2[%c0_9, %c0_10] : memref<2x8xf32, #tpu.memory_space<vmem>>, vector<2x8xf32>
    %c0_11 = arith.constant 0 : index
    %c0_12 = arith.constant 0 : index
    %c0_13 = arith.constant 0 : index
    %24 = vector.load %arg5[%c0_11, %c0_12, %c0_13] : memref<2x32x96xf32, #tpu.memory_space<vmem>>, vector<1x32x96xf32>
    %25 = vector.shape_cast %24 : vector<1x32x96xf32> to vector<32x96xf32>
    %cst_14 = arith.constant dense<0.000000e+00> : vector<16x96xf32>
    %26 = tpu.matmul %22, %25, %cst_14 {dimension_numbers = #tpu.dot_dimension_numbers<[1], [0], [0], [1], [0, 0, 1, 1], [], []>} : vector<16x32xf32>, vector<32x96xf32>, vector<16x96xf32> -> vector<16x96xf32>
    %c0_15 = arith.constant 0 : index
    %c0_16 = arith.constant 0 : index
    %c0_17 = arith.constant 0 : index
    %27 = vector.load %arg6[%c0_15, %c0_16, %c0_17] : memref<2x1x96xf32, #tpu.memory_space<vmem>>, vector<1x1x96xf32>
    %28 = vector.shape_cast %27 : vector<1x1x96xf32> to vector<1x96xf32>
    %29 = vector.broadcast %28 : vector<1x96xf32> to vector<16x96xf32>
    %30 = arith.addf %26, %29 : vector<16x96xf32>
    %c0_18 = arith.constant 0 : index
    %c0_19 = arith.constant 0 : index
    %c0_20 = arith.constant 0 : index
    %31 = vector.load %arg7[%c0_18, %c0_19, %c0_20] : memref<2x32x32xf32, #tpu.memory_space<vmem>>, vector<1x32x32xf32>
    %32 = vector.shape_cast %31 : vector<1x32x32xf32> to vector<32x32xf32>
    %33 = vector.extract_strided_slice %23 {offsets = [0, 0], sizes = [1, 8], strides = [1, 1]} : vector<2x8xf32> to vector<1x8xf32>
    %34 = vector.extract_strided_slice %30 {offsets = [0, 0], sizes = [8, 8], strides = [1, 1]} : vector<16x96xf32> to vector<8x8xf32>
    %35 = vector.extract_strided_slice %30 {offsets = [0, 32], sizes = [8, 8], strides = [1, 1]} : vector<16x96xf32> to vector<8x8xf32>
    %36 = vector.extract_strided_slice %30 {offsets = [0, 64], sizes = [8, 8], strides = [1, 1]} : vector<16x96xf32> to vector<8x8xf32>
    %cst_21 = arith.constant dense<0.000000e+00> : vector<8x8xf32>
    %37 = tpu.matmul %34, %35, %cst_21 {dimension_numbers = #tpu.dot_dimension_numbers<[1], [1], [0], [0], [0, 0, 1, 0], [], []>} : vector<8x8xf32>, vector<8x8xf32>, vector<8x8xf32> -> vector<8x8xf32>
    %cst_22 = arith.constant 0.353553385 : f32
    %38 = vector.broadcast %cst_22 : f32 to vector<8x8xf32>
    %39 = arith.mulf %37, %38 : vector<8x8xf32>
    %40 = vector.broadcast %33 : vector<1x8xf32> to vector<8x8xf32>
    %41 = arith.addf %39, %40 : vector<8x8xf32>
    %cst_23 = arith.constant dense<0xFF800000> : vector<8xf32>
    %42 = vector.multi_reduction <maximumf>, %41, %cst_23 [1] : vector<8x8xf32> to vector<8xf32>
    %43 = vector.shape_cast %42 : vector<8xf32> to vector<8x1xf32>
    %44 = vector.broadcast %43 : vector<8x1xf32> to vector<8x8xf32>
    %45 = arith.subf %41, %44 : vector<8x8xf32>
    %46 = math.exp %45 : vector<8x8xf32>
    %cst_24 = arith.constant dense<0.000000e+00> : vector<8xf32>
    %47 = vector.multi_reduction <add>, %46, %cst_24 [1] : vector<8x8xf32> to vector<8xf32>
    %48 = vector.shape_cast %47 : vector<8xf32> to vector<8x1xf32>
    %49 = vector.broadcast %48 : vector<8x1xf32> to vector<8x8xf32>
    %50 = arith.divf %46, %49 : vector<8x8xf32>
    %cst_25 = arith.constant dense<0.000000e+00> : vector<8x8xf32>
    %51 = tpu.matmul %50, %36, %cst_25 {dimension_numbers = #tpu.dot_dimension_numbers<[1], [0], [0], [1], [0, 0, 1, 1], [], []>} : vector<8x8xf32>, vector<8x8xf32>, vector<8x8xf32> -> vector<8x8xf32>
    %52 = vector.extract_strided_slice %32 {offsets = [0, 0], sizes = [8, 32], strides = [1, 1]} : vector<32x32xf32> to vector<8x32xf32>
    %cst_26 = arith.constant dense<0.000000e+00> : vector<8x32xf32>
    %53 = tpu.matmul %51, %52, %cst_26 {dimension_numbers = #tpu.dot_dimension_numbers<[1], [0], [0], [1], [0, 0, 1, 1], [], []>} : vector<8x8xf32>, vector<8x32xf32>, vector<8x32xf32> -> vector<8x32xf32>
    %54 = vector.extract_strided_slice %30 {offsets = [0, 8], sizes = [8, 8], strides = [1, 1]} : vector<16x96xf32> to vector<8x8xf32>
    %55 = vector.extract_strided_slice %30 {offsets = [0, 40], sizes = [8, 8], strides = [1, 1]} : vector<16x96xf32> to vector<8x8xf32>
    %56 = vector.extract_strided_slice %30 {offsets = [0, 72], sizes = [8, 8], strides = [1, 1]} : vector<16x96xf32> to vector<8x8xf32>
    %cst_27 = arith.constant dense<0.000000e+00> : vector<8x8xf32>
    %57 = tpu.matmul %54, %55, %cst_27 {dimension_numbers = #tpu.dot_dimension_numbers<[1], [1], [0], [0], [0, 0, 1, 0], [], []>} : vector<8x8xf32>, vector<8x8xf32>, vector<8x8xf32> -> vector<8x8xf32>
    %cst_28 = arith.constant 0.353553385 : f32
    %58 = vector.broadcast %cst_28 : f32 to vector<8x8xf32>
    %59 = arith.mulf %57, %58 : vector<8x8xf32>
    %60 = vector.broadcast %33 : vector<1x8xf32> to vector<8x8xf32>
    %61 = arith.addf %59, %60 : vector<8x8xf32>
    %cst_29 = arith.constant dense<0xFF800000> : vector<8xf32>
    %62 = vector.multi_reduction <maximumf>, %61, %cst_29 [1] : vector<8x8xf32> to vector<8xf32>
    %63 = vector.shape_cast %62 : vector<8xf32> to vector<8x1xf32>
    %64 = vector.broadcast %63 : vector<8x1xf32> to vector<8x8xf32>
    %65 = arith.subf %61, %64 : vector<8x8xf32>
    %66 = math.exp %65 : vector<8x8xf32>
    %cst_30 = arith.constant dense<0.000000e+00> : vector<8xf32>
    %67 = vector.multi_reduction <add>, %66, %cst_30 [1] : vector<8x8xf32> to vector<8xf32>
    %68 = vector.shape_cast %67 : vector<8xf32> to vector<8x1xf32>
    %69 = vector.broadcast %68 : vector<8x1xf32> to vector<8x8xf32>
    %70 = arith.divf %66, %69 : vector<8x8xf32>
    %cst_31 = arith.constant dense<0.000000e+00> : vector<8x8xf32>
    %71 = tpu.matmul %70, %56, %cst_31 {dimension_numbers = #tpu.dot_dimension_numbers<[1], [0], [0], [1], [0, 0, 1, 1], [], []>} : vector<8x8xf32>, vector<8x8xf32>, vector<8x8xf32> -> vector<8x8xf32>
    %72 = vector.extract_strided_slice %32 {offsets = [8, 0], sizes = [8, 32], strides = [1, 1]} : vector<32x32xf32> to vector<8x32xf32>
    %cst_32 = arith.constant dense<0.000000e+00> : vector<8x32xf32>
    %73 = tpu.matmul %71, %72, %cst_32 {dimension_numbers = #tpu.dot_dimension_numbers<[1], [0], [0], [1], [0, 0, 1, 1], [], []>} : vector<8x8xf32>, vector<8x32xf32>, vector<8x32xf32> -> vector<8x32xf32>
    %74 = arith.addf %53, %73 : vector<8x32xf32>
    %75 = vector.extract_strided_slice %30 {offsets = [0, 16], sizes = [8, 8], strides = [1, 1]} : vector<16x96xf32> to vector<8x8xf32>
    %76 = vector.extract_strided_slice %30 {offsets = [0, 48], sizes = [8, 8], strides = [1, 1]} : vector<16x96xf32> to vector<8x8xf32>
    %77 = vector.extract_strided_slice %30 {offsets = [0, 80], sizes = [8, 8], strides = [1, 1]} : vector<16x96xf32> to vector<8x8xf32>
    %cst_33 = arith.constant dense<0.000000e+00> : vector<8x8xf32>
    %78 = tpu.matmul %75, %76, %cst_33 {dimension_numbers = #tpu.dot_dimension_numbers<[1], [1], [0], [0], [0, 0, 1, 0], [], []>} : vector<8x8xf32>, vector<8x8xf32>, vector<8x8xf32> -> vector<8x8xf32>
    %cst_34 = arith.constant 0.353553385 : f32
    %79 = vector.broadcast %cst_34 : f32 to vector<8x8xf32>
    %80 = arith.mulf %78, %79 : vector<8x8xf32>
    %81 = vector.broadcast %33 : vector<1x8xf32> to vector<8x8xf32>
    %82 = arith.addf %80, %81 : vector<8x8xf32>
    %cst_35 = arith.constant dense<0xFF800000> : vector<8xf32>
    %83 = vector.multi_reduction <maximumf>, %82, %cst_35 [1] : vector<8x8xf32> to vector<8xf32>
    %84 = vector.shape_cast %83 : vector<8xf32> to vector<8x1xf32>
    %85 = vector.broadcast %84 : vector<8x1xf32> to vector<8x8xf32>
    %86 = arith.subf %82, %85 : vector<8x8xf32>
    %87 = math.exp %86 : vector<8x8xf32>
    %cst_36 = arith.constant dense<0.000000e+00> : vector<8xf32>
    %88 = vector.multi_reduction <add>, %87, %cst_36 [1] : vector<8x8xf32> to vector<8xf32>
    %89 = vector.shape_cast %88 : vector<8xf32> to vector<8x1xf32>
    %90 = vector.broadcast %89 : vector<8x1xf32> to vector<8x8xf32>
    %91 = arith.divf %87, %90 : vector<8x8xf32>
    %cst_37 = arith.constant dense<0.000000e+00> : vector<8x8xf32>
    %92 = tpu.matmul %91, %77, %cst_37 {dimension_numbers = #tpu.dot_dimension_numbers<[1], [0], [0], [1], [0, 0, 1, 1], [], []>} : vector<8x8xf32>, vector<8x8xf32>, vector<8x8xf32> -> vector<8x8xf32>
    %93 = vector.extract_strided_slice %32 {offsets = [16, 0], sizes = [8, 32], strides = [1, 1]} : vector<32x32xf32> to vector<8x32xf32>
    %cst_38 = arith.constant dense<0.000000e+00> : vector<8x32xf32>
    %94 = tpu.matmul %92, %93, %cst_38 {dimension_numbers = #tpu.dot_dimension_numbers<[1], [0], [0], [1], [0, 0, 1, 1], [], []>} : vector<8x8xf32>, vector<8x32xf32>, vector<8x32xf32> -> vector<8x32xf32>
    %95 = arith.addf %74, %94 : vector<8x32xf32>
    %96 = vector.extract_strided_slice %30 {offsets = [0, 24], sizes = [8, 8], strides = [1, 1]} : vector<16x96xf32> to vector<8x8xf32>
    %97 = vector.extract_strided_slice %30 {offsets = [0, 56], sizes = [8, 8], strides = [1, 1]} : vector<16x96xf32> to vector<8x8xf32>
    %98 = vector.extract_strided_slice %30 {offsets = [0, 88], sizes = [8, 8], strides = [1, 1]} : vector<16x96xf32> to vector<8x8xf32>
    %cst_39 = arith.constant dense<0.000000e+00> : vector<8x8xf32>
    %99 = tpu.matmul %96, %97, %cst_39 {dimension_numbers = #tpu.dot_dimension_numbers<[1], [1], [0], [0], [0, 0, 1, 0], [], []>} : vector<8x8xf32>, vector<8x8xf32>, vector<8x8xf32> -> vector<8x8xf32>
    %cst_40 = arith.constant 0.353553385 : f32
    %100 = vector.broadcast %cst_40 : f32 to vector<8x8xf32>
    %101 = arith.mulf %99, %100 : vector<8x8xf32>
    %102 = vector.broadcast %33 : vector<1x8xf32> to vector<8x8xf32>
    %103 = arith.addf %101, %102 : vector<8x8xf32>
    %cst_41 = arith.constant dense<0xFF800000> : vector<8xf32>
    %104 = vector.multi_reduction <maximumf>, %103, %cst_41 [1] : vector<8x8xf32> to vector<8xf32>
    %105 = vector.shape_cast %104 : vector<8xf32> to vector<8x1xf32>
    %106 = vector.broadcast %105 : vector<8x1xf32> to vector<8x8xf32>
    %107 = arith.subf %103, %106 : vector<8x8xf32>
    %108 = math.exp %107 : vector<8x8xf32>
    %cst_42 = arith.constant dense<0.000000e+00> : vector<8xf32>
    %109 = vector.multi_reduction <add>, %108, %cst_42 [1] : vector<8x8xf32> to vector<8xf32>
    %110 = vector.shape_cast %109 : vector<8xf32> to vector<8x1xf32>
    %111 = vector.broadcast %110 : vector<8x1xf32> to vector<8x8xf32>
    %112 = arith.divf %108, %111 : vector<8x8xf32>
    %cst_43 = arith.constant dense<0.000000e+00> : vector<8x8xf32>
    %113 = tpu.matmul %112, %98, %cst_43 {dimension_numbers = #tpu.dot_dimension_numbers<[1], [0], [0], [1], [0, 0, 1, 1], [], []>} : vector<8x8xf32>, vector<8x8xf32>, vector<8x8xf32> -> vector<8x8xf32>
    %114 = vector.extract_strided_slice %32 {offsets = [24, 0], sizes = [8, 32], strides = [1, 1]} : vector<32x32xf32> to vector<8x32xf32>
    %cst_44 = arith.constant dense<0.000000e+00> : vector<8x32xf32>
    %115 = tpu.matmul %113, %114, %cst_44 {dimension_numbers = #tpu.dot_dimension_numbers<[1], [0], [0], [1], [0, 0, 1, 1], [], []>} : vector<8x8xf32>, vector<8x32xf32>, vector<8x32xf32> -> vector<8x32xf32>
    %116 = arith.addf %95, %115 : vector<8x32xf32>
    %117 = vector.extract_strided_slice %23 {offsets = [1, 0], sizes = [1, 8], strides = [1, 1]} : vector<2x8xf32> to vector<1x8xf32>
    %118 = vector.extract_strided_slice %30 {offsets = [8, 0], sizes = [8, 8], strides = [1, 1]} : vector<16x96xf32> to vector<8x8xf32>
    %119 = vector.extract_strided_slice %30 {offsets = [8, 32], sizes = [8, 8], strides = [1, 1]} : vector<16x96xf32> to vector<8x8xf32>
    %120 = vector.extract_strided_slice %30 {offsets = [8, 64], sizes = [8, 8], strides = [1, 1]} : vector<16x96xf32> to vector<8x8xf32>
    %cst_45 = arith.constant dense<0.000000e+00> : vector<8x8xf32>
    %121 = tpu.matmul %118, %119, %cst_45 {dimension_numbers = #tpu.dot_dimension_numbers<[1], [1], [0], [0], [0, 0, 1, 0], [], []>} : vector<8x8xf32>, vector<8x8xf32>, vector<8x8xf32> -> vector<8x8xf32>
    %cst_46 = arith.constant 0.353553385 : f32
    %122 = vector.broadcast %cst_46 : f32 to vector<8x8xf32>
    %123 = arith.mulf %121, %122 : vector<8x8xf32>
    %124 = vector.broadcast %117 : vector<1x8xf32> to vector<8x8xf32>
    %125 = arith.addf %123, %124 : vector<8x8xf32>
    %cst_47 = arith.constant dense<0xFF800000> : vector<8xf32>
    %126 = vector.multi_reduction <maximumf>, %125, %cst_47 [1] : vector<8x8xf32> to vector<8xf32>
    %127 = vector.shape_cast %126 : vector<8xf32> to vector<8x1xf32>
    %128 = vector.broadcast %127 : vector<8x1xf32> to vector<8x8xf32>
    %129 = arith.subf %125, %128 : vector<8x8xf32>
    %130 = math.exp %129 : vector<8x8xf32>
    %cst_48 = arith.constant dense<0.000000e+00> : vector<8xf32>
    %131 = vector.multi_reduction <add>, %130, %cst_48 [1] : vector<8x8xf32> to vector<8xf32>
    %132 = vector.shape_cast %131 : vector<8xf32> to vector<8x1xf32>
    %133 = vector.broadcast %132 : vector<8x1xf32> to vector<8x8xf32>
    %134 = arith.divf %130, %133 : vector<8x8xf32>
    %cst_49 = arith.constant dense<0.000000e+00> : vector<8x8xf32>
    %135 = tpu.matmul %134, %120, %cst_49 {dimension_numbers = #tpu.dot_dimension_numbers<[1], [0], [0], [1], [0, 0, 1, 1], [], []>} : vector<8x8xf32>, vector<8x8xf32>, vector<8x8xf32> -> vector<8x8xf32>
    %136 = vector.extract_strided_slice %32 {offsets = [0, 0], sizes = [8, 32], strides = [1, 1]} : vector<32x32xf32> to vector<8x32xf32>
    %cst_50 = arith.constant dense<0.000000e+00> : vector<8x32xf32>
    %137 = tpu.matmul %135, %136, %cst_50 {dimension_numbers = #tpu.dot_dimension_numbers<[1], [0], [0], [1], [0, 0, 1, 1], [], []>} : vector<8x8xf32>, vector<8x32xf32>, vector<8x32xf32> -> vector<8x32xf32>
    %138 = vector.extract_strided_slice %30 {offsets = [8, 8], sizes = [8, 8], strides = [1, 1]} : vector<16x96xf32> to vector<8x8xf32>
    %139 = vector.extract_strided_slice %30 {offsets = [8, 40], sizes = [8, 8], strides = [1, 1]} : vector<16x96xf32> to vector<8x8xf32>
    %140 = vector.extract_strided_slice %30 {offsets = [8, 72], sizes = [8, 8], strides = [1, 1]} : vector<16x96xf32> to vector<8x8xf32>
    %cst_51 = arith.constant dense<0.000000e+00> : vector<8x8xf32>
    %141 = tpu.matmul %138, %139, %cst_51 {dimension_numbers = #tpu.dot_dimension_numbers<[1], [1], [0], [0], [0, 0, 1, 0], [], []>} : vector<8x8xf32>, vector<8x8xf32>, vector<8x8xf32> -> vector<8x8xf32>
    %cst_52 = arith.constant 0.353553385 : f32
    %142 = vector.broadcast %cst_52 : f32 to vector<8x8xf32>
    %143 = arith.mulf %141, %142 : vector<8x8xf32>
    %144 = vector.broadcast %117 : vector<1x8xf32> to vector<8x8xf32>
    %145 = arith.addf %143, %144 : vector<8x8xf32>
    %cst_53 = arith.constant dense<0xFF800000> : vector<8xf32>
    %146 = vector.multi_reduction <maximumf>, %145, %cst_53 [1] : vector<8x8xf32> to vector<8xf32>
    %147 = vector.shape_cast %146 : vector<8xf32> to vector<8x1xf32>
    %148 = vector.broadcast %147 : vector<8x1xf32> to vector<8x8xf32>
    %149 = arith.subf %145, %148 : vector<8x8xf32>
    %150 = math.exp %149 : vector<8x8xf32>
    %cst_54 = arith.constant dense<0.000000e+00> : vector<8xf32>
    %151 = vector.multi_reduction <add>, %150, %cst_54 [1] : vector<8x8xf32> to vector<8xf32>
    %152 = vector.shape_cast %151 : vector<8xf32> to vector<8x1xf32>
    %153 = vector.broadcast %152 : vector<8x1xf32> to vector<8x8xf32>
    %154 = arith.divf %150, %153 : vector<8x8xf32>
    %cst_55 = arith.constant dense<0.000000e+00> : vector<8x8xf32>
    %155 = tpu.matmul %154, %140, %cst_55 {dimension_numbers = #tpu.dot_dimension_numbers<[1], [0], [0], [1], [0, 0, 1, 1], [], []>} : vector<8x8xf32>, vector<8x8xf32>, vector<8x8xf32> -> vector<8x8xf32>
    %156 = vector.extract_strided_slice %32 {offsets = [8, 0], sizes = [8, 32], strides = [1, 1]} : vector<32x32xf32> to vector<8x32xf32>
    %cst_56 = arith.constant dense<0.000000e+00> : vector<8x32xf32>
    %157 = tpu.matmul %155, %156, %cst_56 {dimension_numbers = #tpu.dot_dimension_numbers<[1], [0], [0], [1], [0, 0, 1, 1], [], []>} : vector<8x8xf32>, vector<8x32xf32>, vector<8x32xf32> -> vector<8x32xf32>
    %158 = arith.addf %137, %157 : vector<8x32xf32>
    %159 = vector.extract_strided_slice %30 {offsets = [8, 16], sizes = [8, 8], strides = [1, 1]} : vector<16x96xf32> to vector<8x8xf32>
    %160 = vector.extract_strided_slice %30 {offsets = [8, 48], sizes = [8, 8], strides = [1, 1]} : vector<16x96xf32> to vector<8x8xf32>
    %161 = vector.extract_strided_slice %30 {offsets = [8, 80], sizes = [8, 8], strides = [1, 1]} : vector<16x96xf32> to vector<8x8xf32>
    %cst_57 = arith.constant dense<0.000000e+00> : vector<8x8xf32>
    %162 = tpu.matmul %159, %160, %cst_57 {dimension_numbers = #tpu.dot_dimension_numbers<[1], [1], [0], [0], [0, 0, 1, 0], [], []>} : vector<8x8xf32>, vector<8x8xf32>, vector<8x8xf32> -> vector<8x8xf32>
    %cst_58 = arith.constant 0.353553385 : f32
    %163 = vector.broadcast %cst_58 : f32 to vector<8x8xf32>
    %164 = arith.mulf %162, %163 : vector<8x8xf32>
    %165 = vector.broadcast %117 : vector<1x8xf32> to vector<8x8xf32>
    %166 = arith.addf %164, %165 : vector<8x8xf32>
    %cst_59 = arith.constant dense<0xFF800000> : vector<8xf32>
    %167 = vector.multi_reduction <maximumf>, %166, %cst_59 [1] : vector<8x8xf32> to vector<8xf32>
    %168 = vector.shape_cast %167 : vector<8xf32> to vector<8x1xf32>
    %169 = vector.broadcast %168 : vector<8x1xf32> to vector<8x8xf32>
    %170 = arith.subf %166, %169 : vector<8x8xf32>
    %171 = math.exp %170 : vector<8x8xf32>
    %cst_60 = arith.constant dense<0.000000e+00> : vector<8xf32>
    %172 = vector.multi_reduction <add>, %171, %cst_60 [1] : vector<8x8xf32> to vector<8xf32>
    %173 = vector.shape_cast %172 : vector<8xf32> to vector<8x1xf32>
    %174 = vector.broadcast %173 : vector<8x1xf32> to vector<8x8xf32>
    %175 = arith.divf %171, %174 : vector<8x8xf32>
    %cst_61 = arith.constant dense<0.000000e+00> : vector<8x8xf32>
    %176 = tpu.matmul %175, %161, %cst_61 {dimension_numbers = #tpu.dot_dimension_numbers<[1], [0], [0], [1], [0, 0, 1, 1], [], []>} : vector<8x8xf32>, vector<8x8xf32>, vector<8x8xf32> -> vector<8x8xf32>
    %177 = vector.extract_strided_slice %32 {offsets = [16, 0], sizes = [8, 32], strides = [1, 1]} : vector<32x32xf32> to vector<8x32xf32>
    %cst_62 = arith.constant dense<0.000000e+00> : vector<8x32xf32>
    %178 = tpu.matmul %176, %177, %cst_62 {dimension_numbers = #tpu.dot_dimension_numbers<[1], [0], [0], [1], [0, 0, 1, 1], [], []>} : vector<8x8xf32>, vector<8x32xf32>, vector<8x32xf32> -> vector<8x32xf32>
    %179 = arith.addf %158, %178 : vector<8x32xf32>
    %180 = vector.extract_strided_slice %30 {offsets = [8, 24], sizes = [8, 8], strides = [1, 1]} : vector<16x96xf32> to vector<8x8xf32>
    %181 = vector.extract_strided_slice %30 {offsets = [8, 56], sizes = [8, 8], strides = [1, 1]} : vector<16x96xf32> to vector<8x8xf32>
    %182 = vector.extract_strided_slice %30 {offsets = [8, 88], sizes = [8, 8], strides = [1, 1]} : vector<16x96xf32> to vector<8x8xf32>
    %cst_63 = arith.constant dense<0.000000e+00> : vector<8x8xf32>
    %183 = tpu.matmul %180, %181, %cst_63 {dimension_numbers = #tpu.dot_dimension_numbers<[1], [1], [0], [0], [0, 0, 1, 0], [], []>} : vector<8x8xf32>, vector<8x8xf32>, vector<8x8xf32> -> vector<8x8xf32>
    %cst_64 = arith.constant 0.353553385 : f32
    %184 = vector.broadcast %cst_64 : f32 to vector<8x8xf32>
    %185 = arith.mulf %183, %184 : vector<8x8xf32>
    %186 = vector.broadcast %117 : vector<1x8xf32> to vector<8x8xf32>
    %187 = arith.addf %185, %186 : vector<8x8xf32>
    %cst_65 = arith.constant dense<0xFF800000> : vector<8xf32>
    %188 = vector.multi_reduction <maximumf>, %187, %cst_65 [1] : vector<8x8xf32> to vector<8xf32>
    %189 = vector.shape_cast %188 : vector<8xf32> to vector<8x1xf32>
    %190 = vector.broadcast %189 : vector<8x1xf32> to vector<8x8xf32>
    %191 = arith.subf %187, %190 : vector<8x8xf32>
    %192 = math.exp %191 : vector<8x8xf32>
    %cst_66 = arith.constant dense<0.000000e+00> : vector<8xf32>
    %193 = vector.multi_reduction <add>, %192, %cst_66 [1] : vector<8x8xf32> to vector<8xf32>
    %194 = vector.shape_cast %193 : vector<8xf32> to vector<8x1xf32>
    %195 = vector.broadcast %194 : vector<8x1xf32> to vector<8x8xf32>
    %196 = arith.divf %192, %195 : vector<8x8xf32>
    %cst_67 = arith.constant dense<0.000000e+00> : vector<8x8xf32>
    %197 = tpu.matmul %196, %182, %cst_67 {dimension_numbers = #tpu.dot_dimension_numbers<[1], [0], [0], [1], [0, 0, 1, 1], [], []>} : vector<8x8xf32>, vector<8x8xf32>, vector<8x8xf32> -> vector<8x8xf32>
    %198 = vector.extract_strided_slice %32 {offsets = [24, 0], sizes = [8, 32], strides = [1, 1]} : vector<32x32xf32> to vector<8x32xf32>
    %cst_68 = arith.constant dense<0.000000e+00> : vector<8x32xf32>
    %199 = tpu.matmul %197, %198, %cst_68 {dimension_numbers = #tpu.dot_dimension_numbers<[1], [0], [0], [1], [0, 0, 1, 1], [], []>} : vector<8x8xf32>, vector<8x32xf32>, vector<8x32xf32> -> vector<8x32xf32>
    %200 = arith.addf %179, %199 : vector<8x32xf32>
    %201 = tpu.concatenate %116, %200 in 0 : vector<8x32xf32>, vector<8x32xf32> -> vector<16x32xf32>
    %c0_69 = arith.constant 0 : index
    %c0_70 = arith.constant 0 : index
    %c0_71 = arith.constant 0 : index
    %202 = vector.load %arg8[%c0_69, %c0_70, %c0_71] : memref<2x1x32xf32, #tpu.memory_space<vmem>>, vector<1x1x32xf32>
    %203 = vector.shape_cast %202 : vector<1x1x32xf32> to vector<1x32xf32>
    %204 = vector.broadcast %203 : vector<1x32xf32> to vector<16x32xf32>
    %205 = arith.addf %201, %204 : vector<16x32xf32>
    %206 = arith.addf %205, %22 : vector<16x32xf32>
    %c0_72 = arith.constant 0 : index
    %c0_73 = arith.constant 0 : index
    %c0_74 = arith.constant 0 : index
    %207 = vector.load %arg9[%c0_72, %c0_73, %c0_74] : memref<2x1x32xf32, #tpu.memory_space<vmem>>, vector<1x1x32xf32>
    %208 = vector.shape_cast %207 : vector<1x1x32xf32> to vector<1x32xf32>
    %c0_75 = arith.constant 0 : index
    %c0_76 = arith.constant 0 : index
    %c0_77 = arith.constant 0 : index
    %209 = vector.load %arg10[%c0_75, %c0_76, %c0_77] : memref<2x1x32xf32, #tpu.memory_space<vmem>>, vector<1x1x32xf32>
    %210 = vector.shape_cast %209 : vector<1x1x32xf32> to vector<1x32xf32>
    %cst_78 = arith.constant dense<0.000000e+00> : vector<16xf32>
    %211 = vector.multi_reduction <add>, %206, %cst_78 [1] : vector<16x32xf32> to vector<16xf32>
    %212 = vector.shape_cast %211 : vector<16xf32> to vector<16x1xf32>
    %cst_79 = arith.constant 3.200000e+01 : f32
    %213 = vector.broadcast %cst_79 : f32 to vector<16x1xf32>
    %214 = arith.divf %212, %213 : vector<16x1xf32>
    %215 = vector.broadcast %214 : vector<16x1xf32> to vector<16x32xf32>
    %216 = arith.subf %206, %215 : vector<16x32xf32>
    %217 = arith.mulf %216, %216 : vector<16x32xf32>
    %cst_80 = arith.constant dense<0.000000e+00> : vector<16xf32>
    %218 = vector.multi_reduction <add>, %217, %cst_80 [1] : vector<16x32xf32> to vector<16xf32>
    %219 = vector.shape_cast %218 : vector<16xf32> to vector<16x1xf32>
    %cst_81 = arith.constant 3.200000e+01 : f32
    %220 = vector.broadcast %cst_81 : f32 to vector<16x1xf32>
    %221 = arith.divf %219, %220 : vector<16x1xf32>
    %cst_82 = arith.constant 9.99999996E-13 : f32
    %222 = vector.broadcast %cst_82 : f32 to vector<16x1xf32>
    %223 = arith.addf %221, %222 : vector<16x1xf32>
    %224 = math.rsqrt %223 : vector<16x1xf32>
    %225 = vector.broadcast %224 : vector<16x1xf32> to vector<16x32xf32>
    %226 = arith.mulf %216, %225 : vector<16x32xf32>
    %227 = vector.broadcast %208 : vector<1x32xf32> to vector<16x32xf32>
    %228 = arith.mulf %226, %227 : vector<16x32xf32>
    %229 = vector.broadcast %210 : vector<1x32xf32> to vector<16x32xf32>
    %230 = arith.addf %228, %229 : vector<16x32xf32>
    %c0_83 = arith.constant 0 : index
    %c0_84 = arith.constant 0 : index
    %c0_85 = arith.constant 0 : index
    %231 = vector.load %arg11[%c0_83, %c0_84, %c0_85] : memref<2x32x64xf32, #tpu.memory_space<vmem>>, vector<1x32x64xf32>
    %232 = vector.shape_cast %231 : vector<1x32x64xf32> to vector<32x64xf32>
    %cst_86 = arith.constant dense<0.000000e+00> : vector<16x64xf32>
    %233 = tpu.matmul %230, %232, %cst_86 {dimension_numbers = #tpu.dot_dimension_numbers<[1], [0], [0], [1], [0, 0, 1, 1], [], []>} : vector<16x32xf32>, vector<32x64xf32>, vector<16x64xf32> -> vector<16x64xf32>
    %c0_87 = arith.constant 0 : index
    %c0_88 = arith.constant 0 : index
    %c0_89 = arith.constant 0 : index
    %234 = vector.load %arg12[%c0_87, %c0_88, %c0_89] : memref<2x1x64xf32, #tpu.memory_space<vmem>>, vector<1x1x64xf32>
    %235 = vector.shape_cast %234 : vector<1x1x64xf32> to vector<1x64xf32>
    %236 = vector.broadcast %235 : vector<1x64xf32> to vector<16x64xf32>
    %237 = arith.addf %233, %236 : vector<16x64xf32>
    %cst_90 = arith.constant 5.000000e-01 : f32
    %238 = vector.broadcast %cst_90 : f32 to vector<16x64xf32>
    %239 = arith.mulf %238, %237 : vector<16x64xf32>
    %cst_91 = arith.constant 4.471500e-02 : f32
    %240 = vector.broadcast %cst_91 : f32 to vector<16x64xf32>
    %241 = arith.mulf %240, %237 : vector<16x64xf32>
    %242 = arith.mulf %241, %237 : vector<16x64xf32>
    %243 = arith.mulf %242, %237 : vector<16x64xf32>
    %244 = arith.addf %237, %243 : vector<16x64xf32>
    %cst_92 = arith.constant 0.797884583 : f32
    %245 = vector.broadcast %cst_92 : f32 to vector<16x64xf32>
    %246 = arith.mulf %245, %244 : vector<16x64xf32>
    %247 = math.tanh %246 : vector<16x64xf32>
    %cst_93 = arith.constant 1.000000e+00 : f32
    %248 = vector.broadcast %cst_93 : f32 to vector<16x64xf32>
    %249 = arith.addf %248, %247 : vector<16x64xf32>
    %250 = arith.mulf %239, %249 : vector<16x64xf32>
    %c0_94 = arith.constant 0 : index
    %c0_95 = arith.constant 0 : index
    %c0_96 = arith.constant 0 : index
    %251 = vector.load %arg13[%c0_94, %c0_95, %c0_96] : memref<2x64x32xf32, #tpu.memory_space<vmem>>, vector<1x64x32xf32>
    %252 = vector.shape_cast %251 : vector<1x64x32xf32> to vector<64x32xf32>
    %cst_97 = arith.constant dense<0.000000e+00> : vector<16x32xf32>
    %253 = tpu.matmul %250, %252, %cst_97 {dimension_numbers = #tpu.dot_dimension_numbers<[1], [0], [0], [1], [0, 0, 1, 1], [], []>} : vector<16x64xf32>, vector<64x32xf32>, vector<16x32xf32> -> vector<16x32xf32>
    %c0_98 = arith.constant 0 : index
    %c0_99 = arith.constant 0 : index
    %c0_100 = arith.constant 0 : index
    %254 = vector.load %arg14[%c0_98, %c0_99, %c0_100] : memref<2x1x32xf32, #tpu.memory_space<vmem>>, vector<1x1x32xf32>
    %255 = vector.shape_cast %254 : vector<1x1x32xf32> to vector<1x32xf32>
    %256 = vector.broadcast %255 : vector<1x32xf32> to vector<16x32xf32>
    %257 = arith.addf %253, %256 : vector<16x32xf32>
    %258 = arith.addf %257, %230 : vector<16x32xf32>
    %c0_101 = arith.constant 0 : index
    %c0_102 = arith.constant 0 : index
    %c0_103 = arith.constant 0 : index
    %259 = vector.load %arg15[%c0_101, %c0_102, %c0_103] : memref<2x1x32xf32, #tpu.memory_space<vmem>>, vector<1x1x32xf32>
    %260 = vector.shape_cast %259 : vector<1x1x32xf32> to vector<1x32xf32>
    %c0_104 = arith.constant 0 : index
    %c0_105 = arith.constant 0 : index
    %c0_106 = arith.constant 0 : index
    %261 = vector.load %arg16[%c0_104, %c0_105, %c0_106] : memref<2x1x32xf32, #tpu.memory_space<vmem>>, vector<1x1x32xf32>
    %262 = vector.shape_cast %261 : vector<1x1x32xf32> to vector<1x32xf32>
    %cst_107 = arith.constant dense<0.000000e+00> : vector<16xf32>
    %263 = vector.multi_reduction <add>, %258, %cst_107 [1] : vector<16x32xf32> to vector<16xf32>
    %264 = vector.shape_cast %263 : vector<16xf32> to vector<16x1xf32>
    %cst_108 = arith.constant 3.200000e+01 : f32
    %265 = vector.broadcast %cst_108 : f32 to vector<16x1xf32>
    %266 = arith.divf %264, %265 : vector<16x1xf32>
    %267 = vector.broadcast %266 : vector<16x1xf32> to vector<16x32xf32>
    %268 = arith.subf %258, %267 : vector<16x32xf32>
    %269 = arith.mulf %268, %268 : vector<16x32xf32>
    %cst_109 = arith.constant dense<0.000000e+00> : vector<16xf32>
    %270 = vector.multi_reduction <add>, %269, %cst_109 [1] : vector<16x32xf32> to vector<16xf32>
    %271 = vector.shape_cast %270 : vector<16xf32> to vector<16x1xf32>
    %cst_110 = arith.constant 3.200000e+01 : f32
    %272 = vector.broadcast %cst_110 : f32 to vector<16x1xf32>
    %273 = arith.divf %271, %272 : vector<16x1xf32>
    %cst_111 = arith.constant 9.99999996E-13 : f32
    %274 = vector.broadcast %cst_111 : f32 to vector<16x1xf32>
    %275 = arith.addf %273, %274 : vector<16x1xf32>
    %276 = math.rsqrt %275 : vector<16x1xf32>
    %277 = vector.broadcast %276 : vector<16x1xf32> to vector<16x32xf32>
    %278 = arith.mulf %268, %277 : vector<16x32xf32>
    %279 = vector.broadcast %260 : vector<1x32xf32> to vector<16x32xf32>
    %280 = arith.mulf %278, %279 : vector<16x32xf32>
    %281 = vector.broadcast %262 : vector<1x32xf32> to vector<16x32xf32>
    %282 = arith.addf %280, %281 : vector<16x32xf32>
    %c1 = arith.constant 1 : index
    %c0_112 = arith.constant 0 : index
    %c0_113 = arith.constant 0 : index
    %283 = vector.load %arg5[%c1, %c0_112, %c0_113] : memref<2x32x96xf32, #tpu.memory_space<vmem>>, vector<1x32x96xf32>
    %284 = vector.shape_cast %283 : vector<1x32x96xf32> to vector<32x96xf32>
    %cst_114 = arith.constant dense<0.000000e+00> : vector<16x96xf32>
    %285 = tpu.matmul %282, %284, %cst_114 {dimension_numbers = #tpu.dot_dimension_numbers<[1], [0], [0], [1], [0, 0, 1, 1], [], []>} : vector<16x32xf32>, vector<32x96xf32>, vector<16x96xf32> -> vector<16x96xf32>
    %c1_115 = arith.constant 1 : index
    %c0_116 = arith.constant 0 : index
    %c0_117 = arith.constant 0 : index
    %286 = vector.load %arg6[%c1_115, %c0_116, %c0_117] : memref<2x1x96xf32, #tpu.memory_space<vmem>>, vector<1x1x96xf32>
    %287 = vector.shape_cast %286 : vector<1x1x96xf32> to vector<1x96xf32>
    %288 = vector.broadcast %287 : vector<1x96xf32> to vector<16x96xf32>
    %289 = arith.addf %285, %288 : vector<16x96xf32>
    %c1_118 = arith.constant 1 : index
    %c0_119 = arith.constant 0 : index
    %c0_120 = arith.constant 0 : index
    %290 = vector.load %arg7[%c1_118, %c0_119, %c0_120] : memref<2x32x32xf32, #tpu.memory_space<vmem>>, vector<1x32x32xf32>
    %291 = vector.shape_cast %290 : vector<1x32x32xf32> to vector<32x32xf32>
    %292 = vector.extract_strided_slice %23 {offsets = [0, 0], sizes = [1, 8], strides = [1, 1]} : vector<2x8xf32> to vector<1x8xf32>
    %293 = vector.extract_strided_slice %289 {offsets = [0, 0], sizes = [8, 8], strides = [1, 1]} : vector<16x96xf32> to vector<8x8xf32>
    %294 = vector.extract_strided_slice %289 {offsets = [0, 32], sizes = [8, 8], strides = [1, 1]} : vector<16x96xf32> to vector<8x8xf32>
    %295 = vector.extract_strided_slice %289 {offsets = [0, 64], sizes = [8, 8], strides = [1, 1]} : vector<16x96xf32> to vector<8x8xf32>
    %cst_121 = arith.constant dense<0.000000e+00> : vector<8x8xf32>
    %296 = tpu.matmul %293, %294, %cst_121 {dimension_numbers = #tpu.dot_dimension_numbers<[1], [1], [0], [0], [0, 0, 1, 0], [], []>} : vector<8x8xf32>, vector<8x8xf32>, vector<8x8xf32> -> vector<8x8xf32>
    %cst_122 = arith.constant 0.353553385 : f32
    %297 = vector.broadcast %cst_122 : f32 to vector<8x8xf32>
    %298 = arith.mulf %296, %297 : vector<8x8xf32>
    %299 = vector.broadcast %292 : vector<1x8xf32> to vector<8x8xf32>
    %300 = arith.addf %298, %299 : vector<8x8xf32>
    %cst_123 = arith.constant dense<0xFF800000> : vector<8xf32>
    %301 = vector.multi_reduction <maximumf>, %300, %cst_123 [1] : vector<8x8xf32> to vector<8xf32>
    %302 = vector.shape_cast %301 : vector<8xf32> to vector<8x1xf32>
    %303 = vector.broadcast %302 : vector<8x1xf32> to vector<8x8xf32>
    %304 = arith.subf %300, %303 : vector<8x8xf32>
    %305 = math.exp %304 : vector<8x8xf32>
    %cst_124 = arith.constant dense<0.000000e+00> : vector<8xf32>
    %306 = vector.multi_reduction <add>, %305, %cst_124 [1] : vector<8x8xf32> to vector<8xf32>
    %307 = vector.shape_cast %306 : vector<8xf32> to vector<8x1xf32>
    %308 = vector.broadcast %307 : vector<8x1xf32> to vector<8x8xf32>
    %309 = arith.divf %305, %308 : vector<8x8xf32>
    %cst_125 = arith.constant dense<0.000000e+00> : vector<8x8xf32>
    %310 = tpu.matmul %309, %295, %cst_125 {dimension_numbers = #tpu.dot_dimension_numbers<[1], [0], [0], [1], [0, 0, 1, 1], [], []>} : vector<8x8xf32>, vector<8x8xf32>, vector<8x8xf32> -> vector<8x8xf32>
    %311 = vector.extract_strided_slice %291 {offsets = [0, 0], sizes = [8, 32], strides = [1, 1]} : vector<32x32xf32> to vector<8x32xf32>
    %cst_126 = arith.constant dense<0.000000e+00> : vector<8x32xf32>
    %312 = tpu.matmul %310, %311, %cst_126 {dimension_numbers = #tpu.dot_dimension_numbers<[1], [0], [0], [1], [0, 0, 1, 1], [], []>} : vector<8x8xf32>, vector<8x32xf32>, vector<8x32xf32> -> vector<8x32xf32>
    %313 = vector.extract_strided_slice %289 {offsets = [0, 8], sizes = [8, 8], strides = [1, 1]} : vector<16x96xf32> to vector<8x8xf32>
    %314 = vector.extract_strided_slice %289 {offsets = [0, 40], sizes = [8, 8], strides = [1, 1]} : vector<16x96xf32> to vector<8x8xf32>
    %315 = vector.extract_strided_slice %289 {offsets = [0, 72], sizes = [8, 8], strides = [1, 1]} : vector<16x96xf32> to vector<8x8xf32>
    %cst_127 = arith.constant dense<0.000000e+00> : vector<8x8xf32>
    %316 = tpu.matmul %313, %314, %cst_127 {dimension_numbers = #tpu.dot_dimension_numbers<[1], [1], [0], [0], [0, 0, 1, 0], [], []>} : vector<8x8xf32>, vector<8x8xf32>, vector<8x8xf32> -> vector<8x8xf32>
    %cst_128 = arith.constant 0.353553385 : f32
    %317 = vector.broadcast %cst_128 : f32 to vector<8x8xf32>
    %318 = arith.mulf %316, %317 : vector<8x8xf32>
    %319 = vector.broadcast %292 : vector<1x8xf32> to vector<8x8xf32>
    %320 = arith.addf %318, %319 : vector<8x8xf32>
    %cst_129 = arith.constant dense<0xFF800000> : vector<8xf32>
    %321 = vector.multi_reduction <maximumf>, %320, %cst_129 [1] : vector<8x8xf32> to vector<8xf32>
    %322 = vector.shape_cast %321 : vector<8xf32> to vector<8x1xf32>
    %323 = vector.broadcast %322 : vector<8x1xf32> to vector<8x8xf32>
    %324 = arith.subf %320, %323 : vector<8x8xf32>
    %325 = math.exp %324 : vector<8x8xf32>
    %cst_130 = arith.constant dense<0.000000e+00> : vector<8xf32>
    %326 = vector.multi_reduction <add>, %325, %cst_130 [1] : vector<8x8xf32> to vector<8xf32>
    %327 = vector.shape_cast %326 : vector<8xf32> to vector<8x1xf32>
    %328 = vector.broadcast %327 : vector<8x1xf32> to vector<8x8xf32>
    %329 = arith.divf %325, %328 : vector<8x8xf32>
    %cst_131 = arith.constant dense<0.000000e+00> : vector<8x8xf32>
    %330 = tpu.matmul %329, %315, %cst_131 {dimension_numbers = #tpu.dot_dimension_numbers<[1], [0], [0], [1], [0, 0, 1, 1], [], []>} : vector<8x8xf32>, vector<8x8xf32>, vector<8x8xf32> -> vector<8x8xf32>
    %331 = vector.extract_strided_slice %291 {offsets = [8, 0], sizes = [8, 32], strides = [1, 1]} : vector<32x32xf32> to vector<8x32xf32>
    %cst_132 = arith.constant dense<0.000000e+00> : vector<8x32xf32>
    %332 = tpu.matmul %330, %331, %cst_132 {dimension_numbers = #tpu.dot_dimension_numbers<[1], [0], [0], [1], [0, 0, 1, 1], [], []>} : vector<8x8xf32>, vector<8x32xf32>, vector<8x32xf32> -> vector<8x32xf32>
    %333 = arith.addf %312, %332 : vector<8x32xf32>
    %334 = vector.extract_strided_slice %289 {offsets = [0, 16], sizes = [8, 8], strides = [1, 1]} : vector<16x96xf32> to vector<8x8xf32>
    %335 = vector.extract_strided_slice %289 {offsets = [0, 48], sizes = [8, 8], strides = [1, 1]} : vector<16x96xf32> to vector<8x8xf32>
    %336 = vector.extract_strided_slice %289 {offsets = [0, 80], sizes = [8, 8], strides = [1, 1]} : vector<16x96xf32> to vector<8x8xf32>
    %cst_133 = arith.constant dense<0.000000e+00> : vector<8x8xf32>
    %337 = tpu.matmul %334, %335, %cst_133 {dimension_numbers = #tpu.dot_dimension_numbers<[1], [1], [0], [0], [0, 0, 1, 0], [], []>} : vector<8x8xf32>, vector<8x8xf32>, vector<8x8xf32> -> vector<8x8xf32>
    %cst_134 = arith.constant 0.353553385 : f32
    %338 = vector.broadcast %cst_134 : f32 to vector<8x8xf32>
    %339 = arith.mulf %337, %338 : vector<8x8xf32>
    %340 = vector.broadcast %292 : vector<1x8xf32> to vector<8x8xf32>
    %341 = arith.addf %339, %340 : vector<8x8xf32>
    %cst_135 = arith.constant dense<0xFF800000> : vector<8xf32>
    %342 = vector.multi_reduction <maximumf>, %341, %cst_135 [1] : vector<8x8xf32> to vector<8xf32>
    %343 = vector.shape_cast %342 : vector<8xf32> to vector<8x1xf32>
    %344 = vector.broadcast %343 : vector<8x1xf32> to vector<8x8xf32>
    %345 = arith.subf %341, %344 : vector<8x8xf32>
    %346 = math.exp %345 : vector<8x8xf32>
    %cst_136 = arith.constant dense<0.000000e+00> : vector<8xf32>
    %347 = vector.multi_reduction <add>, %346, %cst_136 [1] : vector<8x8xf32> to vector<8xf32>
    %348 = vector.shape_cast %347 : vector<8xf32> to vector<8x1xf32>
    %349 = vector.broadcast %348 : vector<8x1xf32> to vector<8x8xf32>
    %350 = arith.divf %346, %349 : vector<8x8xf32>
    %cst_137 = arith.constant dense<0.000000e+00> : vector<8x8xf32>
    %351 = tpu.matmul %350, %336, %cst_137 {dimension_numbers = #tpu.dot_dimension_numbers<[1], [0], [0], [1], [0, 0, 1, 1], [], []>} : vector<8x8xf32>, vector<8x8xf32>, vector<8x8xf32> -> vector<8x8xf32>
    %352 = vector.extract_strided_slice %291 {offsets = [16, 0], sizes = [8, 32], strides = [1, 1]} : vector<32x32xf32> to vector<8x32xf32>
    %cst_138 = arith.constant dense<0.000000e+00> : vector<8x32xf32>
    %353 = tpu.matmul %351, %352, %cst_138 {dimension_numbers = #tpu.dot_dimension_numbers<[1], [0], [0], [1], [0, 0, 1, 1], [], []>} : vector<8x8xf32>, vector<8x32xf32>, vector<8x32xf32> -> vector<8x32xf32>
    %354 = arith.addf %333, %353 : vector<8x32xf32>
    %355 = vector.extract_strided_slice %289 {offsets = [0, 24], sizes = [8, 8], strides = [1, 1]} : vector<16x96xf32> to vector<8x8xf32>
    %356 = vector.extract_strided_slice %289 {offsets = [0, 56], sizes = [8, 8], strides = [1, 1]} : vector<16x96xf32> to vector<8x8xf32>
    %357 = vector.extract_strided_slice %289 {offsets = [0, 88], sizes = [8, 8], strides = [1, 1]} : vector<16x96xf32> to vector<8x8xf32>
    %cst_139 = arith.constant dense<0.000000e+00> : vector<8x8xf32>
    %358 = tpu.matmul %355, %356, %cst_139 {dimension_numbers = #tpu.dot_dimension_numbers<[1], [1], [0], [0], [0, 0, 1, 0], [], []>} : vector<8x8xf32>, vector<8x8xf32>, vector<8x8xf32> -> vector<8x8xf32>
    %cst_140 = arith.constant 0.353553385 : f32
    %359 = vector.broadcast %cst_140 : f32 to vector<8x8xf32>
    %360 = arith.mulf %358, %359 : vector<8x8xf32>
    %361 = vector.broadcast %292 : vector<1x8xf32> to vector<8x8xf32>
    %362 = arith.addf %360, %361 : vector<8x8xf32>
    %cst_141 = arith.constant dense<0xFF800000> : vector<8xf32>
    %363 = vector.multi_reduction <maximumf>, %362, %cst_141 [1] : vector<8x8xf32> to vector<8xf32>
    %364 = vector.shape_cast %363 : vector<8xf32> to vector<8x1xf32>
    %365 = vector.broadcast %364 : vector<8x1xf32> to vector<8x8xf32>
    %366 = arith.subf %362, %365 : vector<8x8xf32>
    %367 = math.exp %366 : vector<8x8xf32>
    %cst_142 = arith.constant dense<0.000000e+00> : vector<8xf32>
    %368 = vector.multi_reduction <add>, %367, %cst_142 [1] : vector<8x8xf32> to vector<8xf32>
    %369 = vector.shape_cast %368 : vector<8xf32> to vector<8x1xf32>
    %370 = vector.broadcast %369 : vector<8x1xf32> to vector<8x8xf32>
    %371 = arith.divf %367, %370 : vector<8x8xf32>
    %cst_143 = arith.constant dense<0.000000e+00> : vector<8x8xf32>
    %372 = tpu.matmul %371, %357, %cst_143 {dimension_numbers = #tpu.dot_dimension_numbers<[1], [0], [0], [1], [0, 0, 1, 1], [], []>} : vector<8x8xf32>, vector<8x8xf32>, vector<8x8xf32> -> vector<8x8xf32>
    %373 = vector.extract_strided_slice %291 {offsets = [24, 0], sizes = [8, 32], strides = [1, 1]} : vector<32x32xf32> to vector<8x32xf32>
    %cst_144 = arith.constant dense<0.000000e+00> : vector<8x32xf32>
    %374 = tpu.matmul %372, %373, %cst_144 {dimension_numbers = #tpu.dot_dimension_numbers<[1], [0], [0], [1], [0, 0, 1, 1], [], []>} : vector<8x8xf32>, vector<8x32xf32>, vector<8x32xf32> -> vector<8x32xf32>
    %375 = arith.addf %354, %374 : vector<8x32xf32>
    %376 = vector.extract_strided_slice %23 {offsets = [1, 0], sizes = [1, 8], strides = [1, 1]} : vector<2x8xf32> to vector<1x8xf32>
    %377 = vector.extract_strided_slice %289 {offsets = [8, 0], sizes = [8, 8], strides = [1, 1]} : vector<16x96xf32> to vector<8x8xf32>
    %378 = vector.extract_strided_slice %289 {offsets = [8, 32], sizes = [8, 8], strides = [1, 1]} : vector<16x96xf32> to vector<8x8xf32>
    %379 = vector.extract_strided_slice %289 {offsets = [8, 64], sizes = [8, 8], strides = [1, 1]} : vector<16x96xf32> to vector<8x8xf32>
    %cst_145 = arith.constant dense<0.000000e+00> : vector<8x8xf32>
    %380 = tpu.matmul %377, %378, %cst_145 {dimension_numbers = #tpu.dot_dimension_numbers<[1], [1], [0], [0], [0, 0, 1, 0], [], []>} : vector<8x8xf32>, vector<8x8xf32>, vector<8x8xf32> -> vector<8x8xf32>
    %cst_146 = arith.constant 0.353553385 : f32
    %381 = vector.broadcast %cst_146 : f32 to vector<8x8xf32>
    %382 = arith.mulf %380, %381 : vector<8x8xf32>
    %383 = vector.broadcast %376 : vector<1x8xf32> to vector<8x8xf32>
    %384 = arith.addf %382, %383 : vector<8x8xf32>
    %cst_147 = arith.constant dense<0xFF800000> : vector<8xf32>
    %385 = vector.multi_reduction <maximumf>, %384, %cst_147 [1] : vector<8x8xf32> to vector<8xf32>
    %386 = vector.shape_cast %385 : vector<8xf32> to vector<8x1xf32>
    %387 = vector.broadcast %386 : vector<8x1xf32> to vector<8x8xf32>
    %388 = arith.subf %384, %387 : vector<8x8xf32>
    %389 = math.exp %388 : vector<8x8xf32>
    %cst_148 = arith.constant dense<0.000000e+00> : vector<8xf32>
    %390 = vector.multi_reduction <add>, %389, %cst_148 [1] : vector<8x8xf32> to vector<8xf32>
    %391 = vector.shape_cast %390 : vector<8xf32> to vector<8x1xf32>
    %392 = vector.broadcast %391 : vector<8x1xf32> to vector<8x8xf32>
    %393 = arith.divf %389, %392 : vector<8x8xf32>
    %cst_149 = arith.constant dense<0.000000e+00> : vector<8x8xf32>
    %394 = tpu.matmul %393, %379, %cst_149 {dimension_numbers = #tpu.dot_dimension_numbers<[1], [0], [0], [1], [0, 0, 1, 1], [], []>} : vector<8x8xf32>, vector<8x8xf32>, vector<8x8xf32> -> vector<8x8xf32>
    %395 = vector.extract_strided_slice %291 {offsets = [0, 0], sizes = [8, 32], strides = [1, 1]} : vector<32x32xf32> to vector<8x32xf32>
    %cst_150 = arith.constant dense<0.000000e+00> : vector<8x32xf32>
    %396 = tpu.matmul %394, %395, %cst_150 {dimension_numbers = #tpu.dot_dimension_numbers<[1], [0], [0], [1], [0, 0, 1, 1], [], []>} : vector<8x8xf32>, vector<8x32xf32>, vector<8x32xf32> -> vector<8x32xf32>
    %397 = vector.extract_strided_slice %289 {offsets = [8, 8], sizes = [8, 8], strides = [1, 1]} : vector<16x96xf32> to vector<8x8xf32>
    %398 = vector.extract_strided_slice %289 {offsets = [8, 40], sizes = [8, 8], strides = [1, 1]} : vector<16x96xf32> to vector<8x8xf32>
    %399 = vector.extract_strided_slice %289 {offsets = [8, 72], sizes = [8, 8], strides = [1, 1]} : vector<16x96xf32> to vector<8x8xf32>
    %cst_151 = arith.constant dense<0.000000e+00> : vector<8x8xf32>
    %400 = tpu.matmul %397, %398, %cst_151 {dimension_numbers = #tpu.dot_dimension_numbers<[1], [1], [0], [0], [0, 0, 1, 0], [], []>} : vector<8x8xf32>, vector<8x8xf32>, vector<8x8xf32> -> vector<8x8xf32>
    %cst_152 = arith.constant 0.353553385 : f32
    %401 = vector.broadcast %cst_152 : f32 to vector<8x8xf32>
    %402 = arith.mulf %400, %401 : vector<8x8xf32>
    %403 = vector.broadcast %376 : vector<1x8xf32> to vector<8x8xf32>
    %404 = arith.addf %402, %403 : vector<8x8xf32>
    %cst_153 = arith.constant dense<0xFF800000> : vector<8xf32>
    %405 = vector.multi_reduction <maximumf>, %404, %cst_153 [1] : vector<8x8xf32> to vector<8xf32>
    %406 = vector.shape_cast %405 : vector<8xf32> to vector<8x1xf32>
    %407 = vector.broadcast %406 : vector<8x1xf32> to vector<8x8xf32>
    %408 = arith.subf %404, %407 : vector<8x8xf32>
    %409 = math.exp %408 : vector<8x8xf32>
    %cst_154 = arith.constant dense<0.000000e+00> : vector<8xf32>
    %410 = vector.multi_reduction <add>, %409, %cst_154 [1] : vector<8x8xf32> to vector<8xf32>
    %411 = vector.shape_cast %410 : vector<8xf32> to vector<8x1xf32>
    %412 = vector.broadcast %411 : vector<8x1xf32> to vector<8x8xf32>
    %413 = arith.divf %409, %412 : vector<8x8xf32>
    %cst_155 = arith.constant dense<0.000000e+00> : vector<8x8xf32>
    %414 = tpu.matmul %413, %399, %cst_155 {dimension_numbers = #tpu.dot_dimension_numbers<[1], [0], [0], [1], [0, 0, 1, 1], [], []>} : vector<8x8xf32>, vector<8x8xf32>, vector<8x8xf32> -> vector<8x8xf32>
    %415 = vector.extract_strided_slice %291 {offsets = [8, 0], sizes = [8, 32], strides = [1, 1]} : vector<32x32xf32> to vector<8x32xf32>
    %cst_156 = arith.constant dense<0.000000e+00> : vector<8x32xf32>
    %416 = tpu.matmul %414, %415, %cst_156 {dimension_numbers = #tpu.dot_dimension_numbers<[1], [0], [0], [1], [0, 0, 1, 1], [], []>} : vector<8x8xf32>, vector<8x32xf32>, vector<8x32xf32> -> vector<8x32xf32>
    %417 = arith.addf %396, %416 : vector<8x32xf32>
    %418 = vector.extract_strided_slice %289 {offsets = [8, 16], sizes = [8, 8], strides = [1, 1]} : vector<16x96xf32> to vector<8x8xf32>
    %419 = vector.extract_strided_slice %289 {offsets = [8, 48], sizes = [8, 8], strides = [1, 1]} : vector<16x96xf32> to vector<8x8xf32>
    %420 = vector.extract_strided_slice %289 {offsets = [8, 80], sizes = [8, 8], strides = [1, 1]} : vector<16x96xf32> to vector<8x8xf32>
    %cst_157 = arith.constant dense<0.000000e+00> : vector<8x8xf32>
    %421 = tpu.matmul %418, %419, %cst_157 {dimension_numbers = #tpu.dot_dimension_numbers<[1], [1], [0], [0], [0, 0, 1, 0], [], []>} : vector<8x8xf32>, vector<8x8xf32>, vector<8x8xf32> -> vector<8x8xf32>
    %cst_158 = arith.constant 0.353553385 : f32
    %422 = vector.broadcast %cst_158 : f32 to vector<8x8xf32>
    %423 = arith.mulf %421, %422 : vector<8x8xf32>
    %424 = vector.broadcast %376 : vector<1x8xf32> to vector<8x8xf32>
    %425 = arith.addf %423, %424 : vector<8x8xf32>
    %cst_159 = arith.constant dense<0xFF800000> : vector<8xf32>
    %426 = vector.multi_reduction <maximumf>, %425, %cst_159 [1] : vector<8x8xf32> to vector<8xf32>
    %427 = vector.shape_cast %426 : vector<8xf32> to vector<8x1xf32>
    %428 = vector.broadcast %427 : vector<8x1xf32> to vector<8x8xf32>
    %429 = arith.subf %425, %428 : vector<8x8xf32>
    %430 = math.exp %429 : vector<8x8xf32>
    %cst_160 = arith.constant dense<0.000000e+00> : vector<8xf32>
    %431 = vector.multi_reduction <add>, %430, %cst_160 [1] : vector<8x8xf32> to vector<8xf32>
    %432 = vector.shape_cast %431 : vector<8xf32> to vector<8x1xf32>
    %433 = vector.broadcast %432 : vector<8x1xf32> to vector<8x8xf32>
    %434 = arith.divf %430, %433 : vector<8x8xf32>
    %cst_161 = arith.constant dense<0.000000e+00> : vector<8x8xf32>
    %435 = tpu.matmul %434, %420, %cst_161 {dimension_numbers = #tpu.dot_dimension_numbers<[1], [0], [0], [1], [0, 0, 1, 1], [], []>} : vector<8x8xf32>, vector<8x8xf32>, vector<8x8xf32> -> vector<8x8xf32>
    %436 = vector.extract_strided_slice %291 {offsets = [16, 0], sizes = [8, 32], strides = [1, 1]} : vector<32x32xf32> to vector<8x32xf32>
    %cst_162 = arith.constant dense<0.000000e+00> : vector<8x32xf32>
    %437 = tpu.matmul %435, %436, %cst_162 {dimension_numbers = #tpu.dot_dimension_numbers<[1], [0], [0], [1], [0, 0, 1, 1], [], []>} : vector<8x8xf32>, vector<8x32xf32>, vector<8x32xf32> -> vector<8x32xf32>
    %438 = arith.addf %417, %437 : vector<8x32xf32>
    %439 = vector.extract_strided_slice %289 {offsets = [8, 24], sizes = [8, 8], strides = [1, 1]} : vector<16x96xf32> to vector<8x8xf32>
    %440 = vector.extract_strided_slice %289 {offsets = [8, 56], sizes = [8, 8], strides = [1, 1]} : vector<16x96xf32> to vector<8x8xf32>
    %441 = vector.extract_strided_slice %289 {offsets = [8, 88], sizes = [8, 8], strides = [1, 1]} : vector<16x96xf32> to vector<8x8xf32>
    %cst_163 = arith.constant dense<0.000000e+00> : vector<8x8xf32>
    %442 = tpu.matmul %439, %440, %cst_163 {dimension_numbers = #tpu.dot_dimension_numbers<[1], [1], [0], [0], [0, 0, 1, 0], [], []>} : vector<8x8xf32>, vector<8x8xf32>, vector<8x8xf32> -> vector<8x8xf32>
    %cst_164 = arith.constant 0.353553385 : f32
    %443 = vector.broadcast %cst_164 : f32 to vector<8x8xf32>
    %444 = arith.mulf %442, %443 : vector<8x8xf32>
    %445 = vector.broadcast %376 : vector<1x8xf32> to vector<8x8xf32>
    %446 = arith.addf %444, %445 : vector<8x8xf32>
    %cst_165 = arith.constant dense<0xFF800000> : vector<8xf32>
    %447 = vector.multi_reduction <maximumf>, %446, %cst_165 [1] : vector<8x8xf32> to vector<8xf32>
    %448 = vector.shape_cast %447 : vector<8xf32> to vector<8x1xf32>
    %449 = vector.broadcast %448 : vector<8x1xf32> to vector<8x8xf32>
    %450 = arith.subf %446, %449 : vector<8x8xf32>
    %451 = math.exp %450 : vector<8x8xf32>
    %cst_166 = arith.constant dense<0.000000e+00> : vector<8xf32>
    %452 = vector.multi_reduction <add>, %451, %cst_166 [1] : vector<8x8xf32> to vector<8xf32>
    %453 = vector.shape_cast %452 : vector<8xf32> to vector<8x1xf32>
    %454 = vector.broadcast %453 : vector<8x1xf32> to vector<8x8xf32>
    %455 = arith.divf %451, %454 : vector<8x8xf32>
    %cst_167 = arith.constant dense<0.000000e+00> : vector<8x8xf32>
    %456 = tpu.matmul %455, %441, %cst_167 {dimension_numbers = #tpu.dot_dimension_numbers<[1], [0], [0], [1], [0, 0, 1, 1], [], []>} : vector<8x8xf32>, vector<8x8xf32>, vector<8x8xf32> -> vector<8x8xf32>
    %457 = vector.extract_strided_slice %291 {offsets = [24, 0], sizes = [8, 32], strides = [1, 1]} : vector<32x32xf32> to vector<8x32xf32>
    %cst_168 = arith.constant dense<0.000000e+00> : vector<8x32xf32>
    %458 = tpu.matmul %456, %457, %cst_168 {dimension_numbers = #tpu.dot_dimension_numbers<[1], [0], [0], [1], [0, 0, 1, 1], [], []>} : vector<8x8xf32>, vector<8x32xf32>, vector<8x32xf32> -> vector<8x32xf32>
    %459 = arith.addf %438, %458 : vector<8x32xf32>
    %460 = tpu.concatenate %375, %459 in 0 : vector<8x32xf32>, vector<8x32xf32> -> vector<16x32xf32>
    %c1_169 = arith.constant 1 : index
    %c0_170 = arith.constant 0 : index
    %c0_171 = arith.constant 0 : index
    %461 = vector.load %arg8[%c1_169, %c0_170, %c0_171] : memref<2x1x32xf32, #tpu.memory_space<vmem>>, vector<1x1x32xf32>
    %462 = vector.shape_cast %461 : vector<1x1x32xf32> to vector<1x32xf32>
    %463 = vector.broadcast %462 : vector<1x32xf32> to vector<16x32xf32>
    %464 = arith.addf %460, %463 : vector<16x32xf32>
    %465 = arith.addf %464, %282 : vector<16x32xf32>
    %c1_172 = arith.constant 1 : index
    %c0_173 = arith.constant 0 : index
    %c0_174 = arith.constant 0 : index
    %466 = vector.load %arg9[%c1_172, %c0_173, %c0_174] : memref<2x1x32xf32, #tpu.memory_space<vmem>>, vector<1x1x32xf32>
    %467 = vector.shape_cast %466 : vector<1x1x32xf32> to vector<1x32xf32>
    %c1_175 = arith.constant 1 : index
    %c0_176 = arith.constant 0 : index
    %c0_177 = arith.constant 0 : index
    %468 = vector.load %arg10[%c1_175, %c0_176, %c0_177] : memref<2x1x32xf32, #tpu.memory_space<vmem>>, vector<1x1x32xf32>
    %469 = vector.shape_cast %468 : vector<1x1x32xf32> to vector<1x32xf32>
    %cst_178 = arith.constant dense<0.000000e+00> : vector<16xf32>
    %470 = vector.multi_reduction <add>, %465, %cst_178 [1] : vector<16x32xf32> to vector<16xf32>
    %471 = vector.shape_cast %470 : vector<16xf32> to vector<16x1xf32>
    %cst_179 = arith.constant 3.200000e+01 : f32
    %472 = vector.broadcast %cst_179 : f32 to vector<16x1xf32>
    %473 = arith.divf %471, %472 : vector<16x1xf32>
    %474 = vector.broadcast %473 : vector<16x1xf32> to vector<16x32xf32>
    %475 = arith.subf %465, %474 : vector<16x32xf32>
    %476 = arith.mulf %475, %475 : vector<16x32xf32>
    %cst_180 = arith.constant dense<0.000000e+00> : vector<16xf32>
    %477 = vector.multi_reduction <add>, %476, %cst_180 [1] : vector<16x32xf32> to vector<16xf32>
    %478 = vector.shape_cast %477 : vector<16xf32> to vector<16x1xf32>
    %cst_181 = arith.constant 3.200000e+01 : f32
    %479 = vector.broadcast %cst_181 : f32 to vector<16x1xf32>
    %480 = arith.divf %478, %479 : vector<16x1xf32>
    %cst_182 = arith.constant 9.99999996E-13 : f32
    %481 = vector.broadcast %cst_182 : f32 to vector<16x1xf32>
    %482 = arith.addf %480, %481 : vector<16x1xf32>
    %483 = math.rsqrt %482 : vector<16x1xf32>
    %484 = vector.broadcast %483 : vector<16x1xf32> to vector<16x32xf32>
    %485 = arith.mulf %475, %484 : vector<16x32xf32>
    %486 = vector.broadcast %467 : vector<1x32xf32> to vector<16x32xf32>
    %487 = arith.mulf %485, %486 : vector<16x32xf32>
    %488 = vector.broadcast %469 : vector<1x32xf32> to vector<16x32xf32>
    %489 = arith.addf %487, %488 : vector<16x32xf32>
    %c1_183 = arith.constant 1 : index
    %c0_184 = arith.constant 0 : index
    %c0_185 = arith.constant 0 : index
    %490 = vector.load %arg11[%c1_183, %c0_184, %c0_185] : memref<2x32x64xf32, #tpu.memory_space<vmem>>, vector<1x32x64xf32>
    %491 = vector.shape_cast %490 : vector<1x32x64xf32> to vector<32x64xf32>
    %cst_186 = arith.constant dense<0.000000e+00> : vector<16x64xf32>
    %492 = tpu.matmul %489, %491, %cst_186 {dimension_numbers = #tpu.dot_dimension_numbers<[1], [0], [0], [1], [0, 0, 1, 1], [], []>} : vector<16x32xf32>, vector<32x64xf32>, vector<16x64xf32> -> vector<16x64xf32>
    %c1_187 = arith.constant 1 : index
    %c0_188 = arith.constant 0 : index
    %c0_189 = arith.constant 0 : index
    %493 = vector.load %arg12[%c1_187, %c0_188, %c0_189] : memref<2x1x64xf32, #tpu.memory_space<vmem>>, vector<1x1x64xf32>
    %494 = vector.shape_cast %493 : vector<1x1x64xf32> to vector<1x64xf32>
    %495 = vector.broadcast %494 : vector<1x64xf32> to vector<16x64xf32>
    %496 = arith.addf %492, %495 : vector<16x64xf32>
    %cst_190 = arith.constant 5.000000e-01 : f32
    %497 = vector.broadcast %cst_190 : f32 to vector<16x64xf32>
    %498 = arith.mulf %497, %496 : vector<16x64xf32>
    %cst_191 = arith.constant 4.471500e-02 : f32
    %499 = vector.broadcast %cst_191 : f32 to vector<16x64xf32>
    %500 = arith.mulf %499, %496 : vector<16x64xf32>
    %501 = arith.mulf %500, %496 : vector<16x64xf32>
    %502 = arith.mulf %501, %496 : vector<16x64xf32>
    %503 = arith.addf %496, %502 : vector<16x64xf32>
    %cst_192 = arith.constant 0.797884583 : f32
    %504 = vector.broadcast %cst_192 : f32 to vector<16x64xf32>
    %505 = arith.mulf %504, %503 : vector<16x64xf32>
    %506 = math.tanh %505 : vector<16x64xf32>
    %cst_193 = arith.constant 1.000000e+00 : f32
    %507 = vector.broadcast %cst_193 : f32 to vector<16x64xf32>
    %508 = arith.addf %507, %506 : vector<16x64xf32>
    %509 = arith.mulf %498, %508 : vector<16x64xf32>
    %c1_194 = arith.constant 1 : index
    %c0_195 = arith.constant 0 : index
    %c0_196 = arith.constant 0 : index
    %510 = vector.load %arg13[%c1_194, %c0_195, %c0_196] : memref<2x64x32xf32, #tpu.memory_space<vmem>>, vector<1x64x32xf32>
    %511 = vector.shape_cast %510 : vector<1x64x32xf32> to vector<64x32xf32>
    %cst_197 = arith.constant dense<0.000000e+00> : vector<16x32xf32>
    %512 = tpu.matmul %509, %511, %cst_197 {dimension_numbers = #tpu.dot_dimension_numbers<[1], [0], [0], [1], [0, 0, 1, 1], [], []>} : vector<16x64xf32>, vector<64x32xf32>, vector<16x32xf32> -> vector<16x32xf32>
    %c1_198 = arith.constant 1 : index
    %c0_199 = arith.constant 0 : index
    %c0_200 = arith.constant 0 : index
    %513 = vector.load %arg14[%c1_198, %c0_199, %c0_200] : memref<2x1x32xf32, #tpu.memory_space<vmem>>, vector<1x1x32xf32>
    %514 = vector.shape_cast %513 : vector<1x1x32xf32> to vector<1x32xf32>
    %515 = vector.broadcast %514 : vector<1x32xf32> to vector<16x32xf32>
    %516 = arith.addf %512, %515 : vector<16x32xf32>
    %517 = arith.addf %516, %489 : vector<16x32xf32>
    %c1_201 = arith.constant 1 : index
    %c0_202 = arith.constant 0 : index
    %c0_203 = arith.constant 0 : index
    %518 = vector.load %arg15[%c1_201, %c0_202, %c0_203] : memref<2x1x32xf32, #tpu.memory_space<vmem>>, vector<1x1x32xf32>
    %519 = vector.shape_cast %518 : vector<1x1x32xf32> to vector<1x32xf32>
    %c1_204 = arith.constant 1 : index
    %c0_205 = arith.constant 0 : index
    %c0_206 = arith.constant 0 : index
    %520 = vector.load %arg16[%c1_204, %c0_205, %c0_206] : memref<2x1x32xf32, #tpu.memory_space<vmem>>, vector<1x1x32xf32>
    %521 = vector.shape_cast %520 : vector<1x1x32xf32> to vector<1x32xf32>
    %cst_207 = arith.constant dense<0.000000e+00> : vector<16xf32>
    %522 = vector.multi_reduction <add>, %517, %cst_207 [1] : vector<16x32xf32> to vector<16xf32>
    %523 = vector.shape_cast %522 : vector<16xf32> to vector<16x1xf32>
    %cst_208 = arith.constant 3.200000e+01 : f32
    %524 = vector.broadcast %cst_208 : f32 to vector<16x1xf32>
    %525 = arith.divf %523, %524 : vector<16x1xf32>
    %526 = vector.broadcast %525 : vector<16x1xf32> to vector<16x32xf32>
    %527 = arith.subf %517, %526 : vector<16x32xf32>
    %528 = arith.mulf %527, %527 : vector<16x32xf32>
    %cst_209 = arith.constant dense<0.000000e+00> : vector<16xf32>
    %529 = vector.multi_reduction <add>, %528, %cst_209 [1] : vector<16x32xf32> to vector<16xf32>
    %530 = vector.shape_cast %529 : vector<16xf32> to vector<16x1xf32>
    %cst_210 = arith.constant 3.200000e+01 : f32
    %531 = vector.broadcast %cst_210 : f32 to vector<16x1xf32>
    %532 = arith.divf %530, %531 : vector<16x1xf32>
    %cst_211 = arith.constant 9.99999996E-13 : f32
    %533 = vector.broadcast %cst_211 : f32 to vector<16x1xf32>
    %534 = arith.addf %532, %533 : vector<16x1xf32>
    %535 = math.rsqrt %534 : vector<16x1xf32>
    %536 = vector.broadcast %535 : vector<16x1xf32> to vector<16x32xf32>
    %537 = arith.mulf %527, %536 : vector<16x32xf32>
    %538 = vector.broadcast %519 : vector<1x32xf32> to vector<16x32xf32>
    %539 = arith.mulf %537, %538 : vector<16x32xf32>
    %540 = vector.broadcast %521 : vector<1x32xf32> to vector<16x32xf32>
    %541 = arith.addf %539, %540 : vector<16x32xf32>
    %542 = vector.extract_strided_slice %541 {offsets = [0, 0], sizes = [1, 32], strides = [1, 1]} : vector<16x32xf32> to vector<1x32xf32>
    %c0_212 = arith.constant 0 : index
    %c0_213 = arith.constant 0 : index
    %543 = vector.load %arg17[%c0_212, %c0_213] : memref<32x32xf32, #tpu.memory_space<vmem>>, vector<32x32xf32>
    %cst_214 = arith.constant dense<0.000000e+00> : vector<1x32xf32>
    %544 = tpu.matmul %542, %543, %cst_214 {dimension_numbers = #tpu.dot_dimension_numbers<[1], [0], [0], [1], [0, 0, 1, 1], [], []>} : vector<1x32xf32>, vector<32x32xf32>, vector<1x32xf32> -> vector<1x32xf32>
    %c0_215 = arith.constant 0 : index
    %c0_216 = arith.constant 0 : index
    %545 = vector.load %arg18[%c0_215, %c0_216] : memref<1x32xf32, #tpu.memory_space<vmem>>, vector<1x32xf32>
    %546 = arith.addf %544, %545 : vector<1x32xf32>
    %547 = math.tanh %546 : vector<1x32xf32>
    %c0_217 = arith.constant 0 : index
    %c0_218 = arith.constant 0 : index
    %548 = vector.load %arg21[%c0_217, %c0_218] : memref<2x32xf32, #tpu.memory_space<vmem>>, vector<1x32xf32>
    tpu.vector_store %arg21[%c0_217, %c0_218], %547 {strides = array<i32>} : memref<2x32xf32, #tpu.memory_space<vmem>>, vector<1x32xf32>,
    %c0_219 = arith.constant 0 : index
    %c0_220 = arith.constant 0 : index
    %549 = vector.load %arg19[%c0_219, %c0_220] : memref<32x1xf32, #tpu.memory_space<vmem>>, vector<32x1xf32>
    %cst_221 = arith.constant dense<0.000000e+00> : vector<1x1xf32>
    %550 = tpu.matmul %547, %549, %cst_221 {dimension_numbers = #tpu.dot_dimension_numbers<[1], [0], [0], [1], [0, 0, 1, 1], [], []>} : vector<1x32xf32>, vector<32x1xf32>, vector<1x1xf32> -> vector<1x1xf32>
    %c0_222 = arith.constant 0 : index
    %c0_223 = arith.constant 0 : index
    %551 = vector.load %arg20[%c0_222, %c0_223] : memref<1x1xf32, #tpu.memory_space<vmem>>, vector<1x1xf32>
    %552 = arith.addf %550, %551 : vector<1x1xf32>
    %c0_224 = arith.constant 0 : index
    %c0_225 = arith.constant 0 : index
    %553 = vector.load %arg22[%c0_224, %c0_225] : memref<2x1xf32, #tpu.memory_space<vmem>>, vector<1x1xf32>
    tpu.vector_store %arg22[%c0_224, %c0_225], %552 {strides = array<i32>} : memref<2x1xf32, #tpu.memory_space<vmem>>, vector<1x1xf32>,
    %554 = vector.extract_strided_slice %541 {offsets = [8, 0], sizes = [1, 32], strides = [1, 1]} : vector<16x32xf32> to vector<1x32xf32>
    %c0_226 = arith.constant 0 : index
    %c0_227 = arith.constant 0 : index
    %555 = vector.load %arg17[%c0_226, %c0_227] : memref<32x32xf32, #tpu.memory_space<vmem>>, vector<32x32xf32>
    %cst_228 = arith.constant dense<0.000000e+00> : vector<1x32xf32>
    %556 = tpu.matmul %554, %555, %cst_228 {dimension_numbers = #tpu.dot_dimension_numbers<[1], [0], [0], [1], [0, 0, 1, 1], [], []>} : vector<1x32xf32>, vector<32x32xf32>, vector<1x32xf32> -> vector<1x32xf32>
    %c0_229 = arith.constant 0 : index
    %c0_230 = arith.constant 0 : index
    %557 = vector.load %arg18[%c0_229, %c0_230] : memref<1x32xf32, #tpu.memory_space<vmem>>, vector<1x32xf32>
    %558 = arith.addf %556, %557 : vector<1x32xf32>
    %559 = math.tanh %558 : vector<1x32xf32>
    %c1_231 = arith.constant 1 : index
    %c0_232 = arith.constant 0 : index
    %560 = vector.load %arg21[%c1_231, %c0_232] : memref<2x32xf32, #tpu.memory_space<vmem>>, vector<1x32xf32>
    tpu.vector_store %arg21[%c1_231, %c0_232], %559 {strides = array<i32>} : memref<2x32xf32, #tpu.memory_space<vmem>>, vector<1x32xf32>,
    %c0_233 = arith.constant 0 : index
    %c0_234 = arith.constant 0 : index
    %561 = vector.load %arg19[%c0_233, %c0_234] : memref<32x1xf32, #tpu.memory_space<vmem>>, vector<32x1xf32>
    %cst_235 = arith.constant dense<0.000000e+00> : vector<1x1xf32>
    %562 = tpu.matmul %559, %561, %cst_235 {dimension_numbers = #tpu.dot_dimension_numbers<[1], [0], [0], [1], [0, 0, 1, 1], [], []>} : vector<1x32xf32>, vector<32x1xf32>, vector<1x1xf32> -> vector<1x1xf32>
    %c0_236 = arith.constant 0 : index
    %c0_237 = arith.constant 0 : index
    %563 = vector.load %arg20[%c0_236, %c0_237] : memref<1x1xf32, #tpu.memory_space<vmem>>, vector<1x1xf32>
    %564 = arith.addf %562, %563 : vector<1x1xf32>
    %c1_238 = arith.constant 1 : index
    %c0_239 = arith.constant 0 : index
    %565 = vector.load %arg22[%c1_238, %c0_239] : memref<2x1xf32, #tpu.memory_space<vmem>>, vector<1x1xf32>
    tpu.vector_store %arg22[%c1_238, %c0_239], %564 {strides = array<i32>} : memref<2x1xf32, #tpu.memory_space<vmem>>, vector<1x1xf32>,
    return
  }
  func.func @transform_0(%arg0: i32) -> (i32, i32) {
    %c0_i32 = arith.constant 0 : i32
    %c0_i32_0 = arith.constant 0 : i32
    %c0_i32_1 = arith.constant 0 : i32
    return %c0_i32, %c0_i32_0 : i32, i32
  }
  func.func @transform_1(%arg0: i32) -> (i32, i32) {
    %c0_i32 = arith.constant 0 : i32
    %c0_i32_0 = arith.constant 0 : i32
    %c0_i32_1 = arith.constant 0 : i32
    return %c0_i32, %c0_i32_0 : i32, i32
  }
  func.func @transform_2(%arg0: i32) -> (i32, i32) {
    %c0_i32 = arith.constant 0 : i32
    %c0_i32_0 = arith.constant 0 : i32
    %c0_i32_1 = arith.constant 0 : i32
    return %c0_i32, %c0_i32_0 : i32, i32
  }
  func.func @transform_3(%arg0: i32) -> (i32, i32) {
    %c0_i32 = arith.constant 0 : i32
    %c0_i32_0 = arith.constant 0 : i32
    %c0_i32_1 = arith.constant 0 : i32
    return %c0_i32, %c0_i32_0 : i32, i32
  }
  func.func @transform_4(%arg0: i32) -> (i32, i32, i32) {
    %c0_i32 = arith.constant 0 : i32
    %c0_i32_0 = arith.constant 0 : i32
    %c0_i32_1 = arith.constant 0 : i32
    %c0_i32_2 = arith.constant 0 : i32
    return %c0_i32, %c0_i32_0, %c0_i32_1 : i32, i32, i32
  }
  func.func @transform_5(%arg0: i32) -> (i32, i32, i32) {
    %c0_i32 = arith.constant 0 : i32
    %c0_i32_0 = arith.constant 0 : i32
    %c0_i32_1 = arith.constant 0 : i32
    %c0_i32_2 = arith.constant 0 : i32
    return %c0_i32, %c0_i32_0, %c0_i32_1 : i32, i32, i32
  }
  func.func @transform_6(%arg0: i32) -> (i32, i32, i32) {
    %c0_i32 = arith.constant 0 : i32
    %c0_i32_0 = arith.constant 0 : i32
    %c0_i32_1 = arith.constant 0 : i32
    %c0_i32_2 = arith.constant 0 : i32
    return %c0_i32, %c0_i32_0, %c0_i32_1 : i32, i32, i32
  }
  func.func @transform_7(%arg0: i32) -> (i32, i32, i32) {
    %c0_i32 = arith.constant 0 : i32
    %c0_i32_0 = arith.constant 0 : i32
    %c0_i32_1 = arith.constant 0 : i32
    %c0_i32_2 = arith.constant 0 : i32
    return %c0_i32, %c0_i32_0, %c0_i32_1 : i32, i32, i32
  }
  func.func @transform_8(%arg0: i32) -> (i32, i32, i32) {
    %c0_i32 = arith.constant 0 : i32
    %c0_i32_0 = arith.constant 0 : i32
    %c0_i32_1 = arith.constant 0 : i32
    %c0_i32_2 = arith.constant 0 : i32
    return %c0_i32, %c0_i32_0, %c0_i32_1 : i32, i32, i32
  }
  func.func @transform_9(%arg0: i32) -> (i32, i32, i32) {
    %c0_i32 = arith.constant 0 : i32
    %c0_i32_0 = arith.constant 0 : i32
    %c0_i32_1 = arith.constant 0 : i32
    %c0_i32_2 = arith.constant 0 : i32
    return %c0_i32, %c0_i32_0, %c0_i32_1 : i32, i32, i32
  }
  func.func @transform_10(%arg0: i32) -> (i32, i32, i32) {
    %c0_i32 = arith.constant 0 : i32
    %c0_i32_0 = arith.constant 0 : i32
    %c0_i32_1 = arith.constant 0 : i32
    %c0_i32_2 = arith.constant 0 : i32
    return %c0_i32, %c0_i32_0, %c0_i32_1 : i32, i32, i32
  }
  func.func @transform_11(%arg0: i32) -> (i32, i32, i32) {
    %c0_i32 = arith.constant 0 : i32
    %c0_i32_0 = arith.constant 0 : i32
    %c0_i32_1 = arith.constant 0 : i32
    %c0_i32_2 = arith.constant 0 : i32
    return %c0_i32, %c0_i32_0, %c0_i32_1 : i32, i32, i32
  }
  func.func @transform_12(%arg0: i32) -> (i32, i32, i32) {
    %c0_i32 = arith.constant 0 : i32
    %c0_i32_0 = arith.constant 0 : i32
    %c0_i32_1 = arith.constant 0 : i32
    %c0_i32_2 = arith.constant 0 : i32
    return %c0_i32, %c0_i32_0, %c0_i32_1 : i32, i32, i32
  }
  func.func @transform_13(%arg0: i32) -> (i32, i32, i32) {
    %c0_i32 = arith.constant 0 : i32
    %c0_i32_0 = arith.constant 0 : i32
    %c0_i32_1 = arith.constant 0 : i32
    %c0_i32_2 = arith.constant 0 : i32
    return %c0_i32, %c0_i32_0, %c0_i32_1 : i32, i32, i32
  }
  func.func @transform_14(%arg0: i32) -> (i32, i32, i32) {
    %c0_i32 = arith.constant 0 : i32
    %c0_i32_0 = arith.constant 0 : i32
    %c0_i32_1 = arith.constant 0 : i32
    %c0_i32_2 = arith.constant 0 : i32
    return %c0_i32, %c0_i32_0, %c0_i32_1 : i32, i32, i32
  }
  func.func @transform_15(%arg0: i32) -> (i32, i32, i32) {
    %c0_i32 = arith.constant 0 : i32
    %c0_i32_0 = arith.constant 0 : i32
    %c0_i32_1 = arith.constant 0 : i32
    %c0_i32_2 = arith.constant 0 : i32
    return %c0_i32, %c0_i32_0, %c0_i32_1 : i32, i32, i32
  }
  func.func @transform_16(%arg0: i32) -> (i32, i32) {
    %c0_i32 = arith.constant 0 : i32
    %c0_i32_0 = arith.constant 0 : i32
    %c0_i32_1 = arith.constant 0 : i32
    return %c0_i32, %c0_i32_0 : i32, i32
  }
  func.func @transform_17(%arg0: i32) -> (i32, i32) {
    %c0_i32 = arith.constant 0 : i32
    %c0_i32_0 = arith.constant 0 : i32
    %c0_i32_1 = arith.constant 0 : i32
    return %c0_i32, %c0_i32_0 : i32, i32
  }
  func.func @transform_18(%arg0: i32) -> (i32, i32) {
    %c0_i32 = arith.constant 0 : i32
    %c0_i32_0 = arith.constant 0 : i32
    %c0_i32_1 = arith.constant 0 : i32
    return %c0_i32, %c0_i32_0 : i32, i32
  }
  func.func @transform_19(%arg0: i32) -> (i32, i32) {
    %c0_i32 = arith.constant 0 : i32
    %c0_i32_0 = arith.constant 0 : i32
    %c0_i32_1 = arith.constant 0 : i32
    return %c0_i32, %c0_i32_0 : i32, i32
  }
  func.func @transform_20(%arg0: i32) -> (i32, i32) {
    %c0_i32 = arith.constant 0 : i32
    %c0_i32_0 = arith.constant 0 : i32
    %c0_i32_1 = arith.constant 0 : i32
    return %c0_i32, %c0_i32_0 : i32, i32
  }
  func.func @transform_21(%arg0: i32) -> (i32, i32) {
    %c0_i32 = arith.constant 0 : i32
    %c0_i32_0 = arith.constant 0 : i32
    %c0_i32_1 = arith.constant 0 : i32
    return %c0_i32, %c0_i32_0 : i32, i32
  }
}

</mosaic_0001>

<bundles_post_ra>
// kernel: bert_base_pooled_output.1
= control target key start
LH: loop header
LB: loop body
LE: loop exit
PB: predicated region body
PF: predicated region fallthrough
CT: control target
= control target key end

     0   :  { %s3567_s0 = inlined_call_operand.vmem [shape: f32[16,32], index: 0, kind: input, shape index: {}]   ;;  %s3568_s1 = inlined_call_operand.vmem [shape: f32[2,8], index: 1, kind: input, shape index: {}]   ;;  %s3569_s2 = inlined_call_operand.vmem [shape: f32[1,32], index: 2, kind: input, shape index: {}]   ;;  %s3570_s3 = inlined_call_operand.vmem [shape: f32[1,32], index: 3, kind: input, shape index: {}, may-alias: {3,17}]   ;;  %s3571_s4 = inlined_call_operand.hbm [shape: f32[2,32,96], index: 4, kind: input, shape index: {}]   ;;  %s3572_s5 = inlined_call_operand.vmem [shape: f32[2,1,96], index: 5, kind: input, shape index: {}]   ;;  %s3573_s6 = inlined_call_operand.hbm [shape: f32[2,32,32], index: 6, kind: input, shape index: {}]   ;;  %s3574_s7 = inlined_call_operand.vmem [shape: f32[2,1,32], index: 7, kind: input, shape index: {}, may-alias: {7,9,13,15}]   ;;  %s3575_s8 = inlined_call_operand.vmem [shape: f32[2,1,32], index: 8, kind: input, shape index: {}, may-alias: {8,14}]   ;;  %s3576_s9 = inlined_call_operand.vmem [shape: f32[2,1,32], index: 9, kind: input, shape index: {}, may-alias: {7,9,13,15}]   ;;  %s3577_s10 = inlined_call_operand.hbm [shape: f32[2,32,64], index: 10, kind: input, shape index: {}]   ;;  %s3578_s11 = inlined_call_operand.vmem [shape: f32[2,1,64], index: 11, kind: input, shape index: {}]   ;;  %s3579_s12 = inlined_call_operand.vmem [shape: f32[2,64,32], index: 12, kind: input, shape index: {}]   ;;  %s3580_s13 = inlined_call_operand.vmem [shape: f32[2,1,32], index: 13, kind: input, shape index: {}, may-alias: {7,9,13,15}]   ;;  %s3581_s14 = inlined_call_operand.vmem [shape: f32[2,1,32], index: 14, kind: input, shape index: {}, may-alias: {8,14}]   ;;  %s3582_s15 = inlined_call_operand.vmem [shape: f32[2,1,32], index: 15, kind: input, shape index: {}, may-alias: {7,9,13,15}]   ;;  %s3583_s16 = inlined_call_operand.vmem [shape: f32[32,32], index: 16, kind: input, shape index: {}]   ;;  %s3584_s17 = inlined_call_operand.vmem [shape: f32[1,32], index: 17, kind: input, shape index: {}, may-alias: {3,17}]   ;;  %s3585_s18 = inlined_call_operand.vmem [shape: f32[32,1], index: 18, kind: input, shape index: {}]   ;;  %s3586_s19 = inlined_call_operand.<no memory space> [shape: f32[1,1], index: 19, kind: input, shape index: {}]   ;;  %s3587_s20 = inlined_call_operand.hbm [shape: f32[2,32], index: 20, kind: output, shape index: {0}]   ;;  %s3588_s21 = inlined_call_operand.vmem [shape: f32[2,1], index: 21, kind: output, shape index: {1}]  }
   0x1   :  { %3599 = sst [smem:[#allocation13_spill]] %s3567_s0  ;;  %v27_v0 = vstv %s3586_s19 }
   0x2   :  { %3600 = sst [smem:[#allocation14_spill]] %s3568_s1  ;;  %28 = vst [vmem:[#allocation2] sm:$0x1] %v27_v0 }
   0x3   :  { %3601 = sst [smem:[#allocation15_spill]] %s3569_s2 }
   0x4   :  { %3602 = sst [smem:[#allocation16_spill]] %s3570_s3 }
   0x5   :  { %3603 = sst [smem:[#allocation17_spill]] %s3571_s4 }
   0x6   :  { %3604 = sst [smem:[#allocation18_spill]] %s3572_s5 }
   0x7   :  { %29 = vsyncpa [#allocation4], 0 }
   0x8   :  { %30 = vsyncpa [#allocation7], 0 }
   0x9   :  { %31 = vsyncpa [#allocation5], 0  ;;  %s59_s3 = sshll.u32 %s3573_s6, 4  ;;  %s2844_s28 = smov [#allocation6]   ;;  %s60_s3 = int_to_ptr.hbm [resolvable:$true] %s59_s3 }
   0xa   :  { %s61_s29 = sshll.u32 %s2844_s28, 4  ;;  %s3605_s30 = sld [smem:[#allocation17_spill]]  ;;  %s62_s29 = int_to_ptr.vmem [resolvable:$true] %s61_s29 }
   0xb   :  { %s2845_s22 = smov 128   ;;  %s2846_s23 = smov 8  }
   0xc   :  { %67 = dma.hbm_to_vmem [thread:$0]  %s60_s3, 1024, %s62_s29, [#allocation7], %s2845_s22, %s2845_s22, %s2846_s23  }
   0xd   :  { %s2847_s19 = smov [#allocation3]   ;;  %s78_s25 = sshll.u32 %s3577_s10, 4  ;;  %s79_s25 = int_to_ptr.hbm [resolvable:$true] %s78_s25 }
   0xe   :  { %s46_s1 = sshll.u32 %s2847_s19, 4  ;;  %s2848_s6 = smov [#allocation8]   ;;  %s47_s1 = int_to_ptr.vmem [resolvable:$true] %s46_s1 }
   0xf   :  { %s80_s26 = sshll.u32 %s2848_s6, 4  ;;  %s81_s26 = int_to_ptr.vmem [resolvable:$true] %s80_s26 }
  0x10   :  { %s44_s5 = sshll.u32 %s3605_s30, 4  ;;  %s45_s5 = int_to_ptr.hbm [resolvable:$true] %s44_s5 }
  0x11   :  { %52 = dma.hbm_to_vmem [thread:$0]  %s45_s5, 1024, %s47_s1, [#allocation4], %s2845_s22, %s2845_s22, %s2846_s23  }
  0x12   :  { %86 = dma.hbm_to_vmem [thread:$0]  %s79_s25, 1024, %s81_s26, [#allocation7], %s2845_s22, %s2845_s22, %s2846_s23  }
  0x13   :  { %2838 = dma.done.wait [#allocation4], 1024  }
  0x14   :  { %2839 = vsyncadd [#allocation4], 4294966272 }
  0x15   :  { %2840 = dma.done.wait [#allocation7], 2048  }
  0x16   :  { %2841 = vsyncadd [#allocation7], 4294965248  ;;  %vm121_vm0 = vcmask 261120   ;;  %s3606_s28 = sld [smem:[#allocation13_spill]]  ;;  %v2849_v3 = vmov 32.0   ;;  %v187_v15 = vld [vmem:[#allocation3 + $0x18] sm:$0xff] }
  0x17   :  { %2644 = vrcp.f32 %v2849_v3  ;;  %210 = vmatpush.msra.mxu0 %v187_v15  ;;  %v186_v16 = vld [vmem:[#allocation3 + $0x10] sm:$0xff]  ;;  %v185_v17 = vld [vmem:[#allocation3 + $0x8] sm:$0xff]  ;;  %v184_v18 = vld [vmem:[#allocation3] sm:$0xff]  ;;  %s3607_s0 = sld [smem:[#allocation15_spill]]  ;;  %s2850_s1 = smov 120   ;;  %vm228_vm5 = vcmask 64512  }
  0x18   :  { %s3608_s5 = sld [smem:[#allocation16_spill]]  ;;  %s2851_s24 = smov 96  }
  0x19   :  { %211 = vmatpush.msra.mxu0 %v186_v16  ;;  %s3609_s19 = sld [smem:[#allocation18_spill]]  ;;  %s2852_s2 = smov 88  }
  0x1a   :  { %s3610_s26 = sld [smem:[#allocation14_spill]]  ;;  %s2853_s27 = smov 56  }
  0x1b   :  { %212 = vmatpush.msra.mxu0 %v185_v17  ;;  %s3597_s3 = smov 64   ;;  %s2855_s10 = smov 112  }
  0x1c   :  { %v117_v1 = vld [vmem:[%s3606_s28] sm:$0xff]  ;;  %s2856_s29 = smov 80   ;;  %v118_v62 = vld [vmem:[%s3606_s28 + $0x8] sm:$0xff]  ;;  %s3593_s28 = smov 104  }
  0x1d   :  { %v122_v2 = vsel %vm121_vm0, %v117_v1, 0.0  ;;  %v2645_v4 = vpop.eup %2644  ;;  %213 = vmatpush.msra.mxu0 %v184_v18  ;;  %v2996_v28 = vld [vmem:[%s3607_s0] ss:$0 sm:$0xff]  ;;  %v125_v63 = vsel %vm121_vm0, %v118_v62, 0.0  ;;  %s3595_s30 = smov 72   ;;  %s3591_s22 = smov 40  }
  0x1e   :  { %123 = vadd.xlane.f32.xlu0 %v122_v2  ;;  %v129_v5 = vmul.f32 32.0, %v2645_v4  ;;  %vm133_vm1 = vweird.f32 %v2645_v4  ;;  %v3001_v31 = vld [vmem:[%s3608_s5] ss:$0 sm:$0xff]  ;;  %s2859_s5 = smov 48  }
  0x1f   :  { %v3012_v34 = vld [vmem:[%s3609_s19] ss:$0 sm:$0xff] }
  0x20   :  { %v130_v6 = vsub.f32 1.0, %v129_v5  ;;  %v3031_v40 = vld [vmem:[%s3610_s26] sm:$0x3] }
  0x21   :  { %v3034_v41 = vperm.slane %v3031_v40, 0 }
  0x22   :  { %v131_v7 = vmul.f32 %v2645_v4, %v130_v6 }
  0x24   :  { %v132_v8 = vadd.f32 %v2645_v4, %v131_v7 }
  0x26   :  { %v2988_v9 = vsel %vm133_vm1, %v2645_v4, %v132_v8 }
  0x91   :  { %v124_v10 = vpop.xlane.xlu0 %123 }
  0x92   :  { %v135_v11 = vmul.f32 %v2988_v9, %v124_v10 }
  0x94   :  { %v137_v12 = vsub.f32 %v117_v1, %v135_v11 }
  0x96   :  { %v139_v13 = vmul.f32 %v137_v12, %v137_v12 }
  0x98   :  { %v141_v14 = vsel %vm121_vm0, %v139_v13, 0.0 }
  0x99   :  { %142 = vadd.xlane.f32.xlu0 %v141_v14 }
 0x10c   :  { %v143_v19 = vpop.xlane.xlu0 %142 }
 0x10d   :  { %v147_v20 = vmul.f32 %v143_v19, %v2988_v9 }
 0x10f   :  { %v149_v21 = vadd.f32 1e-12, %v147_v20 }
 0x111   :  { %2646 = vrsqrt.f32 %v149_v21  ;;  %vm157_vm3 = vweird.f32 %v149_v21 }
 0x117   :  { %v2647_v22 = vpop.eup %2646 }
 0x118   :  { %v152_v23 = vmul.f32 %v2647_v22, %v149_v21  ;;  %vm158_vm2 = vweird.f32 %v2647_v22 }
 0x119   :  { %vm159_vm4 = vmor %vm157_vm3, %vm158_vm2 }
 0x11a   :  { %v153_v24 = vmul.f32 %v2647_v22, %v152_v23 }
 0x11c   :  { %v154_v25 = vmul.f32 0.5, %v153_v24 }
 0x11e   :  { %v155_v26 = vsub.f32 1.5, %v154_v25 }
 0x120   :  { %v156_v27 = vmul.f32 %v2647_v22, %v155_v26 }
 0x122   :  { %v160_v29 = vsel %vm159_vm4, %v2647_v22, %v156_v27 }
 0x123   :  { %v171_v30 = vmul.f32 %v160_v29, %v137_v12 }
 0x125   :  { %v176_v32 = vmul.f32 %v2996_v28, %v171_v30 }
 0x127   :  { %v3005_v33 = vadd.f32 %v3001_v31, %v176_v32 }
 0x129   :  { %2512 = vmatmul.msk.f32.vlgmr.msra.gmra.mxu0 %vm121_vm0, %v3005_v33 }
 0x1a6   :  { %v215_v35 = vpop.f32.mrf.mxu0 }
 0x1a7   :  { %v3015_v36 = vadd.f32 %v3012_v34, %v215_v35 }
 0x1a9   :  { %306 = vrot.lane.b32.xlu2 %v3015_v36, %s2850_s1  ;;  %226 = vrot.lane.b32.xlu1 %v3015_v36, %s2851_s24 }
 0x1b1   :  { %308 = vrot.lane.b32.xlu1 %v3015_v36, %s2852_s2 }
 0x203   :  { %v307_v39 = vpop.permute.xlu2 %306 }
 0x21b   :  { %v227_v37 = vpop.permute.xlu1 %226 }
 0x21c   :  { %2514 = vmatpush.xpose.msk.msra.mxu1 %vm228_vm5, %v227_v37  ;;  %v3062_v37 = vld [vmem:[#allocation6] sm:$0xff] }
 0x21f   :  { %2515 = vmatmul.msk.f32.vlgmr.msra.gmra.mxu1 %vm228_vm5, %v3015_v36 }
 0x223   :  { %v309_v38 = vpop.permute.xlu1 %308 }
 0x224   :  { %2517 = vmatpush.xpose.msk.msra.mxu3 %vm228_vm5, %v309_v38  ;;  %v3065_v38 = vld [vmem:[#allocation6 + $0x8] sm:$0xff] }
 0x225   :  { %404 = vmatpush.msrb.mxu1 %v3065_v38 }
 0x227   :  { %2518 = vmatmul.msk.f32.vlgmr.msra.gmra.mxu3 %vm228_vm5, %v307_v39 }
 0x228   :  { %427 = vmatpush.msrb.mxu3 %v3062_v37 }
 0x29c   :  { %v250_v42 = vpop.f32.mrf.mxu1 }
 0x29d   :  { %v253_v43 = vmul.f32 0.35355338, %v250_v42 }
 0x29f   :  { %v255_v44 = vadd.f32 %v3034_v41, %v253_v43 }
 0x2a1   :  { %v256_v45 = vsel %vm228_vm5, %v255_v44, -inf }
 0x2a2   :  { %257 = vmax.xlane.f32.xlu2 %v256_v45 }
 0x2aa   :  { %v331_v46 = vpop.f32.mrf.mxu3 }
 0x2ab   :  { %v334_v47 = vmul.f32 0.35355338, %v331_v46 }
 0x2ad   :  { %v335_v48 = vadd.f32 %v334_v47, %v3034_v41 }
 0x2af   :  { %v336_v49 = vsel %vm228_vm5, %v335_v48, -inf }
 0x2b0   :  { %337 = vmax.xlane.f32.xlu0 %v336_v49 }
 0x2ba   :  { %360 = vrot.lane.b32.xlu2 %v3015_v36, %s2853_s27 }
 0x2c4   :  { %280 = vrot.lane.b32.xlu0 %v3015_v36, %s3597_s3 }
 0x315   :  { %v258_v50 = vpop.xlane.xlu2 %257 }
 0x316   :  { %v259_v51 = vsub.f32 %v255_v44, %v258_v50 }
 0x318   :  { %v260_v52 = vmul.f32 1.442695, %v259_v51 }
 0x31a   :  { %2648 = vpow2.f32 %v260_v52 }
 0x31d   :  { %v361_v61 = vpop.permute.xlu2 %360 }
 0x320   :  { %v2649_v53 = vpop.eup %2648 }
 0x321   :  { %v262_v54 = vsel %vm228_vm5, %v2649_v53, 0.0 }
 0x322   :  { %263 = vadd.xlane.f32.xlu1 %v262_v54 }
 0x323   :  { %v338_v55 = vpop.xlane.xlu0 %337 }
 0x324   :  { %v339_v56 = vsub.f32 %v335_v48, %v338_v55 }
 0x326   :  { %v340_v57 = vmul.f32 1.442695, %v339_v56 }
 0x328   :  { %2650 = vpow2.f32 %v340_v57 }
 0x32e   :  { %v2651_v58 = vpop.eup %2650 }
 0x32f   :  { %v342_v59 = vsel %vm228_vm5, %v2651_v58, 0.0 }
 0x330   :  { %343 = vadd.xlane.f32.xlu0 %v342_v59 }
 0x336   :  { %v281_v60 = vpop.permute.xlu0 %280 }
 0x337   :  { %301 = vmatpush.msra.mxu2 %v281_v60 }
 0x339   :  { %381 = vmatpush.msrb.mxu2 %v361_v61 }
 0x33b   :  { %432 = vrot.lane.b32.xlu1 %v3015_v36, %s2855_s10 }
 0x344   :  { %434 = vrot.lane.b32.xlu0 %v3015_v36, %s2856_s29 }
 0x36e   :  { %126 = vadd.xlane.f32.xlu0 %v125_v63 }
 0x395   :  { %v264_v0 = vpop.xlane.xlu1 %263 }
 0x396   :  { %2652 = vrcp.f32 %v264_v0  ;;  %v276_v4 = vand.u32 2147483648, %v264_v0  ;;  %v274_v6 = vand.u32 2147483647, %v264_v0  ;;  %vm270_vm7 = vweird.f32 %v264_v0 }
 0x398   :  { %v277_v10 = vor.u32 1.1754944e-38, %v276_v4  ;;  %vm275_vm9 = vcmp.eq.f32.partialorder %v274_v6, 8.507059e+37 }
 0x39c   :  { %v2653_v1 = vpop.eup %2652 }
 0x39d   :  { %v266_v2 = vmul.f32 %v2653_v1, %v264_v0  ;;  %vm271_vm6 = vweird.f32 %v2653_v1 }
 0x39e   :  { %vm272_vm8 = vmor %vm270_vm7, %vm271_vm6 }
 0x39f   :  { %v267_v3 = vsub.f32 1.0, %v266_v2 }
 0x3a1   :  { %v268_v5 = vmul.f32 %v2653_v1, %v267_v3 }
 0x3a3   :  { %v344_v7 = vpop.xlane.xlu0 %343  ;;  %v269_v8 = vadd.f32 %v2653_v1, %v268_v5 }
 0x3a4   :  { %2654 = vrcp.f32 %v344_v7  ;;  %v356_v17 = vand.u32 2147483648, %v344_v7  ;;  %v354_v19 = vand.u32 2147483647, %v344_v7  ;;  %vm350_vm11 = vweird.f32 %v344_v7 }
 0x3a5   :  { %v273_v11 = vsel %vm272_vm8, %v2653_v1, %v269_v8 }
 0x3a6   :  { %v278_v12 = vsel %vm275_vm9, %v277_v10, %v273_v11  ;;  %v357_v21 = vor.u32 1.1754944e-38, %v356_v17  ;;  %vm355_vm13 = vcmp.eq.f32.partialorder %v354_v19, 8.507059e+37  ;;  %v223_v11 = vld [vmem:[#allocation6 + $0x10] sm:$0xff] }
 0x3a7   :  { %v279_v13 = vmul.f32 %v2649_v53, %v278_v12  ;;  %530 = vmatpush.msra.mxu3 %v223_v11 }
 0x3a9   :  { %2516 = vmatmul.msk.f32.vlgmr.msra.gmra.mxu2 %vm228_vm5, %v279_v13 }
 0x3aa   :  { %v2655_v14 = vpop.eup %2654 }
 0x3ab   :  { %v346_v15 = vmul.f32 %v2655_v14, %v344_v7  ;;  %vm351_vm10 = vweird.f32 %v2655_v14 }
 0x3ac   :  { %vm352_vm12 = vmor %vm350_vm11, %vm351_vm10 }
 0x3ad   :  { %v347_v16 = vsub.f32 1.0, %v346_v15  ;;  %v433_v26 = vpop.permute.xlu1 %432 }
 0x3af   :  { %v348_v18 = vmul.f32 %v2655_v14, %v347_v16 }
 0x3b1   :  { %v349_v20 = vadd.f32 %v2655_v14, %v348_v18 }
 0x3b3   :  { %v353_v22 = vsel %vm352_vm12, %v2655_v14, %v349_v20 }
 0x3b4   :  { %v358_v23 = vsel %vm355_vm13, %v357_v21, %v353_v22 }
 0x3b5   :  { %v359_v24 = vmul.f32 %v2651_v58, %v358_v23 }
 0x3b6   :  { %v435_v25 = vpop.permute.xlu0 %434 }
 0x3b7   :  { %2519 = vmatmul.msk.f32.vlgmr.msrb.gmra.mxu2 %vm228_vm5, %v359_v24 }
 0x3b8   :  { %2522 = vmatpush.xpose.msk.msra.mxu2 %vm228_vm5, %v435_v25 }
 0x3bf   :  { %2523 = vmatmul.msk.f32.vlgmr.msra.gmra.mxu2 %vm228_vm5, %v433_v26 }
 0x3e1   :  { %v127_v27 = vpop.xlane.xlu0 %126 }
 0x3e2   :  { %v136_v29 = vmul.f32 %v2988_v9, %v127_v27 }
 0x3e4   :  { %v138_v30 = vsub.f32 %v118_v62, %v136_v29 }
 0x3e6   :  { %v140_v32 = vmul.f32 %v138_v30, %v138_v30 }
 0x3e8   :  { %v144_v35 = vsel %vm121_vm0, %v140_v32, 0.0 }
 0x3e9   :  { %145 = vadd.xlane.f32.xlu1 %v144_v35  ;;  %v3115_v35 = vperm.slane %v3031_v40, 1 }
 0x402   :  { %536 = vrot.lane.b32.xlu1 %v3015_v36, %s3593_s28 }
 0x42c   :  { %v303_v39 = vpop.f32.mrf.mxu2 }
 0x42d   :  { %2521 = vmatmul.msk.f32.vlgmr.msrb.gmra.mxu3 %vm228_vm5, %v303_v39 }
 0x43a   :  { %v383_v42 = vpop.f32.mrf.mxu2 }
 0x43b   :  { %2520 = vmatmul.msk.f32.vlgmr.msrb.gmra.mxu1 %vm228_vm5, %v383_v42 }
 0x442   :  { %v457_v43 = vpop.f32.mrf.mxu2 }
 0x443   :  { %v460_v44 = vmul.f32 0.35355338, %v457_v43 }
 0x445   :  { %v461_v45 = vadd.f32 %v460_v44, %v3034_v41 }
 0x447   :  { %v462_v46 = vsel %vm228_vm5, %v461_v45, -inf }
 0x448   :  { %463 = vmax.xlane.f32.xlu2 %v462_v46 }
 0x45c   :  { %v146_v47 = vpop.xlane.xlu1 %145 }
 0x45d   :  { %v148_v48 = vmul.f32 %v146_v47, %v2988_v9 }
 0x45f   :  { %v150_v49 = vadd.f32 1e-12, %v148_v48 }
 0x460   :  { %538 = vrot.lane.b32.xlu2 %v3015_v36, %s3595_s30 }
 0x461   :  { %2656 = vrsqrt.f32 %v150_v49  ;;  %vm167_vm14 = vweird.f32 %v150_v49 }
 0x467   :  { %v2657_v50 = vpop.eup %2656 }
 0x468   :  { %v162_v51 = vmul.f32 %v2657_v50, %v150_v49  ;;  %vm168_vm15 = vweird.f32 %v2657_v50 }
 0x469   :  { %vm169_vm1 = vmor %vm167_vm14, %vm168_vm15 }
 0x46a   :  { %v163_v52 = vmul.f32 %v2657_v50, %v162_v51 }
 0x46c   :  { %v164_v53 = vmul.f32 0.5, %v163_v52 }
 0x46e   :  { %v165_v54 = vsub.f32 1.5, %v164_v53 }
 0x470   :  { %v166_v55 = vmul.f32 %v2657_v50, %v165_v54 }
 0x472   :  { %v170_v56 = vsel %vm169_vm1, %v2657_v50, %v166_v55 }
 0x473   :  { %v172_v57 = vmul.f32 %v170_v56, %v138_v30 }
 0x474   :  { %v537_v1 = vpop.permute.xlu1 %536 }
 0x475   :  { %v177_v58 = vmul.f32 %v2996_v28, %v172_v57 }
 0x477   :  { %v3077_v59 = vadd.f32 %v3001_v31, %v177_v58 }
 0x479   :  { %2513 = vmatmul.msk.f32.gmra.mxu0 %vm121_vm0, %v3077_v59 }
 0x4b0   :  { %v3110_v30 = vpop.f32.mrf.mxu3 }
 0x4b8   :  { %v3099_v25 = vpop.f32.mrf.mxu1 }
 0x4bb   :  { %v464_v60 = vpop.xlane.xlu2 %463 }
 0x4bc   :  { %v465_v61 = vsub.f32 %v461_v45, %v464_v60 }
 0x4be   :  { %v466_v62 = vmul.f32 1.442695, %v465_v61 }
 0x4c0   :  { %2658 = vpow2.f32 %v466_v62 }
 0x4c3   :  { %v539_v63 = vpop.permute.xlu2 %538 }
 0x4c4   :  { %2526 = vmatpush.xpose.msk.msrb.mxu0 %vm228_vm5, %v539_v63 }
 0x4c6   :  { %v2659_v0 = vpop.eup %2658 }
 0x4c7   :  { %2527 = vmatmul.msk.f32.vlgmr.msrb.gmra.mxu0 %vm228_vm5, %v537_v1  ;;  %v468_v2 = vsel %vm228_vm5, %v2659_v0, 0.0 }
 0x4c8   :  { %469 = vadd.xlane.f32.xlu0 %v468_v2  ;;  %v3134_v2 = vld [vmem:[#allocation6 + $0x18] sm:$0xff] }
 0x4dc   :  { %486 = vrot.lane.b32.xlu0 %v3015_v36, %s2859_s5 }
 0x4f6   :  { %v218_v28 = vpop.f32.mrf.mxu0 }
 0x4f7   :  { %v3087_v31 = vadd.f32 %v3012_v34, %v218_v28 }
 0x4f9   :  { %641 = vrot.lane.b32.xlu0 %v3087_v31, %s2851_s24 }
 0x53b   :  { %v470_v3 = vpop.xlane.xlu0 %469 }
 0x53c   :  { %2660 = vrcp.f32 %v470_v3  ;;  %v482_v10 = vand.u32 2147483648, %v470_v3  ;;  %v480_v13 = vand.u32 2147483647, %v470_v3  ;;  %vm476_vm3 = vweird.f32 %v470_v3 }
 0x53e   :  { %v483_v16 = vor.u32 1.1754944e-38, %v482_v10  ;;  %vm481_vm6 = vcmp.eq.f32.partialorder %v480_v13, 8.507059e+37 }
 0x542   :  { %v2661_v4 = vpop.eup %2660 }
 0x543   :  { %v472_v5 = vmul.f32 %v2661_v4, %v470_v3  ;;  %vm477_vm2 = vweird.f32 %v2661_v4 }
 0x544   :  { %v561_v6 = vpop.f32.mrf.mxu0  ;;  %vm478_vm4 = vmor %vm476_vm3, %vm477_vm2 }
 0x545   :  { %v473_v7 = vsub.f32 1.0, %v472_v5  ;;  %v564_v8 = vmul.f32 0.35355338, %v561_v6 }
 0x547   :  { %v474_v12 = vmul.f32 %v2661_v4, %v473_v7  ;;  %v565_v14 = vadd.f32 %v564_v8, %v3034_v41 }
 0x549   :  { %v475_v34 = vadd.f32 %v2661_v4, %v474_v12  ;;  %v566_v15 = vsel %vm228_vm5, %v565_v14, -inf }
 0x54a   :  { %567 = vmax.xlane.f32.xlu0 %v566_v15 }
 0x54b   :  { %v479_v17 = vsel %vm478_vm4, %v2661_v4, %v475_v34 }
 0x54c   :  { %v484_v18 = vsel %vm481_vm6, %v483_v16, %v479_v17 }
 0x54d   :  { %v485_v19 = vmul.f32 %v2659_v0, %v484_v18 }
 0x54e   :  { %v487_v20 = vpop.permute.xlu0 %486 }
 0x54f   :  { %507 = vmatpush.msra.mxu1 %v487_v20 }
 0x550   :  { %2524 = vmatmul.msk.f32.vlgmr.msra.gmra.mxu1 %vm228_vm5, %v485_v19 }
 0x551   :  { %634 = vmatpush.msrb.mxu1 %v3134_v2 }
 0x55e   :  { %722 = vrot.lane.b32.xlu0 %v3087_v31, %s2852_s2 }
 0x566   :  { %848 = vrot.lane.b32.xlu0 %v3087_v31, %s2856_s29 }
 0x56b   :  { %v642_v21 = vpop.permute.xlu0 %641 }
 0x56c   :  { %2530 = vmatpush.xpose.msk.msrb.mxu3 %vm228_vm5, %v642_v21 }
 0x5bd   :  { %v568_v22 = vpop.xlane.xlu0 %567 }
 0x5be   :  { %v569_v23 = vsub.f32 %v565_v14, %v568_v22 }
 0x5c0   :  { %v570_v24 = vmul.f32 1.442695, %v569_v23  ;;  %v430_v23 = vadd.f32 %v3110_v30, %v3099_v25 }
 0x5c2   :  { %2662 = vpow2.f32 %v570_v24 }
 0x5c8   :  { %v2663_v26 = vpop.eup %2662 }
 0x5c9   :  { %v572_v27 = vsel %vm228_vm5, %v2663_v26, 0.0 }
 0x5ca   :  { %573 = vadd.xlane.f32.xlu1 %v572_v27 }
 0x5cd   :  { %v509_v29 = vpop.f32.mrf.mxu1 }
 0x5ce   :  { %2525 = vmatmul.msk.f32.vlgmr.msra.gmra.mxu3 %vm228_vm5, %v509_v29 }
 0x5cf   :  { %818 = vmatpush.msra.mxu3 %v3065_v38 }
 0x5d0   :  { %v723_v51 = vpop.permute.xlu0 %722 }
 0x5d6   :  { %2531 = vmatmul.msk.f32.vlgmr.msrb.gmra.mxu3 %vm228_vm5, %v3087_v31 }
 0x5d7   :  { %944 = vmatpush.msrb.mxu3 %v223_v11 }
 0x5d8   :  { %v849_v61 = vpop.permute.xlu0 %848 }
 0x5e3   :  { %720 = vrot.lane.b32.xlu1 %v3087_v31, %s2850_s1 }
 0x5eb   :  { %952 = vrot.lane.b32.xlu1 %v3087_v31, %s3595_s30  ;;  %s3613_s30 = smov 104  }
 0x63d   :  { %v574_v40 = vpop.xlane.xlu1 %573 }
 0x63e   :  { %2664 = vrcp.f32 %v574_v40  ;;  %v586_v49 = vand.u32 2147483648, %v574_v40  ;;  %vm580_vm8 = vweird.f32 %v574_v40 }
 0x640   :  { %v587_v54 = vor.u32 1.1754944e-38, %v586_v49 }
 0x644   :  { %v2665_v44 = vpop.eup %2664 }
 0x645   :  { %v576_v45 = vmul.f32 %v2665_v44, %v574_v40  ;;  %vm581_vm7 = vweird.f32 %v2665_v44 }
 0x646   :  { %vm582_vm9 = vmor %vm580_vm8, %vm581_vm7 }
 0x647   :  { %v577_v46 = vsub.f32 1.0, %v576_v45 }
 0x649   :  { %v578_v47 = vmul.f32 %v2665_v44, %v577_v46 }
 0x64b   :  { %v579_v48 = vadd.f32 %v2665_v44, %v578_v47 }
 0x64d   :  { %v583_v53 = vsel %vm582_vm9, %v2665_v44, %v579_v48 }
 0x651   :  { %v3112_v32 = vpop.f32.mrf.mxu3 }
 0x652   :  { %v535_v24 = vadd.f32 %v3112_v32, %v430_v23 }
 0x655   :  { %v721_v0 = vpop.permute.xlu1 %720 }
 0x659   :  { %v664_v39 = vpop.f32.mrf.mxu3 }
 0x65a   :  { %v667_v42 = vmul.f32 0.35355338, %v664_v39 }
 0x65c   :  { %v669_v38 = vadd.f32 %v3115_v35, %v667_v42 }
 0x65d   :  { %v953_v34 = vpop.permute.xlu1 %952 }
 0x65e   :  { %v670_v43 = vsel %vm228_vm5, %v669_v38, -inf }
 0x65f   :  { %671 = vmax.xlane.f32.xlu2 %v670_v43 }
 0x677   :  { %590 = vrot.lane.b32.xlu2 %v3015_v36, %s3591_s22  ;;  %v584_v36 = vand.u32 2147483647, %v574_v40 }
 0x679   :  { %vm585_vm10 = vcmp.eq.f32.partialorder %v584_v36, 8.507059e+37 }
 0x67a   :  { %v588_v56 = vsel %vm585_vm10, %v587_v54, %v583_v53 }
 0x67b   :  { %v589_v58 = vmul.f32 %v2663_v26, %v588_v56  ;;  %v3154_v26 = vld [vmem:[%s3574_s7] ss:$0 sm:$0xff] }
 0x67f   :  { %846 = vrot.lane.b32.xlu2 %v3087_v31, %s2855_s10 }
 0x687   :  { %694 = vrot.lane.b32.xlu2 %v3087_v31, %s3597_s3  ;;  %s3612_s3 = smov 72  }
 0x68f   :  { %950 = vrot.lane.b32.xlu2 %v3087_v31, %s3593_s28 }
 0x6d2   :  { %v672_v50 = vpop.xlane.xlu2 %671 }
 0x6d3   :  { %v673_v52 = vsub.f32 %v669_v38, %v672_v50 }
 0x6d5   :  { %v674_v55 = vmul.f32 1.442695, %v673_v52 }
 0x6d7   :  { %2666 = vpow2.f32 %v674_v55 }
 0x6da   :  { %v591_v57 = vpop.permute.xlu2 %590 }
 0x6db   :  { %611 = vmatpush.msrb.mxu2 %v591_v57 }
 0x6dc   :  { %2528 = vmatmul.msk.f32.vlgmr.msrb.gmra.mxu2 %vm228_vm5, %v589_v58 }
 0x6dd   :  { %v2667_v60 = vpop.eup %2666  ;;  %2533 = vmatpush.xpose.msk.msra.mxu2 %vm228_vm5, %v723_v51 }
 0x6de   :  { %v676_v62 = vsel %vm228_vm5, %v2667_v60, 0.0 }
 0x6df   :  { %677 = vadd.xlane.f32.xlu0 %v676_v62 }
 0x6e1   :  { %2538 = vmatpush.xpose.msk.msrb.mxu2 %vm228_vm5, %v849_v61 }
 0x6e2   :  { %v847_v63 = vpop.permute.xlu2 %846 }
 0x6e4   :  { %2534 = vmatmul.msk.f32.vlgmr.msra.gmra.mxu2 %vm228_vm5, %v721_v0 }
 0x6ea   :  { %v695_v1 = vpop.permute.xlu2 %694 }
 0x6eb   :  { %715 = vmatpush.msra.mxu0 %v695_v1 }
 0x6ec   :  { %2539 = vmatmul.msk.f32.vlgmr.msrb.gmra.mxu2 %vm228_vm5, %v847_v63 }
 0x6ed   :  { %841 = vmatpush.msrb.mxu0 %v3062_v37 }
 0x6f2   :  { %v951_v39 = vpop.permute.xlu2 %950 }
 0x752   :  { %v678_v28 = vpop.xlane.xlu0 %677 }
 0x753   :  { %2668 = vrcp.f32 %v678_v28  ;;  %v690_v6 = vand.u32 2147483648, %v678_v28  ;;  %v688_v8 = vand.u32 2147483647, %v678_v28  ;;  %vm684_vm12 = vweird.f32 %v678_v28 }
 0x755   :  { %v691_v37 = vor.u32 1.1754944e-38, %v690_v6  ;;  %vm689_vm14 = vcmp.eq.f32.partialorder %v688_v8, 8.507059e+37 }
 0x759   :  { %v2669_v3 = vpop.eup %2668 }
 0x75a   :  { %v680_v4 = vmul.f32 %v2669_v3, %v678_v28  ;;  %vm685_vm11 = vweird.f32 %v2669_v3 }
 0x75b   :  { %vm686_vm13 = vmor %vm684_vm12, %vm685_vm11 }
 0x75c   :  { %v681_v5 = vsub.f32 1.0, %v680_v4 }
 0x75e   :  { %v682_v7 = vmul.f32 %v2669_v3, %v681_v5 }
 0x75f   :  { %v613_v10 = vpop.f32.mrf.mxu2 }
 0x760   :  { %v683_v11 = vadd.f32 %v2669_v3, %v682_v7  ;;  %2529 = vmatmul.msk.f32.vlgmr.msrb.gmra.mxu1 %vm228_vm5, %v613_v10 }
 0x762   :  { %v687_v12 = vsel %vm686_vm13, %v2669_v3, %v683_v11 }
 0x763   :  { %v692_v13 = vsel %vm689_vm14, %v691_v37, %v687_v12 }
 0x764   :  { %v693_v14 = vmul.f32 %v2667_v60, %v692_v13 }
 0x766   :  { %2532 = vmatmul.msk.f32.vlgmr.msra.gmra.mxu0 %vm228_vm5, %v693_v14 }
 0x767   :  { %2542 = vmatpush.xpose.msk.msra.mxu0 %vm228_vm5, %v953_v34  ;;  %v745_v15 = vpop.f32.mrf.mxu2 }
 0x768   :  { %v748_v16 = vmul.f32 0.35355338, %v745_v15 }
 0x76a   :  { %v749_v17 = vadd.f32 %v748_v16, %v3115_v35 }
 0x76c   :  { %v750_v18 = vsel %vm228_vm5, %v749_v17, -inf }
 0x76d   :  { %751 = vmax.xlane.f32.xlu1 %v750_v18 }
 0x76f   :  { %v871_v19 = vpop.f32.mrf.mxu2 }
 0x770   :  { %v874_v20 = vmul.f32 0.35355338, %v871_v19 }
 0x772   :  { %v875_v21 = vadd.f32 %v874_v20, %v3115_v35 }
 0x774   :  { %v876_v22 = vsel %vm228_vm5, %v875_v21, -inf }
 0x775   :  { %877 = vmax.xlane.f32.xlu2 %v876_v22 }
 0x786   :  { %900 = vrot.lane.b32.xlu1 %v3087_v31, %s2859_s5 }
 0x78e   :  { %1004 = vrot.lane.b32.xlu1 %v3087_v31, %s3591_s22 }
 0x7dd   :  { %v636_v27 = vpop.f32.mrf.mxu1 }
 0x7de   :  { %v639_v29 = vadd.f32 %v636_v27, %v535_v24 }
 0x7e0   :  { %v1058_v42 = vadd.f32 %v3154_v26, %v639_v29  ;;  %v752_v38 = vpop.xlane.xlu1 %751 }
 0x7e1   :  { %v753_v43 = vsub.f32 %v749_v17, %v752_v38 }
 0x7e2   :  { %v1060_v40 = vadd.f32 %v1058_v42, %v3005_v33 }
 0x7e3   :  { %v754_v44 = vmul.f32 1.442695, %v753_v43  ;;  %v717_v45 = vpop.f32.mrf.mxu0 }
 0x7e4   :  { %2537 = vmatmul.msk.f32.vlgmr.msrb.gmra.mxu0 %vm228_vm5, %v717_v45  ;;  %v1064_v25 = vsel %vm121_vm0, %v1060_v40, 0.0 }
 0x7e5   :  { %2670 = vpow2.f32 %v754_v44  ;;  %1065 = vadd.xlane.f32.xlu2 %v1064_v25  ;;  %v1120_v25 = vld [vmem:[#allocation8 + $0x10] sm:$0xff] }
 0x7e8   :  { %v878_v30 = vpop.xlane.xlu2 %877 }
 0x7e9   :  { %v879_v32 = vsub.f32 %v875_v21, %v878_v30 }
 0x7eb   :  { %v2671_v46 = vpop.eup %2670  ;;  %v880_v47 = vmul.f32 1.442695, %v879_v32  ;;  %v1119_v32 = vld [vmem:[#allocation8 + $0x8] sm:$0xff] }
 0x7ec   :  { %2543 = vmatmul.msk.f32.vlgmr.msra.gmra.mxu0 %vm228_vm5, %v951_v39  ;;  %v756_v48 = vsel %vm228_vm5, %v2671_v46, 0.0 }
 0x7ed   :  { %2672 = vpow2.f32 %v880_v47  ;;  %757 = vadd.xlane.f32.xlu0 %v756_v48  ;;  %v1118_v47 = vld [vmem:[#allocation8] sm:$0xff] }
 0x7f3   :  { %v2673_v49 = vpop.eup %2672 }
 0x7f4   :  { %v882_v33 = vsel %vm228_vm5, %v2673_v49, 0.0 }
 0x7f5   :  { %883 = vadd.xlane.f32.xlu0 %v882_v33 }
 0x7f8   :  { %v901_v36 = vpop.permute.xlu1 %900 }
 0x800   :  { %v1005_v50 = vpop.permute.xlu1 %1004 }
 0x801   :  { %1025 = vmatpush.msra.mxu2 %v1005_v50 }
 0x809   :  { %774 = vrot.lane.b32.xlu0 %v3087_v31, %s2853_s27 }
 0x858   :  { %v1066_v54 = vpop.xlane.xlu2 %1065 }
 0x859   :  { %v1070_v58 = vmul.f32 %v1066_v54, %v2988_v9 }
 0x85b   :  { %v3169_v0 = vsub.f32 %v1060_v40, %v1070_v58  ;;  %v1121_v40 = vld [vmem:[#allocation8 + $0x18] sm:$0xff] }
 0x85d   :  { %v1074_v6 = vmul.f32 %v3169_v0, %v3169_v0 }
 0x85f   :  { %v1076_v37 = vsel %vm121_vm0, %v1074_v6, 0.0  ;;  %v1176_v6 = vld [vmem:[%s3579_s12 + $0x18] sm:$0xff] }
 0x860   :  { %v758_v51 = vpop.xlane.xlu0 %757 }
 0x861   :  { %2674 = vrcp.f32 %v758_v51  ;;  %v3165_v52 = vpop.f32.mrf.mxu0  ;;  %v770_v4 = vand.u32 2147483648, %v758_v51  ;;  %vm764_vm1 = vweird.f32 %v758_v51  ;;  %v768_v7 = vand.u32 2147483647, %v758_v51 }
 0x863   :  { %v771_v11 = vor.u32 1.1754944e-38, %v770_v4  ;;  %vm769_vm3 = vcmp.eq.f32.partialorder %v768_v7, 8.507059e+37  ;;  %v1178_v4 = vld [vmem:[%s3579_s12 + $0x28] sm:$0xff] }
 0x867   :  { %v2675_v53 = vpop.eup %2674 }
 0x868   :  { %v760_v55 = vmul.f32 %v2675_v53, %v758_v51  ;;  %v884_v56 = vpop.xlane.xlu0 %883  ;;  %vm765_vm15 = vweird.f32 %v2675_v53  ;;  %v3192_v51 = vld [vmem:[%s3576_s9] ss:$0 sm:$0xff] }
 0x869   :  { %2676 = vrcp.f32 %v884_v56  ;;  %v975_v57 = vpop.f32.mrf.mxu0  ;;  %vm766_vm2 = vmor %vm764_vm1, %vm765_vm15  ;;  %v896_v14 = vand.u32 2147483648, %v884_v56  ;;  %vm890_vm6 = vweird.f32 %v884_v56  ;;  %v894_v34 = vand.u32 2147483647, %v884_v56 }
 0x86a   :  { %v761_v60 = vsub.f32 1.0, %v760_v55  ;;  %v978_v61 = vmul.f32 0.35355338, %v975_v57  ;;  %vm1185_vm1 = vcmask 523264  }
 0x86b   :  { %v897_v18 = vor.u32 1.1754944e-38, %v896_v14  ;;  %vm895_vm8 = vcmp.eq.f32.partialorder %v894_v34, 8.507059e+37  ;;  %v3225_v14 = vld [vmem:[%s3578_s11] ss:$0 sm:$0xff] }
 0x86c   :  { %v979_v62 = vadd.f32 %v978_v61, %v3115_v35  ;;  %v762_v63 = vmul.f32 %v2675_v53, %v761_v60 }
 0x86e   :  { %v980_v31 = vsel %vm228_vm5, %v979_v62, -inf  ;;  %v763_v3 = vadd.f32 %v2675_v53, %v762_v63 }
 0x86f   :  { %v2677_v1 = vpop.eup %2676  ;;  %981 = vmax.xlane.f32.xlu2 %v980_v31 }
 0x870   :  { %v886_v28 = vmul.f32 %v2677_v1, %v884_v56  ;;  %v767_v8 = vsel %vm766_vm2, %v2675_v53, %v763_v3  ;;  %vm891_vm4 = vweird.f32 %v2677_v1  ;;  %v1179_v3 = vld [vmem:[%s3579_s12 + $0x30] sm:$0xff] }
 0x871   :  { %v772_v12 = vsel %vm769_vm3, %v771_v11, %v767_v8  ;;  %vm892_vm7 = vmor %vm890_vm6, %vm891_vm4  ;;  %v1175_v8 = vld [vmem:[%s3579_s12 + $0x10] sm:$0xff]  ;;  %v1173_v11 = vld [vmem:[%s3579_s12] sm:$0xff] }
 0x872   :  { %v887_v5 = vsub.f32 1.0, %v886_v28  ;;  %v773_v16 = vmul.f32 %v2671_v46, %v772_v12  ;;  %v1180_v28 = vld [vmem:[%s3579_s12 + $0x38] sm:$0xff] }
 0x873   :  { %1200 = vmatpush.msrb.mxu0 %v1180_v28 }
 0x874   :  { %v888_v10 = vmul.f32 %v2677_v1, %v887_v5  ;;  %v1177_v5 = vld [vmem:[%s3579_s12 + $0x20] sm:$0xff] }
 0x875   :  { %1201 = vmatpush.msrb.mxu0 %v1179_v3 }
 0x876   :  { %v889_v13 = vadd.f32 %v2677_v1, %v888_v10  ;;  %v1174_v10 = vld [vmem:[%s3579_s12 + $0x8] sm:$0xff] }
 0x877   :  { %1077 = vadd.xlane.f32.xlu2 %v1076_v37  ;;  %1202 = vmatpush.msrb.mxu0 %v1178_v4 }
 0x878   :  { %v893_v17 = vsel %vm892_vm7, %v2677_v1, %v889_v13 }
 0x879   :  { %v898_v19 = vsel %vm895_vm8, %v897_v18, %v893_v17  ;;  %1203 = vmatpush.msrb.mxu0 %v1177_v5 }
 0x87a   :  { %v899_v20 = vmul.f32 %v2673_v49, %v898_v19  ;;  %v3184_v49 = vld [vmem:[%s3575_s8] ss:$0 sm:$0xff] }
 0x87b   :  { %v775_v15 = vpop.permute.xlu0 %774  ;;  %1204 = vmatpush.msrb.mxu0 %v1176_v6 }
 0x87c   :  { %795 = vmatpush.msra.mxu1 %v775_v15 }
 0x87d   :  { %2535 = vmatmul.msk.f32.vlgmr.msra.gmra.mxu1 %vm228_vm5, %v773_v16  ;;  %1205 = vmatpush.msrb.mxu0 %v1175_v8 }
 0x87e   :  { %921 = vmatpush.msrb.mxu1 %v901_v36 }
 0x87f   :  { %1206 = vmatpush.msrb.mxu0 %v1174_v10 }
 0x880   :  { %1048 = vmatpush.msra.mxu1 %v3134_v2 }
 0x881   :  { %1207 = vmatpush.msrb.mxu0 %v1173_v11 }
 0x885   :  { %2540 = vmatmul.msk.f32.vlgmr.msrb.gmra.mxu1 %vm228_vm5, %v899_v20 }
 0x8e2   :  { %v982_v21 = vpop.xlane.xlu2 %981 }
 0x8e3   :  { %v983_v22 = vsub.f32 %v979_v62, %v982_v21 }
 0x8e5   :  { %v984_v23 = vmul.f32 1.442695, %v983_v22 }
 0x8e7   :  { %2678 = vpow2.f32 %v984_v23 }
 0x8ea   :  { %v1078_v24 = vpop.xlane.xlu2 %1077 }
 0x8eb   :  { %v1082_v27 = vmul.f32 %v1078_v24, %v2988_v9 }
 0x8ed   :  { %v2679_v29 = vpop.eup %2678  ;;  %v1084_v39 = vadd.f32 1e-12, %v1082_v27  ;;  %v3233_v27 = vld [vmem:[%s3580_s13] ss:$0 sm:$0xff] }
 0x8ee   :  { %v986_v42 = vsel %vm228_vm5, %v2679_v29, 0.0 }
 0x8ef   :  { %2680 = vrsqrt.f32 %v1084_v39  ;;  %987 = vadd.xlane.f32.xlu0 %v986_v42  ;;  %vm1092_vm10 = vweird.f32 %v1084_v39 }
 0x8f5   :  { %v2681_v38 = vpop.eup %2680 }
 0x8f6   :  { %v1087_v43 = vmul.f32 %v2681_v38, %v1084_v39  ;;  %vm1093_vm9 = vweird.f32 %v2681_v38 }
 0x8f7   :  { %vm1094_vm11 = vmor %vm1092_vm10, %vm1093_vm9 }
 0x8f8   :  { %v1088_v2 = vmul.f32 %v2681_v38, %v1087_v43 }
 0x8fa   :  { %v1089_v44 = vmul.f32 0.5, %v1088_v2  ;;  %v797_v45 = vpop.f32.mrf.mxu1 }
 0x8fb   :  { %2536 = vmatmul.msk.f32.vlgmr.msra.gmra.mxu3 %vm228_vm5, %v797_v45 }
 0x8fc   :  { %v1090_v30 = vsub.f32 1.5, %v1089_v44  ;;  %1144 = vmatpush.msra.mxu3 %v1121_v40 }
 0x8fe   :  { %v1091_v46 = vmul.f32 %v2681_v38, %v1090_v30  ;;  %1145 = vmatpush.msra.mxu3 %v1120_v25 }
 0x900   :  { %v1095_v48 = vsel %vm1094_vm11, %v2681_v38, %v1091_v46  ;;  %1146 = vmatpush.msra.mxu3 %v1119_v32 }
 0x901   :  { %v1106_v33 = vmul.f32 %v1095_v48, %v3169_v0 }
 0x902   :  { %v923_v36 = vpop.f32.mrf.mxu1  ;;  %1147 = vmatpush.msra.mxu3 %v1118_v47 }
 0x903   :  { %2541 = vmatmul.msk.f32.vlgmr.msrb.gmra.mxu3 %vm228_vm5, %v923_v36  ;;  %v1111_v50 = vmul.f32 %v3184_v49, %v1106_v33 }
 0x905   :  { %v1116_v53 = vadd.f32 %v3192_v51, %v1111_v50 }
 0x90b   :  { %2546 = vmatmul.msk.f32.vlgmr.msra.gmra.mxu3 %vm121_vm0, %v1116_v53 }
 0x962   :  { %v988_v54 = vpop.xlane.xlu0 %987 }
 0x963   :  { %2682 = vrcp.f32 %v988_v54  ;;  %v1000_v58 = vand.u32 2147483648, %v988_v54  ;;  %v998_v61 = vand.u32 2147483647, %v988_v54  ;;  %vm994_vm13 = vweird.f32 %v988_v54 }
 0x965   :  { %v1001_v63 = vor.u32 1.1754944e-38, %v1000_v58  ;;  %vm999_vm15 = vcmp.eq.f32.partialorder %v998_v61, 8.507059e+37 }
 0x969   :  { %v2683_v55 = vpop.eup %2682 }
 0x96a   :  { %v990_v56 = vmul.f32 %v2683_v55, %v988_v54  ;;  %vm995_vm12 = vweird.f32 %v2683_v55  ;;  %v1276_v54 = vld [vmem:[#allocation3 + $0x30] sm:$0xff] }
 0x96b   :  { %vm996_vm14 = vmor %vm994_vm13, %vm995_vm12 }
 0x96c   :  { %v991_v57 = vsub.f32 1.0, %v990_v56  ;;  %v1275_v56 = vld [vmem:[#allocation3 + $0x28] sm:$0xff] }
 0x96e   :  { %v992_v60 = vmul.f32 %v2683_v55, %v991_v57  ;;  %v1274_v57 = vld [vmem:[#allocation3 + $0x20] sm:$0xff] }
 0x970   :  { %v993_v62 = vadd.f32 %v2683_v55, %v992_v60 }
 0x972   :  { %v997_v0 = vsel %vm996_vm14, %v2683_v55, %v993_v62 }
 0x973   :  { %v1002_v31 = vsel %vm999_vm15, %v1001_v63, %v997_v0 }
 0x974   :  { %v1003_v1 = vmul.f32 %v2679_v29, %v1002_v31 }
 0x976   :  { %2544 = vmatmul.msk.f32.vlgmr.msra.gmra.mxu2 %vm228_vm5, %v1003_v1 }
 0x97e   :  { %v820_v7 = vpop.f32.mrf.mxu3 }
 0x97f   :  { %v844_v37 = vadd.f32 %v3165_v52, %v820_v7 }
 0x986   :  { %v946_v12 = vpop.f32.mrf.mxu3 }
 0x987   :  { %v949_v13 = vadd.f32 %v946_v12, %v844_v37 }
 0x98e   :  { %v1149_v34 = vpop.f32.mrf.mxu3 }
 0x98f   :  { %v1150_v15 = vadd.f32 %v3225_v14, %v1149_v34  ;;  %v3251_v34 = vld [vmem:[%s3581_s14] ss:$0 sm:$0xff] }
 0x991   :  { %v1157_v16 = vmul.f32 0.044715, %v1150_v15  ;;  %v1155_v22 = vmul.f32 0.5, %v1150_v15 }
 0x993   :  { %v1159_v17 = vmul.f32 %v1157_v16, %v1150_v15 }
 0x995   :  { %v1161_v18 = vmul.f32 %v1159_v17, %v1150_v15 }
 0x997   :  { %v1163_v19 = vadd.f32 %v1161_v18, %v1150_v15 }
 0x999   :  { %v1165_v20 = vmul.f32 0.7978846, %v1163_v19 }
 0x99b   :  { %2684 = vtanh.f32 %v1165_v20 }
 0x9a1   :  { %v2685_v21 = vpop.eup %2684 }
 0x9a2   :  { %v1169_v52 = vadd.f32 1.0, %v2685_v21  ;;  %v3269_v21 = vld [vmem:[%s3609_s19 + $0x1] ss:$0 sm:$0xff]  ;;  %s3611_s19 = smov 64  }
 0x9a4   :  { %v1171_v23 = vmul.f32 %v1169_v52, %v1155_v22 }
 0x9a6   :  { %2548 = vmatmul.msk.f32.vlgmr.msrb.gmra.mxu0 %vm1185_vm1, %v1171_v23 }
 0x9f9   :  { %v1027_v24 = vpop.f32.mrf.mxu2 }
 0x9fa   :  { %2545 = vmatmul.msk.f32.vlgmr.msra.gmra.mxu1 %vm228_vm5, %v1027_v24 }
 0xa23   :  { %v1209_v29 = vpop.f32.mrf.mxu0 }
 0xa24   :  { %v1210_v39 = vadd.f32 %v3233_v27, %v1209_v29 }
 0xa26   :  { %v1215_v42 = vadd.f32 %v1210_v39, %v1116_v53 }
 0xa28   :  { %v1219_v38 = vsel %vm121_vm0, %v1215_v42, 0.0 }
 0xa29   :  { %1220 = vadd.xlane.f32.xlu1 %v1219_v38 }
 0xa77   :  { %v1050_v43 = vpop.f32.mrf.mxu1 }
 0xa78   :  { %v1053_v2 = vadd.f32 %v1050_v43, %v949_v13 }
 0xa7a   :  { %v1059_v40 = vadd.f32 %v3154_v26, %v1053_v2 }
 0xa7c   :  { %v1061_v44 = vadd.f32 %v1059_v40, %v3077_v59  ;;  %v1277_v59 = vld [vmem:[#allocation3 + $0x38] sm:$0xff] }
 0xa7d   :  { %1301 = vmatpush.msrb.mxu2 %v1277_v59 }
 0xa7e   :  { %v1067_v45 = vsel %vm121_vm0, %v1061_v44, 0.0 }
 0xa7f   :  { %1068 = vadd.xlane.f32.xlu2 %v1067_v45  ;;  %1302 = vmatpush.msrb.mxu2 %v1276_v54 }
 0xa81   :  { %1303 = vmatpush.msrb.mxu2 %v1275_v56 }
 0xa83   :  { %1304 = vmatpush.msrb.mxu2 %v1274_v57 }
 0xa9c   :  { %v1221_v25 = vpop.xlane.xlu1 %1220 }
 0xa9d   :  { %v1225_v46 = vmul.f32 %v1221_v25, %v2988_v9 }
 0xa9f   :  { %v1227_v33 = vsub.f32 %v1215_v42, %v1225_v46 }
 0xaa1   :  { %v1229_v50 = vmul.f32 %v1227_v33, %v1227_v33 }
 0xaa3   :  { %v1231_v26 = vsel %vm121_vm0, %v1229_v50, 0.0 }
 0xaf2   :  { %v1069_v30 = vpop.xlane.xlu2 %1068 }
 0xaf3   :  { %v1071_v32 = vmul.f32 %v1069_v30, %v2988_v9 }
 0xaf5   :  { %v1073_v47 = vsub.f32 %v1061_v44, %v1071_v32 }
 0xaf7   :  { %v1075_v48 = vmul.f32 %v1073_v47, %v1073_v47 }
 0xaf9   :  { %v1079_v36 = vsel %vm121_vm0, %v1075_v48, 0.0 }
 0xafa   :  { %1080 = vadd.xlane.f32.xlu2 %v1079_v36 }
 0xb02   :  { %1232 = vadd.xlane.f32.xlu2 %v1231_v26 }
 0xb6d   :  { %v1081_v53 = vpop.xlane.xlu2 %1080 }
 0xb6e   :  { %v1083_v55 = vmul.f32 %v1081_v53, %v2988_v9 }
 0xb70   :  { %v1085_v58 = vadd.f32 1e-12, %v1083_v55 }
 0xb72   :  { %2686 = vrsqrt.f32 %v1085_v58  ;;  %vm1102_vm3 = vweird.f32 %v1085_v58 }
 0xb75   :  { %v1233_v60 = vpop.xlane.xlu2 %1232 }
 0xb76   :  { %v1237_v61 = vmul.f32 %v1233_v60, %v2988_v9 }
 0xb78   :  { %v2687_v62 = vpop.eup %2686  ;;  %v1239_v63 = vadd.f32 1e-12, %v1237_v61 }
 0xb79   :  { %v1097_v0 = vmul.f32 %v2687_v62, %v1085_v58  ;;  %vm1103_vm2 = vweird.f32 %v2687_v62 }
 0xb7a   :  { %2688 = vrsqrt.f32 %v1239_v63  ;;  %vm1104_vm4 = vmor %vm1102_vm3, %vm1103_vm2  ;;  %vm1247_vm7 = vweird.f32 %v1239_v63 }
 0xb7b   :  { %v1098_v31 = vmul.f32 %v2687_v62, %v1097_v0 }
 0xb7d   :  { %v1099_v1 = vmul.f32 0.5, %v1098_v31 }
 0xb7f   :  { %v1100_v28 = vsub.f32 1.5, %v1099_v1 }
 0xb80   :  { %v2689_v3 = vpop.eup %2688 }
 0xb81   :  { %v1101_v4 = vmul.f32 %v2687_v62, %v1100_v28  ;;  %v1242_v5 = vmul.f32 %v2689_v3, %v1239_v63  ;;  %vm1248_vm6 = vweird.f32 %v2689_v3 }
 0xb82   :  { %vm1249_vm8 = vmor %vm1247_vm7, %vm1248_vm6 }
 0xb83   :  { %v1105_v6 = vsel %vm1104_vm4, %v2687_v62, %v1101_v4  ;;  %v1243_v7 = vmul.f32 %v2689_v3, %v1242_v5 }
 0xb84   :  { %v1107_v8 = vmul.f32 %v1105_v6, %v1073_v47 }
 0xb85   :  { %v1244_v10 = vmul.f32 0.5, %v1243_v7 }
 0xb86   :  { %v1112_v11 = vmul.f32 %v3184_v49, %v1107_v8  ;;  %v3257_v49 = vld [vmem:[%s3582_s15] ss:$0 sm:$0xff] }
 0xb87   :  { %v1245_v37 = vsub.f32 1.5, %v1244_v10 }
 0xb88   :  { %v1117_v12 = vadd.f32 %v3192_v51, %v1112_v11 }
 0xb89   :  { %v1246_v13 = vmul.f32 %v2689_v3, %v1245_v37 }
 0xb8a   :  { %2547 = vmatmul.msk.f32.gmra.mxu3 %vm121_vm0, %v1117_v12 }
 0xb8b   :  { %v1250_v15 = vsel %vm1249_vm8, %v2689_v3, %v1246_v13 }
 0xb8c   :  { %v1261_v16 = vmul.f32 %v1250_v15, %v1227_v33 }
 0xb8e   :  { %v1266_v17 = vmul.f32 %v3251_v34, %v1261_v16 }
 0xb90   :  { %v3261_v51 = vadd.f32 %v3257_v49, %v1266_v17 }
 0xb92   :  { %2551 = vmatmul.msk.f32.vlgmr.msrb.gmra.mxu2 %vm121_vm0, %v3261_v51 }
 0xc0d   :  { %v1152_v18 = vpop.f32.mrf.mxu3 }
 0xc0e   :  { %v1153_v19 = vadd.f32 %v3225_v14, %v1152_v18 }
 0xc10   :  { %v1158_v20 = vmul.f32 0.044715, %v1153_v19  ;;  %v1156_v42 = vmul.f32 0.5, %v1153_v19 }
 0xc12   :  { %v1160_v22 = vmul.f32 %v1158_v20, %v1153_v19 }
 0xc14   :  { %v1162_v52 = vmul.f32 %v1160_v22, %v1153_v19 }
 0xc15   :  { %v1306_v23 = vpop.f32.mrf.mxu2 }
 0xc16   :  { %v3272_v24 = vadd.f32 %v3269_v21, %v1306_v23  ;;  %v1164_v29 = vadd.f32 %v1162_v52, %v1153_v19 }
 0xc18   :  { %1522 = vrot.lane.b32.xlu1 %v3272_v24, %s2855_s10  ;;  %1396 = vrot.lane.b32.xlu0 %v3272_v24, %s2850_s1  ;;  %v1166_v14 = vmul.f32 0.7978846, %v1164_v29 }
 0xc19   :  { %1398 = vrot.lane.b32.xlu2 %v3272_v24, %s2852_s2 }
 0xc1a   :  { %2690 = vtanh.f32 %v1166_v14 }
 0xc20   :  { %v2691_v39 = vpop.eup %2690  ;;  %1318 = vrot.lane.b32.xlu0 %v3272_v24, %s2851_s24 }
 0xc21   :  { %1524 = vrot.lane.b32.xlu2 %v3272_v24, %s2856_s29  ;;  %v1170_v38 = vadd.f32 1.0, %v2691_v39 }
 0xc23   :  { %v1172_v43 = vmul.f32 %v1170_v38, %v1156_v42  ;;  %v3329_v38 = vld [vmem:[#allocation6 + $0x20] sm:$0xff] }
 0xc25   :  { %2549 = vmatmul.msk.f32.gmra.mxu0 %vm1185_vm1, %v1172_v43 }
 0xc73   :  { %v1399_v2 = vpop.permute.xlu2 %1398 }
 0xc74   :  { %2556 = vmatpush.xpose.msk.msrb.mxu3 %vm228_vm5, %v1399_v2 }
 0xc78   :  { %1517 = vmatpush.msra.mxu3 %v3329_v38 }
 0xc7b   :  { %v1525_v40 = vpop.permute.xlu2 %1524 }
 0xc7c   :  { %2561 = vmatpush.xpose.msk.msra.mxu0 %vm228_vm5, %v1525_v40 }
 0xc8a   :  { %v1523_v44 = vpop.permute.xlu1 %1522  ;;  %v1397_v45 = vpop.permute.xlu0 %1396 }
 0xc8b   :  { %2557 = vmatmul.msk.f32.vlgmr.msrb.gmra.mxu3 %vm228_vm5, %v1397_v45  ;;  %2562 = vmatmul.msk.f32.vlgmr.msra.gmra.mxu0 %vm228_vm5, %v1523_v44 }
 0xc92   :  { %v1319_v25 = vpop.permute.xlu0 %1318 }
 0xc93   :  { %2553 = vmatpush.xpose.msk.msrb.mxu1 %vm228_vm5, %v1319_v25 }
 0xc96   :  { %2554 = vmatmul.msk.f32.vlgmr.msrb.gmra.mxu1 %vm228_vm5, %v3272_v24 }
 0xca2   :  { %v1212_v30 = vpop.f32.mrf.mxu0 }
 0xca3   :  { %v1213_v32 = vadd.f32 %v3233_v27, %v1212_v30 }
 0xca5   :  { %v1216_v46 = vadd.f32 %v1213_v32, %v1117_v12 }
 0xca7   :  { %v1222_v47 = vsel %vm121_vm0, %v1216_v46, 0.0 }
 0xca8   :  { %1223 = vadd.xlane.f32.xlu2 %v1222_v47 }
 0xd08   :  { %v1547_v48 = vpop.f32.mrf.mxu0 }
 0xd09   :  { %v1550_v33 = vmul.f32 0.35355338, %v1547_v48 }
 0xd0b   :  { %v1551_v36 = vadd.f32 %v1550_v33, %v3034_v41 }
 0xd0d   :  { %v1552_v50 = vsel %vm228_vm5, %v1551_v36, -inf }
 0xd0e   :  { %v1421_v26 = vpop.f32.mrf.mxu3  ;;  %1553 = vmax.xlane.f32.xlu1 %v1552_v50 }
 0xd0f   :  { %v1424_v59 = vmul.f32 0.35355338, %v1421_v26 }
 0xd11   :  { %v1425_v53 = vadd.f32 %v1424_v59, %v3034_v41 }
 0xd13   :  { %v1341_v54 = vpop.f32.mrf.mxu1  ;;  %v1426_v55 = vsel %vm228_vm5, %v1425_v53, -inf }
 0xd14   :  { %v1344_v56 = vmul.f32 0.35355338, %v1341_v54  ;;  %1427 = vmax.xlane.f32.xlu0 %v1426_v55 }
 0xd16   :  { %v1345_v27 = vadd.f32 %v1344_v56, %v3034_v41 }
 0xd18   :  { %v1346_v57 = vsel %vm228_vm5, %v1345_v27, -inf }
 0xd19   :  { %1347 = vmax.xlane.f32.xlu1 %v1346_v57 }
 0xd1b   :  { %v1224_v58 = vpop.xlane.xlu2 %1223 }
 0xd1c   :  { %v1226_v60 = vmul.f32 %v1224_v58, %v2988_v9 }
 0xd1e   :  { %v1228_v61 = vsub.f32 %v1216_v46, %v1226_v60 }
 0xd20   :  { %v1230_v62 = vmul.f32 %v1228_v61, %v1228_v61 }
 0xd22   :  { %v1234_v63 = vsel %vm121_vm0, %v1230_v62, 0.0 }
 0xd23   :  { %1235 = vadd.xlane.f32.xlu2 %v1234_v63 }
 0xd81   :  { %v1554_v0 = vpop.xlane.xlu1 %1553 }
 0xd82   :  { %v1555_v31 = vsub.f32 %v1551_v36, %v1554_v0 }
 0xd84   :  { %v1556_v1 = vmul.f32 1.442695, %v1555_v31 }
 0xd86   :  { %2692 = vpow2.f32 %v1556_v1 }
 0xd87   :  { %v1428_v28 = vpop.xlane.xlu0 %1427 }
 0xd88   :  { %v1429_v3 = vsub.f32 %v1425_v53, %v1428_v28 }
 0xd8a   :  { %v1430_v4 = vmul.f32 1.442695, %v1429_v3 }
 0xd8c   :  { %v3302_v5 = vpop.eup %2692  ;;  %2694 = vpow2.f32 %v1430_v4  ;;  %v1348_v6 = vpop.xlane.xlu1 %1347 }
 0xd8d   :  { %v1349_v7 = vsub.f32 %v1345_v27, %v1348_v6  ;;  %v1558_v8 = vsel %vm228_vm5, %v3302_v5, 0.0 }
 0xd8e   :  { %1559 = vadd.xlane.f32.xlu0 %v1558_v8 }
 0xd8f   :  { %v1350_v10 = vmul.f32 1.442695, %v1349_v7 }
 0xd91   :  { %2696 = vpow2.f32 %v1350_v10 }
 0xd92   :  { %v3306_v11 = vpop.eup %2694 }
 0xd93   :  { %v1432_v37 = vsel %vm228_vm5, %v3306_v11, 0.0 }
 0xd94   :  { %1433 = vadd.xlane.f32.xlu2 %v1432_v37 }
 0xd96   :  { %v1236_v12 = vpop.xlane.xlu2 %1235 }
 0xd97   :  { %v3310_v13 = vpop.eup %2696  ;;  %v1238_v15 = vmul.f32 %v1236_v12, %v2988_v9 }
 0xd98   :  { %v1352_v16 = vsel %vm228_vm5, %v3310_v13, 0.0 }
 0xd99   :  { %v1240_v17 = vadd.f32 1e-12, %v1238_v15  ;;  %1353 = vadd.xlane.f32.xlu1 %v1352_v16  ;;  %v1315_v15 = vld [vmem:[#allocation6 + $0x30] sm:$0xff] }
 0xd9b   :  { %2698 = vrsqrt.f32 %v1240_v17  ;;  %vm1257_vm10 = vweird.f32 %v1240_v17 }
 0xda1   :  { %v2699_v18 = vpop.eup %2698 }
 0xda2   :  { %v1252_v19 = vmul.f32 %v2699_v18, %v1240_v17  ;;  %1576 = vrot.lane.b32.xlu0 %v3272_v24, %s2859_s5  ;;  %vm1258_vm9 = vweird.f32 %v2699_v18 }
 0xda3   :  { %vm1259_vm11 = vmor %vm1257_vm10, %vm1258_vm9 }
 0xda4   :  { %v1253_v20 = vmul.f32 %v2699_v18, %v1252_v19 }
 0xda6   :  { %v1254_v22 = vmul.f32 0.5, %v1253_v20 }
 0xda8   :  { %v1255_v52 = vsub.f32 1.5, %v1254_v22 }
 0xdaa   :  { %v1256_v23 = vmul.f32 %v2699_v18, %v1255_v52 }
 0xdac   :  { %v1260_v29 = vsel %vm1259_vm11, %v2699_v18, %v1256_v23  ;;  %1450 = vrot.lane.b32.xlu2 %v3272_v24, %s2853_s27 }
 0xdad   :  { %v1262_v14 = vmul.f32 %v1260_v29, %v1228_v61 }
 0xdaf   :  { %v1267_v39 = vmul.f32 %v3251_v34, %v1262_v14 }
 0xdb1   :  { %v3321_v42 = vadd.f32 %v3257_v49, %v1267_v39 }
 0xdb2   :  { %1370 = vrot.lane.b32.xlu1 %v3272_v24, %s3611_s19 }
 0xdb3   :  { %2552 = vmatmul.msk.f32.gmra.mxu2 %vm121_vm0, %v3321_v42 }
 0xdb4   :  { %1628 = vrot.lane.b32.xlu2 %v3272_v24, %s3612_s3 }
 0xe01   :  { %v1560_v43 = vpop.xlane.xlu0 %1559 }
 0xe02   :  { %2700 = vrcp.f32 %v1560_v43  ;;  %v1572_v57 = vand.u32 2147483648, %v1560_v43  ;;  %vm1566_vm3 = vweird.f32 %v1560_v43  ;;  %v1570_v61 = vand.u32 2147483647, %v1560_v43 }
 0xe04   :  { %v1573_v1 = vor.u32 1.1754944e-38, %v1572_v57  ;;  %vm1571_vm8 = vcmp.eq.f32.partialorder %v1570_v61, 8.507059e+37 }
 0xe07   :  { %v1434_v2 = vpop.xlane.xlu2 %1433 }
 0xe08   :  { %v2701_v34 = vpop.eup %2700  ;;  %2702 = vrcp.f32 %v1434_v2  ;;  %v1446_v46 = vand.u32 2147483648, %v1434_v2  ;;  %v1444_v36 = vand.u32 2147483647, %v1434_v2  ;;  %vm1440_vm13 = vweird.f32 %v1434_v2 }
 0xe09   :  { %v1562_v49 = vmul.f32 %v2701_v34, %v1560_v43  ;;  %vm1567_vm15 = vweird.f32 %v2701_v34 }
 0xe0a   :  { %v1447_v53 = vor.u32 1.1754944e-38, %v1446_v46  ;;  %vm1445_vm2 = vcmp.eq.f32.partialorder %v1444_v36, 8.507059e+37  ;;  %vm1568_vm4 = vmor %vm1566_vm3, %vm1567_vm15 }
 0xe0b   :  { %v1563_v45 = vsub.f32 1.0, %v1562_v49 }
 0xe0c   :  { %v1354_v40 = vpop.xlane.xlu1 %1353 }
 0xe0d   :  { %2704 = vrcp.f32 %v1354_v40  ;;  %v1564_v48 = vmul.f32 %v2701_v34, %v1563_v45  ;;  %v1366_v31 = vand.u32 2147483648, %v1354_v40  ;;  %vm1360_vm7 = vweird.f32 %v1354_v40 }
 0xe0e   :  { %v2703_v44 = vpop.eup %2702  ;;  %v1364_v28 = vand.u32 2147483647, %v1354_v40 }
 0xe0f   :  { %v1436_v25 = vmul.f32 %v2703_v44, %v1434_v2  ;;  %v1451_v30 = vpop.permute.xlu2 %1450  ;;  %vm1441_vm12 = vweird.f32 %v2703_v44  ;;  %v1565_v55 = vadd.f32 %v2701_v34, %v1564_v48  ;;  %v1367_v6 = vor.u32 1.1754944e-38, %v1366_v31 }
 0xe10   :  { %1471 = vmatpush.msra.mxu2 %v1451_v30  ;;  %vm1442_vm14 = vmor %vm1440_vm13, %vm1441_vm12  ;;  %vm1365_vm10 = vcmp.eq.f32.partialorder %v1364_v28, 8.507059e+37 }
 0xe11   :  { %v1437_v32 = vsub.f32 1.0, %v1436_v25  ;;  %v1569_v0 = vsel %vm1568_vm4, %v2701_v34, %v1565_v55 }
 0xe12   :  { %v1574_v3 = vsel %vm1571_vm8, %v1573_v1, %v1569_v0 }
 0xe13   :  { %v2705_v47 = vpop.eup %2704  ;;  %v1438_v33 = vmul.f32 %v2703_v44, %v1437_v32  ;;  %v1575_v8 = vmul.f32 %v3302_v5, %v1574_v3  ;;  %v1314_v5 = vld [vmem:[#allocation6 + $0x28] sm:$0xff] }
 0xe14   :  { %v1356_v50 = vmul.f32 %v2705_v47, %v1354_v40  ;;  %v1577_v26 = vpop.permute.xlu0 %1576  ;;  %vm1361_vm6 = vweird.f32 %v2705_v47 }
 0xe15   :  { %v1439_v59 = vadd.f32 %v2703_v44, %v1438_v33  ;;  %1597 = vmatpush.msrb.mxu2 %v1577_v26  ;;  %vm1362_vm9 = vmor %vm1360_vm7, %vm1361_vm6 }
 0xe16   :  { %v1357_v54 = vsub.f32 1.0, %v1356_v50 }
 0xe17   :  { %v1443_v56 = vsel %vm1442_vm14, %v2703_v44, %v1439_v59  ;;  %v1629_v27 = vpop.permute.xlu2 %1628 }
 0xe18   :  { %v1448_v58 = vsel %vm1445_vm2, %v1447_v53, %v1443_v56  ;;  %v1358_v60 = vmul.f32 %v2705_v47, %v1357_v54  ;;  %2565 = vmatpush.xpose.msk.msrb.mxu3 %vm228_vm5, %v1629_v27 }
 0xe19   :  { %v1449_v62 = vmul.f32 %v3306_v11, %v1448_v58 }
 0xe1a   :  { %v1359_v63 = vadd.f32 %v2705_v47, %v1358_v60 }
 0xe1b   :  { %2558 = vmatmul.msk.f32.vlgmr.msra.gmra.mxu2 %vm228_vm5, %v1449_v62 }
 0xe1c   :  { %v1363_v4 = vsel %vm1362_vm9, %v2705_v47, %v1359_v63 }
 0xe1d   :  { %v1368_v7 = vsel %vm1365_vm10, %v1367_v6, %v1363_v4 }
 0xe1e   :  { %v1369_v11 = vmul.f32 %v3310_v13, %v1368_v7 }
 0xe23   :  { %2563 = vmatmul.msk.f32.vlgmr.msrb.gmra.mxu2 %vm228_vm5, %v1575_v8 }
 0xe24   :  { %v1371_v10 = vpop.permute.xlu1 %1370 }
 0xe25   :  { %1391 = vmatpush.msra.mxu1 %v1371_v10 }
 0xe26   :  { %2555 = vmatmul.msk.f32.vlgmr.msra.gmra.mxu1 %vm228_vm5, %v1369_v11 }
 0xe27   :  { %1494 = vmatpush.msrb.mxu1 %v1314_v5 }
 0xe29   :  { %1620 = vmatpush.msra.mxu1 %v1315_v15 }
 0xe36   :  { %v1309_v37 = vpop.f32.mrf.mxu2 }
 0xe37   :  { %v3340_v12 = vadd.f32 %v3269_v21, %v1309_v37 }
 0xe39   :  { %1783 = vrot.lane.b32.xlu1 %v3340_v12, %s3611_s19  ;;  %1731 = vrot.lane.b32.xlu0 %v3340_v12, %s2851_s24  ;;  %s3614_s24 = smov 40  }
 0xe41   :  { %1626 = vrot.lane.b32.xlu0 %v3272_v24, %s3613_s30 }
 0xe9e   :  { %v1473_v13 = vpop.f32.mrf.mxu2 }
 0xe9f   :  { %2559 = vmatmul.msk.f32.vlgmr.msrb.gmra.mxu1 %vm228_vm5, %v1473_v13 }
 0xea3   :  { %v1393_v16 = vpop.f32.mrf.mxu1 }
 0xea4   :  { %2560 = vmatmul.msk.f32.vlgmr.msra.gmra.mxu3 %vm228_vm5, %v1393_v16  ;;  %v3385_v16 = vld [vmem:[#allocation6 + $0x38] sm:$0xff] }
 0xea5   :  { %1724 = vmatpush.msra.mxu2 %v3385_v16 }
 0xea6   :  { %v1599_v21 = vpop.f32.mrf.mxu2 }
 0xea7   :  { %2564 = vmatmul.msk.f32.vlgmr.msra.gmra.mxu1 %vm228_vm5, %v1599_v21 }
 0xeab   :  { %v1784_v17 = vpop.permute.xlu1 %1783  ;;  %v1732_v18 = vpop.permute.xlu0 %1731 }
 0xeac   :  { %2569 = vmatpush.xpose.msk.msrb.mxu1 %vm228_vm5, %v1732_v18  ;;  %1804 = vmatpush.msra.mxu3 %v1784_v17 }
 0xeaf   :  { %2570 = vmatmul.msk.f32.vlgmr.msrb.gmra.mxu1 %vm228_vm5, %v3340_v12 }
 0xeb0   :  { %1907 = vmatpush.msra.mxu1 %v1314_v5 }
 0xeb2   :  { %2033 = vmatpush.msrb.mxu1 %v1315_v15 }
 0xeb3   :  { %v1627_v19 = vpop.permute.xlu0 %1626 }
 0xeb4   :  { %2566 = vmatmul.msk.f32.vlgmr.msrb.gmra.mxu3 %vm228_vm5, %v1627_v19 }
 0xeb5   :  { %1930 = vmatpush.msrb.mxu3 %v3329_v38 }
 0xf1c   :  { %v1496_v20 = vpop.f32.mrf.mxu1 }
 0xf24   :  { %v1622_v22 = vpop.f32.mrf.mxu1 }
 0xf27   :  { %v1519_v52 = vpop.f32.mrf.mxu3 }
 0xf28   :  { %v1520_v23 = vadd.f32 %v1519_v52, %v1496_v20 }
 0xf2a   :  { %v3356_v29 = vadd.f32 %v1622_v22, %v1520_v23 }
 0xf2c   :  { %v1754_v14 = vpop.f32.mrf.mxu1 }
 0xf2d   :  { %v1757_v39 = vmul.f32 0.35355338, %v1754_v14 }
 0xf2f   :  { %v1758_v43 = vadd.f32 %v1757_v39, %v3115_v35 }
 0xf31   :  { %v1759_v2 = vsel %vm228_vm5, %v1758_v43, -inf }
 0xf32   :  { %1760 = vmax.xlane.f32.xlu2 %v1759_v2 }
 0xf37   :  { %v1651_v34 = vpop.f32.mrf.mxu3 }
 0xf38   :  { %v1654_v49 = vmul.f32 0.35355338, %v1651_v34 }
 0xf3a   :  { %v1655_v40 = vadd.f32 %v1654_v49, %v3034_v41 }
 0xf3c   :  { %v1656_v44 = vsel %vm228_vm5, %v1655_v40, -inf }
 0xf3d   :  { %1657 = vmax.xlane.f32.xlu1 %v1656_v44 }
 0xf56   :  { %1809 = vrot.lane.b32.xlu1 %v3340_v12, %s2850_s1 }
 0xfa5   :  { %v1761_v38 = vpop.xlane.xlu2 %1760 }
 0xfa6   :  { %v1762_v45 = vsub.f32 %v1758_v43, %v1761_v38 }
 0xfa8   :  { %v1763_v25 = vmul.f32 1.442695, %v1762_v45 }
 0xfaa   :  { %2706 = vpow2.f32 %v1763_v25 }
 0xfb0   :  { %v2707_v30 = vpop.eup %2706  ;;  %v1658_v32 = vpop.xlane.xlu1 %1657 }
 0xfb1   :  { %v1659_v46 = vsub.f32 %v1655_v40, %v1658_v32  ;;  %v1765_v47 = vsel %vm228_vm5, %v2707_v30, 0.0 }
 0xfb2   :  { %1766 = vadd.xlane.f32.xlu0 %v1765_v47 }
 0xfb3   :  { %v1660_v48 = vmul.f32 1.442695, %v1659_v46 }
 0xfb5   :  { %2708 = vpow2.f32 %v1660_v48 }
 0xfbb   :  { %v2709_v33 = vpop.eup %2708 }
 0xfbc   :  { %v1662_v41 = vsel %vm228_vm5, %v2709_v33, 0.0 }
 0xfbd   :  { %1663 = vadd.xlane.f32.xlu2 %v1662_v41 }
 0xfc6   :  { %1680 = vrot.lane.b32.xlu0 %v3272_v24, %s3614_s24 }
 0xfc8   :  { %v1810_v15 = vpop.permute.xlu1 %1809 }
 0xfce   :  { %2041 = vrot.lane.b32.xlu0 %v3340_v12, %s3612_s3 }
 0xfd5   :  { %1811 = vrot.lane.b32.xlu2 %v3340_v12, %s2852_s2 }
 0xfd6   :  { %1937 = vrot.lane.b32.xlu0 %v3340_v12, %s2856_s29 }
 0xfdd   :  { %2039 = vrot.lane.b32.xlu2 %v3340_v12, %s3613_s30 }
 0xfe5   :  { %1935 = vrot.lane.b32.xlu2 %v3340_v12, %s2855_s10  ;;  %s2497_s10 = sshll.u32 %s3587_s20, 4  ;;  %s2498_s10 = int_to_ptr.hbm [resolvable:$true] %s2497_s10 }
0x1025   :  { %v1767_v36 = vpop.xlane.xlu0 %1766 }
0x1026   :  { %2710 = vrcp.f32 %v1767_v36  ;;  %v1779_v59 = vand.u32 2147483648, %v1767_v36  ;;  %v1777_v55 = vand.u32 2147483647, %v1767_v36  ;;  %vm1773_vm12 = vweird.f32 %v1767_v36 }
0x1028   :  { %v1780_v27 = vor.u32 1.1754944e-38, %v1779_v59  ;;  %vm1778_vm14 = vcmp.eq.f32.partialorder %v1777_v55, 8.507059e+37 }
0x102c   :  { %v2711_v50 = vpop.eup %2710 }
0x102d   :  { %v1769_v26 = vmul.f32 %v2711_v50, %v1767_v36  ;;  %vm1774_vm11 = vweird.f32 %v2711_v50  ;;  %v3409_v36 = vld [vmem:[%s3574_s7 + $0x1] ss:$0 sm:$0xff] }
0x102e   :  { %vm1775_vm13 = vmor %vm1773_vm12, %vm1774_vm11 }
0x102f   :  { %v1770_v24 = vsub.f32 1.0, %v1769_v26 }
0x1030   :  { %v1664_v53 = vpop.xlane.xlu2 %1663 }
0x1031   :  { %v1771_v54 = vmul.f32 %v2711_v50, %v1770_v24  ;;  %2712 = vrcp.f32 %v1664_v53  ;;  %v1676_v1 = vand.u32 2147483648, %v1664_v53  ;;  %v1674_v3 = vand.u32 2147483647, %v1664_v53 }
0x1032   :  { %vm1670_vm2 = vweird.f32 %v1664_v53 }
0x1033   :  { %v1772_v56 = vadd.f32 %v2711_v50, %v1771_v54  ;;  %v1677_v6 = vor.u32 1.1754944e-38, %v1676_v1  ;;  %vm1675_vm4 = vcmp.eq.f32.partialorder %v1674_v3, 8.507059e+37 }
0x1035   :  { %v1776_v57 = vsel %vm1775_vm13, %v2711_v50, %v1772_v56 }
0x1036   :  { %v1781_v58 = vsel %vm1778_vm14, %v1780_v27, %v1776_v57 }
0x1037   :  { %v2713_v60 = vpop.eup %2712  ;;  %v1782_v61 = vmul.f32 %v2707_v30, %v1781_v58 }
0x1038   :  { %v1666_v62 = vmul.f32 %v2713_v60, %v1664_v53  ;;  %v1681_v63 = vpop.permute.xlu0 %1680  ;;  %v1812_v0 = vpop.permute.xlu2 %1811  ;;  %vm1671_vm15 = vweird.f32 %v2713_v60 }
0x1039   :  { %1701 = vmatpush.msrb.mxu0 %v1681_v63  ;;  %2571 = vmatmul.msk.f32.vlgmr.msra.gmra.mxu3 %vm228_vm5, %v1782_v61  ;;  %vm1672_vm3 = vmor %vm1670_vm2, %vm1671_vm15 }
0x103a   :  { %v1667_v31 = vsub.f32 1.0, %v1666_v62 }
0x103b   :  { %2572 = vmatpush.xpose.msk.msra.mxu0 %vm228_vm5, %v1812_v0 }
0x103c   :  { %v1668_v28 = vmul.f32 %v2713_v60, %v1667_v31 }
0x103e   :  { %v1669_v4 = vadd.f32 %v2713_v60, %v1668_v28 }
0x1040   :  { %v1673_v7 = vsel %vm1672_vm3, %v2713_v60, %v1669_v4  ;;  %v2042_v8 = vpop.permute.xlu0 %2041  ;;  %v2040_v5 = vpop.permute.xlu2 %2039 }
0x1041   :  { %v1678_v10 = vsel %vm1675_vm4, %v1677_v6, %v1673_v7  ;;  %2581 = vmatpush.xpose.msk.msra.mxu3 %vm228_vm5, %v2042_v8 }
0x1042   :  { %v1679_v11 = vmul.f32 %v2709_v33, %v1678_v10 }
0x1044   :  { %2567 = vmatmul.msk.f32.vlgmr.msrb.gmra.mxu0 %vm228_vm5, %v1679_v11 }
0x1048   :  { %v1938_v37 = vpop.permute.xlu0 %1937  ;;  %v1936_v13 = vpop.permute.xlu2 %1935 }
0x1049   :  { %2577 = vmatpush.xpose.msk.msrb.mxu0 %vm228_vm5, %v1938_v37 }
0x104c   :  { %2573 = vmatmul.msk.f32.vlgmr.msra.gmra.mxu0 %vm228_vm5, %v1810_v15 }
0x1054   :  { %2578 = vmatmul.msk.f32.vlgmr.msrb.gmra.mxu0 %vm228_vm5, %v1936_v13 }
0x10bc   :  { %v1806_v21 = vpop.f32.mrf.mxu3 }
0x10bd   :  { %2576 = vmatmul.msk.f32.vlgmr.msrb.gmra.mxu3 %vm228_vm5, %v1806_v21 }
0x10c1   :  { %v1703_v17 = vpop.f32.mrf.mxu0 }
0x10c2   :  { %2568 = vmatmul.msk.f32.vlgmr.msra.gmra.mxu2 %vm228_vm5, %v1703_v17 }
0x10c5   :  { %2582 = vmatmul.msk.f32.vlgmr.msra.gmra.mxu3 %vm228_vm5, %v2040_v5 }
0x10c9   :  { %v1834_v18 = vpop.f32.mrf.mxu0 }
0x10ca   :  { %v1837_v19 = vmul.f32 0.35355338, %v1834_v18 }
0x10cc   :  { %v1838_v20 = vadd.f32 %v1837_v19, %v3115_v35 }
0x10ce   :  { %v1839_v22 = vsel %vm228_vm5, %v1838_v20, -inf }
0x10cf   :  { %1840 = vmax.xlane.f32.xlu0 %v1839_v22 }
0x10d1   :  { %v1960_v52 = vpop.f32.mrf.mxu0 }
0x10d2   :  { %v1963_v23 = vmul.f32 0.35355338, %v1960_v52 }
0x10d4   :  { %v1964_v14 = vadd.f32 %v1963_v23, %v3115_v35 }
0x10d6   :  { %v1965_v39 = vsel %vm228_vm5, %v1964_v14, -inf }
0x10d7   :  { %1966 = vmax.xlane.f32.xlu1 %v1965_v39 }
0x1140   :  { %v3395_v43 = vpop.f32.mrf.mxu3 }
0x1142   :  { %v1841_v2 = vpop.xlane.xlu0 %1840 }
0x1143   :  { %v1842_v34 = vsub.f32 %v1838_v20, %v1841_v2 }
0x1145   :  { %v1843_v49 = vmul.f32 1.442695, %v1842_v34 }
0x1147   :  { %2714 = vpow2.f32 %v1843_v49 }
0x1148   :  { %v2064_v40 = vpop.f32.mrf.mxu3 }
0x1149   :  { %v2067_v44 = vmul.f32 0.35355338, %v2064_v40 }
0x114a   :  { %v1967_v38 = vpop.xlane.xlu1 %1966 }
0x114b   :  { %v1968_v45 = vsub.f32 %v1964_v14, %v1967_v38  ;;  %v2068_v25 = vadd.f32 %v2067_v44, %v3115_v35  ;;  %v1726_v35 = vpop.f32.mrf.mxu2 }
0x114c   :  { %v1729_v41 = vadd.f32 %v1726_v35, %v3356_v29 }
0x114d   :  { %v2715_v30 = vpop.eup %2714  ;;  %v1969_v32 = vmul.f32 1.442695, %v1968_v45  ;;  %v2069_v46 = vsel %vm228_vm5, %v2068_v25, -inf }
0x114e   :  { %2070 = vmax.xlane.f32.xlu2 %v2069_v46  ;;  %v1845_v47 = vsel %vm228_vm5, %v2715_v30, 0.0  ;;  %v2148_v50 = vadd.f32 %v3409_v36, %v1729_v41  ;;  %v2214_v46 = vld [vmem:[#allocation8 + $0x38] sm:$0xff] }
0x114f   :  { %2716 = vpow2.f32 %v1969_v32  ;;  %1846 = vadd.xlane.f32.xlu0 %v1845_v47  ;;  %v2213_v47 = vld [vmem:[#allocation8 + $0x30] sm:$0xff] }
0x1150   :  { %v2150_v26 = vadd.f32 %v2148_v50, %v3261_v51 }
0x1152   :  { %v2156_v24 = vsel %vm121_vm0, %v2150_v26, 0.0 }
0x1155   :  { %v2717_v48 = vpop.eup %2716 }
0x1156   :  { %v1971_v33 = vsel %vm228_vm5, %v2717_v48, 0.0 }
0x1157   :  { %1972 = vadd.xlane.f32.xlu1 %v1971_v33  ;;  %v2211_v33 = vld [vmem:[#allocation8 + $0x20] sm:$0xff] }
0x1163   :  { %1863 = vrot.lane.b32.xlu0 %v3340_v12, %s2853_s27 }
0x1170   :  { %1989 = vrot.lane.b32.xlu1 %v3340_v12, %s2859_s5 }
0x118d   :  { %2157 = vadd.xlane.f32.xlu0 %v2156_v24 }
0x11c1   :  { %v2071_v59 = vpop.xlane.xlu2 %2070 }
0x11c2   :  { %v2072_v53 = vsub.f32 %v2068_v25, %v2071_v59  ;;  %v1847_v54 = vpop.xlane.xlu0 %1846 }
0x11c3   :  { %2718 = vrcp.f32 %v1847_v54  ;;  %v1859_v60 = vand.u32 2147483648, %v1847_v54  ;;  %v1857_v62 = vand.u32 2147483647, %v1847_v54  ;;  %vm1853_vm7 = vweird.f32 %v1847_v54 }
0x11c4   :  { %v2073_v55 = vmul.f32 1.442695, %v2072_v53 }
0x11c5   :  { %v1860_v31 = vor.u32 1.1754944e-38, %v1859_v60  ;;  %vm1858_vm9 = vcmp.eq.f32.partialorder %v1857_v62, 8.507059e+37 }
0x11c6   :  { %2720 = vpow2.f32 %v2073_v55 }
0x11c9   :  { %v2719_v56 = vpop.eup %2718 }
0x11ca   :  { %v1849_v29 = vmul.f32 %v2719_v56, %v1847_v54  ;;  %v1973_v27 = vpop.xlane.xlu1 %1972  ;;  %vm1854_vm6 = vweird.f32 %v2719_v56 }
0x11cb   :  { %2722 = vrcp.f32 %v1973_v27  ;;  %vm1855_vm8 = vmor %vm1853_vm7, %vm1854_vm6  ;;  %v1985_v11 = vand.u32 2147483648, %v1973_v27  ;;  %vm1979_vm11 = vweird.f32 %v1973_v27  ;;  %v1983_v37 = vand.u32 2147483647, %v1973_v27 }
0x11cc   :  { %v3414_v57 = vpop.eup %2720  ;;  %v1850_v58 = vsub.f32 1.0, %v1849_v29 }
0x11cd   :  { %v2075_v51 = vsel %vm228_vm5, %v3414_v57, 0.0  ;;  %v1986_v15 = vor.u32 1.1754944e-38, %v1985_v11  ;;  %vm1984_vm13 = vcmp.eq.f32.partialorder %v1983_v37, 8.507059e+37 }
0x11ce   :  { %v1851_v61 = vmul.f32 %v2719_v56, %v1850_v58  ;;  %2076 = vadd.xlane.f32.xlu2 %v2075_v51 }
0x11d0   :  { %v1852_v63 = vadd.f32 %v2719_v56, %v1851_v61 }
0x11d1   :  { %v2723_v0 = vpop.eup %2722 }
0x11d2   :  { %v1856_v1 = vsel %vm1855_vm8, %v2719_v56, %v1852_v63  ;;  %v1975_v28 = vmul.f32 %v2723_v0, %v1973_v27  ;;  %vm1980_vm10 = vweird.f32 %v2723_v0  ;;  %v3433_v56 = vld [vmem:[%s3575_s8 + $0x1] ss:$0 sm:$0xff] }
0x11d3   :  { %v1861_v3 = vsel %vm1858_vm9, %v1860_v31, %v1856_v1  ;;  %vm1981_vm12 = vmor %vm1979_vm11, %vm1980_vm10  ;;  %v2598_v31 = vld [vmem:[%s3579_s12 + $0x78] sm:$0xff]  ;;  %v2597_v1 = vld [vmem:[%s3579_s12 + $0x70] sm:$0xff] }
0x11d4   :  { %v1976_v4 = vsub.f32 1.0, %v1975_v28  ;;  %v1862_v6 = vmul.f32 %v2715_v30, %v1861_v3  ;;  %2295 = vmatpush.msrb.mxu3 %v2598_v31  ;;  %v2596_v28 = vld [vmem:[%s3579_s12 + $0x68] sm:$0xff]  ;;  %v2594_v3 = vld [vmem:[%s3579_s12 + $0x58] sm:$0xff] }
0x11d5   :  { %v1864_v7 = vpop.permute.xlu0 %1863 }
0x11d6   :  { %v1977_v8 = vmul.f32 %v2723_v0, %v1976_v4  ;;  %1884 = vmatpush.msrb.mxu2 %v1864_v7  ;;  %2296 = vmatpush.msrb.mxu3 %v2597_v1  ;;  %v2593_v4 = vld [vmem:[%s3579_s12 + $0x50] sm:$0xff]  ;;  %v2591_v7 = vld [vmem:[%s3579_s12 + $0x40] sm:$0xff] }
0x11d7   :  { %2574 = vmatmul.msk.f32.vlgmr.msrb.gmra.mxu2 %vm228_vm5, %v1862_v6  ;;  %v2592_v6 = vld [vmem:[%s3579_s12 + $0x48] sm:$0xff] }
0x11d8   :  { %v1978_v10 = vadd.f32 %v2723_v0, %v1977_v8  ;;  %2297 = vmatpush.msrb.mxu3 %v2596_v28  ;;  %v3472_v8 = vld [vmem:[%s3578_s11 + $0x1] ss:$0 sm:$0xff]  ;;  %s2861_s11 = smov [#allocation9]  }
0x11da   :  { %v1982_v5 = vsel %vm1981_vm12, %v2723_v0, %v1978_v10 }
0x11db   :  { %v1987_v13 = vsel %vm1984_vm13, %v1986_v15, %v1982_v5  ;;  %vm2429_vm13 = vcmask 0  }
0x11dc   :  { %v1988_v17 = vmul.f32 %v2717_v48, %v1987_v13  ;;  %v2212_v48 = vld [vmem:[#allocation8 + $0x28] sm:$0xff] }
0x11e2   :  { %v1990_v21 = vpop.permute.xlu1 %1989 }
0x11e3   :  { %2010 = vmatpush.msra.mxu2 %v1990_v21 }
0x11e4   :  { %2579 = vmatmul.msk.f32.vlgmr.msra.gmra.mxu2 %vm228_vm5, %v1988_v17 }
0x11e5   :  { %2137 = vmatpush.msrb.mxu2 %v3385_v16 }
0x11e6   :  { %2093 = vrot.lane.b32.xlu2 %v3340_v12, %s3614_s24 }
0x1200   :  { %v2158_v18 = vpop.xlane.xlu0 %2157 }
0x1201   :  { %v2162_v19 = vmul.f32 %v2158_v18, %v2988_v9 }
0x1203   :  { %v2164_v20 = vsub.f32 %v2150_v26, %v2162_v19 }
0x1205   :  { %v2166_v22 = vmul.f32 %v2164_v20, %v2164_v20 }
0x1207   :  { %v2168_v52 = vsel %vm121_vm0, %v2166_v22, 0.0 }
0x1208   :  { %2169 = vadd.xlane.f32.xlu1 %v2168_v52 }
0x1241   :  { %v2077_v23 = vpop.xlane.xlu2 %2076 }
0x1242   :  { %2724 = vrcp.f32 %v2077_v23  ;;  %v2089_v49 = vand.u32 2147483648, %v2077_v23  ;;  %v2087_v40 = vand.u32 2147483647, %v2077_v23  ;;  %vm2083_vm15 = vweird.f32 %v2077_v23 }
0x1244   :  { %v2090_v44 = vor.u32 1.1754944e-38, %v2089_v49  ;;  %vm2088_vm3 = vcmp.eq.f32.partialorder %v2087_v40, 8.507059e+37  ;;  %v3483_v49 = vld [vmem:[%s3580_s13 + $0x1] ss:$0 sm:$0xff] }
0x1248   :  { %v2725_v14 = vpop.eup %2724 }
0x1249   :  { %v2079_v39 = vmul.f32 %v2725_v14, %v2077_v23  ;;  %v2094_v2 = vpop.permute.xlu2 %2093  ;;  %vm2084_vm14 = vweird.f32 %v2725_v14 }
0x124a   :  { %2114 = vmatpush.msra.mxu0 %v2094_v2  ;;  %vm2085_vm2 = vmor %vm2083_vm15, %vm2084_vm14 }
0x124b   :  { %v2080_v34 = vsub.f32 1.0, %v2079_v39 }
0x124d   :  { %v2081_v16 = vmul.f32 %v2725_v14, %v2080_v34 }
0x124f   :  { %v2082_v12 = vadd.f32 %v2725_v14, %v2081_v16 }
0x1251   :  { %v2086_v38 = vsel %vm2085_vm2, %v2725_v14, %v2082_v12 }
0x1252   :  { %v2091_v45 = vsel %vm2088_vm3, %v2090_v44, %v2086_v38 }
0x1253   :  { %v2092_v25 = vmul.f32 %v3414_v57, %v2091_v45  ;;  %v3438_v57 = vld [vmem:[%s3576_s9 + $0x1] ss:$0 sm:$0xff] }
0x1255   :  { %2583 = vmatmul.msk.f32.vlgmr.msra.gmra.mxu0 %vm228_vm5, %v2092_v25 }
0x125a   :  { %v1886_v30 = vpop.f32.mrf.mxu2 }
0x125b   :  { %2575 = vmatmul.msk.f32.vlgmr.msra.gmra.mxu1 %vm228_vm5, %v1886_v30 }
0x125c   :  { %2238 = vmatpush.msra.mxu1 %v2214_v46 }
0x125e   :  { %2239 = vmatpush.msra.mxu1 %v2213_v47 }
0x1260   :  { %2240 = vmatpush.msra.mxu1 %v2212_v48 }
0x1262   :  { %2241 = vmatpush.msra.mxu1 %v2211_v33 }
0x1267   :  { %v2012_v32 = vpop.f32.mrf.mxu2 }
0x1268   :  { %2580 = vmatmul.msk.f32.vlgmr.msrb.gmra.mxu1 %vm228_vm5, %v2012_v32 }
0x127b   :  { %v2170_v35 = vpop.xlane.xlu1 %2169 }
0x127c   :  { %v2174_v41 = vmul.f32 %v2170_v35, %v2988_v9 }
0x127e   :  { %v2176_v50 = vadd.f32 1e-12, %v2174_v41 }
0x1280   :  { %2726 = vrsqrt.f32 %v2176_v50  ;;  %vm2184_vm6 = vweird.f32 %v2176_v50 }
0x1286   :  { %v2727_v26 = vpop.eup %2726 }
0x1287   :  { %v2179_v24 = vmul.f32 %v2727_v26, %v2176_v50  ;;  %vm2185_vm4 = vweird.f32 %v2727_v26 }
0x1288   :  { %vm2186_vm7 = vmor %vm2184_vm6, %vm2185_vm4 }
0x1289   :  { %v2180_v59 = vmul.f32 %v2727_v26, %v2179_v24 }
0x128b   :  { %v2181_v53 = vmul.f32 0.5, %v2180_v59 }
0x128d   :  { %v2182_v54 = vsub.f32 1.5, %v2181_v53 }
0x128f   :  { %v2183_v55 = vmul.f32 %v2727_v26, %v2182_v54 }
0x1291   :  { %v2187_v29 = vsel %vm2186_vm7, %v2727_v26, %v2183_v55 }
0x1292   :  { %v2198_v27 = vmul.f32 %v2187_v29, %v2164_v20 }
0x1294   :  { %v2203_v58 = vmul.f32 %v3433_v56, %v2198_v27  ;;  %v2373_v27 = vld [vmem:[%s3583_s16 + $0x18] sm:$0xff] }
0x1295   :  { %2390 = vmatpush.msrb.mxu0 %v2373_v27 }
0x1296   :  { %v2208_v60 = vadd.f32 %v3438_v57, %v2203_v58  ;;  %v2372_v58 = vld [vmem:[%s3583_s16 + $0x10] sm:$0xff] }
0x1297   :  { %2391 = vmatpush.msrb.mxu0 %v2372_v58 }
0x1298   :  { %2589 = vmatmul.msk.f32.vlgmr.msra.gmra.mxu1 %vm121_vm0, %v2208_v60 }
0x12d2   :  { %v2116_v51 = vpop.f32.mrf.mxu0 }
0x12d3   :  { %2584 = vmatmul.msk.f32.vlgmr.msrb.gmra.mxu2 %vm228_vm5, %v2116_v51 }
0x12d8   :  { %v1909_v61 = vpop.f32.mrf.mxu1 }
0x12d9   :  { %v1933_v62 = vadd.f32 %v3395_v43, %v1909_v61  ;;  %v2595_v43 = vld [vmem:[%s3579_s12 + $0x60] sm:$0xff]  ;;  %s2495_s12 = sshll.u32 %s2861_s11, 4  ;;  %s2496_s12 = int_to_ptr.vmem [resolvable:$true] %s2495_s12 }
0x12da   :  { %2298 = vmatpush.msrb.mxu3 %v2595_v43  ;;  %v3513_v43 = vld [vmem:[%s3581_s14 + $0x1] ss:$0 sm:$0xff] }
0x12dc   :  { %2299 = vmatpush.msrb.mxu3 %v2594_v3 }
0x12de   :  { %2300 = vmatpush.msrb.mxu3 %v2593_v4 }
0x12e0   :  { %2301 = vmatpush.msrb.mxu3 %v2592_v6 }
0x12e2   :  { %2302 = vmatpush.msrb.mxu3 %v2591_v7  ;;  %v3518_v7 = vld [vmem:[%s3582_s15 + $0x1] ss:$0 sm:$0xff] }
0x12e5   :  { %v2035_v63 = vpop.f32.mrf.mxu1 }
0x12e6   :  { %v2038_v0 = vadd.f32 %v2035_v63, %v1933_v62 }
0x1315   :  { %v2243_v10 = vpop.f32.mrf.mxu1 }
0x1316   :  { %v2244_v11 = vadd.f32 %v3472_v8, %v2243_v10 }
0x1318   :  { %v2251_v37 = vmul.f32 0.044715, %v2244_v11  ;;  %v2249_v18 = vmul.f32 0.5, %v2244_v11 }
0x131a   :  { %v2253_v5 = vmul.f32 %v2251_v37, %v2244_v11 }
0x131c   :  { %v2255_v15 = vmul.f32 %v2253_v5, %v2244_v11 }
0x131e   :  { %v2257_v13 = vadd.f32 %v2255_v15, %v2244_v11 }
0x1320   :  { %v2259_v21 = vmul.f32 0.7978846, %v2257_v13 }
0x1322   :  { %2728 = vtanh.f32 %v2259_v21 }
0x1328   :  { %v2729_v17 = vpop.eup %2728 }
0x1329   :  { %v2263_v19 = vadd.f32 1.0, %v2729_v17 }
0x132b   :  { %v2265_v20 = vmul.f32 %v2263_v19, %v2249_v18 }
0x132d   :  { %2600 = vmatmul.msk.f32.vlgmr.msrb.gmra.mxu3 %vm1185_vm1, %v2265_v20 }
0x1356   :  { %v2139_v22 = vpop.f32.mrf.mxu2 }
0x1357   :  { %v2142_v52 = vadd.f32 %v2139_v22, %v2038_v0 }
0x1359   :  { %v2149_v23 = vadd.f32 %v3409_v36, %v2142_v52  ;;  %v2403_v52 = vld [vmem:[%s3585_s18 + $0x10] sm:$0xff] }
0x135b   :  { %v2151_v14 = vadd.f32 %v2149_v23, %v3321_v42  ;;  %v2402_v23 = vld [vmem:[%s3585_s18 + $0x8] sm:$0xff] }
0x135d   :  { %v2159_v39 = vsel %vm121_vm0, %v2151_v14, 0.0 }
0x135e   :  { %2160 = vadd.xlane.f32.xlu2 %v2159_v39  ;;  %v2374_v39 = vld [vmem:[%s3584_s17] sm:$0x1] }
0x13b0   :  { %v2304_v40 = vpop.f32.mrf.mxu3 }
0x13b1   :  { %v2305_v44 = vadd.f32 %v3483_v49, %v2304_v40 }
0x13b3   :  { %v2310_v42 = vadd.f32 %v2305_v44, %v2208_v60 }
0x13b5   :  { %v2316_v38 = vsel %vm121_vm0, %v2310_v42, 0.0 }
0x13d1   :  { %v2161_v2 = vpop.xlane.xlu2 %2160 }
0x13d2   :  { %v2163_v34 = vmul.f32 %v2161_v2, %v2988_v9 }
0x13d4   :  { %v2165_v16 = vsub.f32 %v2151_v14, %v2163_v34  ;;  %v2401_v14 = vld [vmem:[%s3585_s18] sm:$0xff] }
0x13d6   :  { %v2167_v12 = vmul.f32 %v2165_v16, %v2165_v16 }
0x13d8   :  { %v2171_v36 = vsel %vm121_vm0, %v2167_v12, 0.0 }
0x13d9   :  { %2172 = vadd.xlane.f32.xlu0 %v2171_v36 }
0x13e1   :  { %2317 = vadd.xlane.f32.xlu0 %v2316_v38 }
0x144c   :  { %v2173_v45 = vpop.xlane.xlu0 %2172 }
0x144d   :  { %v2175_v25 = vmul.f32 %v2173_v45, %v2988_v9 }
0x144f   :  { %v2177_v30 = vadd.f32 1e-12, %v2175_v25 }
0x1451   :  { %2730 = vrsqrt.f32 %v2177_v30  ;;  %vm2194_vm8 = vweird.f32 %v2177_v30 }
0x1454   :  { %v2318_v32 = vpop.xlane.xlu0 %2317 }
0x1455   :  { %v2322_v46 = vmul.f32 %v2318_v32, %v2988_v9 }
0x1457   :  { %v2731_v47 = vpop.eup %2730  ;;  %v2324_v48 = vsub.f32 %v2310_v42, %v2322_v46  ;;  %v2405_v42 = vld [vmem:[#allocation2] sm:$0x1] }
0x1458   :  { %v2189_v33 = vmul.f32 %v2731_v47, %v2177_v30  ;;  %vm2195_vm5 = vweird.f32 %v2731_v47 }
0x1459   :  { %v2326_v35 = vmul.f32 %v2324_v48, %v2324_v48  ;;  %vm2196_vm9 = vmor %vm2194_vm8, %vm2195_vm5 }
0x145a   :  { %v2190_v41 = vmul.f32 %v2731_v47, %v2189_v33 }
0x145b   :  { %v2328_v50 = vsel %vm121_vm0, %v2326_v35, 0.0 }
0x145c   :  { %v2191_v26 = vmul.f32 0.5, %v2190_v41  ;;  %2329 = vadd.xlane.f32.xlu1 %v2328_v50 }
0x145e   :  { %v2192_v24 = vsub.f32 1.5, %v2191_v26 }
0x1460   :  { %v2193_v59 = vmul.f32 %v2731_v47, %v2192_v24 }
0x1462   :  { %v2197_v53 = vsel %vm2196_vm9, %v2731_v47, %v2193_v59 }
0x1463   :  { %v2199_v54 = vmul.f32 %v2197_v53, %v2165_v16 }
0x1465   :  { %v2204_v55 = vmul.f32 %v3433_v56, %v2199_v54  ;;  %v2371_v56 = vld [vmem:[%s3583_s16 + $0x8] sm:$0xff] }
0x1466   :  { %2392 = vmatpush.msrb.mxu0 %v2371_v56 }
0x1467   :  { %v3493_v29 = vadd.f32 %v3438_v57, %v2204_v55  ;;  %v2370_v57 = vld [vmem:[%s3583_s16] sm:$0xff] }
0x1468   :  { %2393 = vmatpush.msrb.mxu0 %v2370_v57 }
0x1469   :  { %2590 = vmatmul.msk.f32.gmra.mxu1 %vm121_vm0, %v3493_v29 }
0x146a   :  { %2451 = vmatpush.msra.mxu0 %v2373_v27 }
0x146c   :  { %2452 = vmatpush.msra.mxu0 %v2372_v58 }
0x146e   :  { %2453 = vmatpush.msra.mxu0 %v2371_v56 }
0x1470   :  { %2454 = vmatpush.msra.mxu0 %v2370_v57  ;;  %v2465_v57 = vld [vmem:[#allocation2] sm:$0x1] }
0x14cf   :  { %v2330_v60 = vpop.xlane.xlu1 %2329 }
0x14d0   :  { %v2334_v51 = vmul.f32 %v2330_v60, %v2988_v9 }
0x14d2   :  { %v2336_v61 = vadd.f32 1e-12, %v2334_v51 }
0x14d4   :  { %2732 = vrsqrt.f32 %v2336_v61  ;;  %vm2344_vm11 = vweird.f32 %v2336_v61 }
0x14da   :  { %v2733_v62 = vpop.eup %2732 }
0x14db   :  { %v2339_v63 = vmul.f32 %v2733_v62, %v2336_v61  ;;  %vm2345_vm10 = vweird.f32 %v2733_v62 }
0x14dc   :  { %vm2346_vm12 = vmor %vm2344_vm11, %vm2345_vm10 }
0x14dd   :  { %v2340_v0 = vmul.f32 %v2733_v62, %v2339_v63 }
0x14df   :  { %v2341_v31 = vmul.f32 0.5, %v2340_v0 }
0x14e1   :  { %v2342_v1 = vsub.f32 1.5, %v2341_v31 }
0x14e3   :  { %v2343_v28 = vmul.f32 %v2733_v62, %v2342_v1 }
0x14e5   :  { %v2347_v3 = vsel %vm2346_vm12, %v2733_v62, %v2343_v28 }
0x14e6   :  { %v2358_v4 = vmul.f32 %v2347_v3, %v2324_v48  ;;  %v2246_v6 = vpop.f32.mrf.mxu1 }
0x14e7   :  { %v2247_v10 = vadd.f32 %v3472_v8, %v2246_v6  ;;  %v2404_v8 = vld [vmem:[%s3585_s18 + $0x18] sm:$0xff] }
0x14e8   :  { %v2363_v11 = vmul.f32 %v3513_v43, %v2358_v4  ;;  %2421 = vmatpush.msra.mxu2 %v2404_v8 }
0x14e9   :  { %v2252_v37 = vmul.f32 0.044715, %v2247_v10  ;;  %v2250_v19 = vmul.f32 0.5, %v2247_v10 }
0x14ea   :  { %v2368_v5 = vadd.f32 %v3518_v7, %v2363_v11  ;;  %2422 = vmatpush.msra.mxu2 %v2403_v52 }
0x14eb   :  { %v2254_v15 = vmul.f32 %v2252_v37, %v2247_v10 }
0x14ec   :  { %2604 = vmatmul.msk.f32.vlgmr.msrb.gmra.mxu0 %vm121_vm0, %v2368_v5  ;;  %2423 = vmatpush.msra.mxu2 %v2402_v23 }
0x14ed   :  { %v2256_v13 = vmul.f32 %v2254_v15, %v2247_v10 }
0x14ee   :  { %2424 = vmatpush.msra.mxu2 %v2401_v14 }
0x14ef   :  { %v2258_v21 = vadd.f32 %v2256_v13, %v2247_v10 }
0x14f0   :  { %2481 = vmatpush.msrb.mxu2 %v2404_v8 }
0x14f1   :  { %v2260_v17 = vmul.f32 0.7978846, %v2258_v21 }
0x14f2   :  { %2482 = vmatpush.msrb.mxu2 %v2403_v52 }
0x14f3   :  { %2734 = vtanh.f32 %v2260_v17 }
0x14f4   :  { %2483 = vmatpush.msrb.mxu2 %v2402_v23 }
0x14f6   :  { %2484 = vmatpush.msrb.mxu2 %v2401_v14 }
0x14f9   :  { %v2735_v18 = vpop.eup %2734 }
0x14fa   :  { %v2264_v20 = vadd.f32 1.0, %v2735_v18 }
0x14fc   :  { %v2266_v22 = vmul.f32 %v2264_v20, %v2250_v19 }
0x14fe   :  { %2601 = vmatmul.msk.f32.gmra.mxu3 %vm1185_vm1, %v2266_v22  ;;  %vm2399_vm1 = vcmask 253952  }
0x1569   :  { %v2395_v2 = vpop.f32.mrf.mxu0 }
0x156a   :  { %v2396_v34 = vadd.f32 %v2395_v2, %v2374_v39 }
0x156c   :  { %2736 = vtanh.f32 %v2396_v34 }
0x1572   :  { %v2737_v16 = vpop.eup %2736 }
0x1573   :  { %2605 = vmatmul.msk.f32.vlgmr.msra.gmra.mxu2 %vm121_vm0, %v2737_v16  ;;  %2400 = vst.msk [vmem:[#allocation9] sm:$0x1] %vm2399_vm1, %v2737_v16 }
0x1581   :  { %v2307_v40 = vpop.f32.mrf.mxu3 }
0x1582   :  { %v2308_v12 = vadd.f32 %v3483_v49, %v2307_v40 }
0x1584   :  { %v2311_v44 = vadd.f32 %v2308_v12, %v3493_v29 }
0x1586   :  { %v2319_v36 = vsel %vm121_vm0, %v2311_v44, 0.0 }
0x1587   :  { %2320 = vadd.xlane.f32.xlu2 %v2319_v36 }
0x15f6   :  { %v2426_v38 = vpop.f32.mrf.mxu2 }
0x15f7   :  { %v2427_v45 = vadd.f32 %v2426_v38, %v2405_v42 }
0x15f9   :  { %2430 = vst.msk [vmem:[%s3588_s21] sm:$0x1] %vm2429_vm13, %v2427_v45 }
0x15fa   :  { %v2321_v25 = vpop.xlane.xlu2 %2320 }
0x15fb   :  { %v2323_v30 = vmul.f32 %v2321_v25, %v2988_v9 }
0x15fd   :  { %v2325_v32 = vsub.f32 %v2311_v44, %v2323_v30 }
0x15ff   :  { %v2327_v46 = vmul.f32 %v2325_v32, %v2325_v32 }
0x1601   :  { %v2331_v49 = vsel %vm121_vm0, %v2327_v46, 0.0 }
0x1602   :  { %2332 = vadd.xlane.f32.xlu0 %v2331_v49 }
0x1675   :  { %v2333_v47 = vpop.xlane.xlu0 %2332 }
0x1676   :  { %v2335_v48 = vmul.f32 %v2333_v47, %v2988_v9  ;;  %v2435_v9 = vld [vmem:[%s3584_s17] sm:$0x1] }
0x1678   :  { %v2337_v33 = vadd.f32 1e-12, %v2335_v48 }
0x167a   :  { %2738 = vrsqrt.f32 %v2337_v33  ;;  %vm2354_vm15 = vweird.f32 %v2337_v33 }
0x1680   :  { %v2739_v35 = vpop.eup %2738 }
0x1681   :  { %v2349_v41 = vmul.f32 %v2739_v35, %v2337_v33  ;;  %vm2355_vm14 = vweird.f32 %v2739_v35 }
0x1682   :  { %vm2356_vm2 = vmor %vm2354_vm15, %vm2355_vm14 }
0x1683   :  { %v2350_v50 = vmul.f32 %v2739_v35, %v2349_v41 }
0x1685   :  { %v2351_v26 = vmul.f32 0.5, %v2350_v50 }
0x1687   :  { %v2352_v24 = vsub.f32 1.5, %v2351_v26 }
0x1689   :  { %v2353_v59 = vmul.f32 %v2739_v35, %v2352_v24 }
0x168b   :  { %v2357_v53 = vsel %vm2356_vm2, %v2739_v35, %v2353_v59 }
0x168c   :  { %v2359_v54 = vmul.f32 %v2357_v53, %v2325_v32 }
0x168e   :  { %v2364_v55 = vmul.f32 %v3513_v43, %v2359_v54 }
0x1690   :  { %v2369_v29 = vadd.f32 %v3518_v7, %v2364_v55 }
0x1692   :  { %2606 = vmatmul.msk.f32.vlgmr.msra.gmra.mxu0 %vm121_vm0, %v2369_v29 }
0x170f   :  { %v2456_v27 = vpop.f32.mrf.mxu0 }
0x1710   :  { %v2457_v58 = vadd.f32 %v2456_v27, %v2435_v9 }
0x1712   :  { %2740 = vtanh.f32 %v2457_v58 }
0x1718   :  { %v2741_v56 = vpop.eup %2740 }
0x1719   :  { %2607 = vmatmul.msk.f32.vlgmr.msrb.gmra.mxu2 %vm121_vm0, %v2741_v56  ;;  %2460 = vst.msk [vmem:[#allocation9 + $0x1] sm:$0x1] %vm2399_vm1, %v2741_v56 }
0x171a   :  { %2500 = dma.vmem_to_hbm [thread:$0]  %s2496_s12, 32, %s2498_s10, [#allocation5]  }
0x179c   :  { %v2486_v60 = vpop.f32.mrf.mxu2 }
0x179d   :  { %v2487_v51 = vadd.f32 %v2486_v60, %v2465_v57 }
0x179f   :  { %2489 = vst.msk [vmem:[%s3588_s21 + $0x1] sm:$0x1] %vm2429_vm13, %v2487_v51 }
0x17a0   :  { %2842 = dma.done.wait [#allocation5], 32  }
0x17a1   :  { %2843 = vsyncadd [#allocation5], 4294967264 }
0x17a2   :  { %2509 = vsyncpa [#allocation4], 1 }
0x17a3   :  { %2510 = vsyncpa [#allocation7], 1 }
0x17a4   :  { %2511 = vsyncpa [#allocation5], 1 }

</bundles_post_ra>
